<compile_context>
chip_gen: v6e
topology: v6e:2x2x1
jax: 0.10.0
libtpu: 0.0.40
codegen_flags: <defaults>
</compile_context>

<pallas_src>
import jax
import jax.numpy as jnp
from jax import lax
from jax.experimental import pallas as pl
from jax.experimental.pallas import tpu as pltpu


def _round_up(n, m):
    return ((n + m - 1) // m) * m


# ----------------------------------------------------------------------------
# Fused LSTM-stack + FC kernel (built per static (num_layers, T, B, H_pad)).
# ----------------------------------------------------------------------------
def _make_fused_kernel(num_layers, T, B, H_pad, unroll_threshold=16):
    """Ref order (as passed by pallas_call):
      x_ref (T*B, Din_pad),
      [w_ih_ref, w_hh_ref, b_ref] * num_layers,
      fc_w_ref (H_pad, C_pad), fc_b_ref (1, C_pad),
      out_ref (B, C_pad),
      gates_scr (T*B, 4*H_pad), seq_scr (T*B, H_pad)
    """

    def kernel(*refs):
        x_ref = refs[0]
        layer_refs = refs[1:1 + 3 * num_layers]
        fc_w_ref = refs[1 + 3 * num_layers]
        fc_b_ref = refs[2 + 3 * num_layers]
        out_ref = refs[3 + 3 * num_layers]
        gates_scr, seq_scr = refs[4 + 3 * num_layers:]

        h_last = None
        for layer in range(num_layers):
            w_ih_ref = layer_refs[3 * layer + 0]
            w_hh_ref = layer_refs[3 * layer + 1]
            b_ref = layer_refs[3 * layer + 2]
            last_layer = layer == num_layers - 1

            # Hoisted, non-recurrent input projection for the whole sequence:
            # one big MXU matmul + one (hoisted) bias broadcast.
            x_flat = x_ref[...] if layer == 0 else seq_scr[...]
            gates_scr[...] = (
                jnp.dot(x_flat, w_ih_ref[...],
                        preferred_element_type=jnp.float32)
                + b_ref[...]
            )

            w_hh = w_hh_ref[...]          # hoist recurrent weight load
            h0 = jnp.zeros((B, H_pad), jnp.float32)
            c0 = jnp.zeros((B, H_pad), jnp.float32)

            def step(t, h, c, w_hh=w_hh, last_layer=last_layer):
                row = t * B
                if not isinstance(row, int):
                    row = pl.multiple_of(row, B)
                g = gates_scr[pl.ds(row, B), :] + jnp.dot(
                    h, w_hh, preferred_element_type=jnp.float32)
                # PyTorch gate order (i, f, g, o); 128-aligned lane slices.
                i = jax.nn.sigmoid(g[:, 0 * H_pad:1 * H_pad])
                f = jax.nn.sigmoid(g[:, 1 * H_pad:2 * H_pad])
                gg = jnp.tanh(g[:, 2 * H_pad:3 * H_pad])
                o = jax.nn.sigmoid(g[:, 3 * H_pad:4 * H_pad])
                c_new = f * c + i * gg
                h_new = o * jnp.tanh(c_new)
                if not last_layer:
                    # Next layer's input; stays resident in VMEM.
                    seq_scr[pl.ds(row, B), :] = h_new
                return h_new, c_new

            if T <= unroll_threshold:
                # Short static trip count: full unroll, h/c stay in vregs.
                h, c = h0, c0
                for t in range(T):
                    h, c = step(t, h, c)
            else:
                def body(t, carry):
                    return step(t, carry[0], carry[1])
                h, c = lax.fori_loop(0, T, body, (h0, c0))

            h_last = h

        # Final classifier on the last hidden state of the last layer only.
        out_ref[...] = (
            jnp.dot(h_last, fc_w_ref[...], preferred_element_type=jnp.float32)
            + fc_b_ref[...]
        )

    return kernel


# ----------------------------------------------------------------------------
# Padding helpers: lane-dense (multiples of 128) layout with exact-zero pads.
# ----------------------------------------------------------------------------
def _pad_gated(w, rows_pad, H, H_pad):
    """Pad a gate-blocked [i|f|g|o] matrix (rows, 4H) -> (rows_pad, 4*H_pad)."""
    rows = w.shape[0]
    out = jnp.zeros((rows_pad, 4 * H_pad), jnp.float32)
    for k in range(4):
        out = out.at[:rows, k * H_pad:k * H_pad + H].set(
            w[:, k * H:(k + 1) * H].astype(jnp.float32))
    return out


# ----------------------------------------------------------------------------
# Full forward pass (mirrors LSTMClassifier.forward, batch_first input).
# ----------------------------------------------------------------------------
def lstm_classifier_forward(x, params):
    """x: (batch, seq, input_size) -> (batch, num_classes)."""
    B, T, Din = x.shape
    layers = params["layers"]
    num_layers = len(layers)
    H = layers[0][1].shape[0]            # w_hh_t is (H, 4H)
    C = params["fc_w_t"].shape[1]

    H_pad = _round_up(H, 128)
    Din_pad = _round_up(Din, 128)
    C_pad = _round_up(C, 128)
    B_pad = _round_up(B, 8)

    # (B, T, Din) -> time-major, zero-padded, flattened to (T*B_pad, Din_pad).
    x_t = jnp.transpose(x, (1, 0, 2)).astype(jnp.float32)
    x_t = jnp.pad(x_t, ((0, 0), (0, B_pad - B), (0, Din_pad - Din)))
    x_flat = x_t.reshape(T * B_pad, Din_pad)

    flat_w = []
    for li, (w_ih_t, w_hh_t, b) in enumerate(layers):
        in_pad = Din_pad if li == 0 else H_pad
        flat_w.append(_pad_gated(w_ih_t, in_pad, H, H_pad))
        flat_w.append(_pad_gated(w_hh_t, H_pad, H, H_pad))
        flat_w.append(_pad_gated(b, 1, H, H_pad))
    fc_w = jnp.zeros((H_pad, C_pad), jnp.float32).at[:H, :C].set(
        params["fc_w_t"].astype(jnp.float32))
    fc_b = jnp.zeros((1, C_pad), jnp.float32).at[:, :C].set(
        params["fc_b"].astype(jnp.float32))
    flat_w += [fc_w, fc_b]

    # Advisory cost estimate for XLA's scheduler.
    flops = 2 * B_pad * H_pad * C_pad
    for li in range(num_layers):
        din = Din_pad if li == 0 else H_pad
        flops += 2 * T * B_pad * (din + H_pad) * 4 * H_pad
    transcendentals = num_layers * T * B_pad * 5 * H_pad
    bytes_accessed = 4 * (x_flat.size + sum(w.size for w in flat_w)
                          + B_pad * C_pad)

    kernel = _make_fused_kernel(num_layers, T, B_pad, H_pad)
    out = pl.pallas_call(
        kernel,
        out_shape=jax.ShapeDtypeStruct((B_pad, C_pad), jnp.float32),
        scratch_shapes=[
            pltpu.VMEM((T * B_pad, 4 * H_pad), jnp.float32),   # gate pre-acts
            pltpu.VMEM((T * B_pad, H_pad), jnp.float32),       # inter-layer seq
        ],
        cost_estimate=pl.CostEstimate(
            flops=flops,
            transcendentals=transcendentals,
            bytes_accessed=bytes_accessed),
    )(x_flat, *flat_w)
    return out[:B, :C]


# ----------------------------------------------------------------------------
# Deterministic parameter init (PyTorch-style uniform(-1/sqrt(H), 1/sqrt(H))).
# ----------------------------------------------------------------------------
def init_params(key, input_size, hidden_size, num_layers, num_classes):
    bound = 1.0 / jnp.sqrt(jnp.float32(hidden_size))
    layers = []
    for layer in range(num_layers):
        din = input_size if layer == 0 else hidden_size
        key, k1, k2, k3, k4 = jax.random.split(key, 5)
        w_ih = jax.random.uniform(k1, (4 * hidden_size, din), jnp.float32,
                                  -bound, bound)
        w_hh = jax.random.uniform(k2, (4 * hidden_size, hidden_size),
                                  jnp.float32, -bound, bound)
        b_ih = jax.random.uniform(k3, (4 * hidden_size,), jnp.float32,
                                  -bound, bound)
        b_hh = jax.random.uniform(k4, (4 * hidden_size,), jnp.float32,
                                  -bound, bound)
        layers.append((w_ih.T, w_hh.T, (b_ih + b_hh).reshape(1, -1)))
    key, k1, k2 = jax.random.split(key, 3)
    fc_w = jax.random.uniform(k1, (num_classes, hidden_size), jnp.float32,
                              -bound, bound)
    fc_b = jax.random.uniform(k2, (num_classes,), jnp.float32, -bound, bound)
    return {"layers": layers, "fc_w_t": fc_w.T, "fc_b": fc_b.reshape(1, -1)}


# ----------------------------------------------------------------------------
# Pure-JAX reference (same math, no Pallas, no padding) for correctness.
# ----------------------------------------------------------------------------
def reference_forward(x, params):
    y = jnp.transpose(x, (1, 0, 2)).astype(jnp.float32)
    for (w_ih_t, w_hh_t, b) in params["layers"]:
        T, B, _ = y.shape
        H = w_hh_t.shape[0]
        h = jnp.zeros((B, H), jnp.float32)
        c = jnp.zeros((B, H), jnp.float32)
        outs = []
        for t in range(T):
            gates = y[t] @ w_ih_t + h @ w_hh_t + b
            i = jax.nn.sigmoid(gates[:, 0 * H:1 * H])
            f = jax.nn.sigmoid(gates[:, 1 * H:2 * H])
            g = jnp.tanh(gates[:, 2 * H:3 * H])
            o = jax.nn.sigmoid(gates[:, 3 * H:4 * H])
            c = f * c + i * g
            h = o * jnp.tanh(c)
            outs.append(h)
        y = jnp.stack(outs, axis=0)
    return y[-1] @ params["fc_w_t"] + params["fc_b"]


if __name__ == "__main__":
    batch, seq_len = 8, 8
    input_size, hidden_size, num_layers, num_classes = 16, 32, 2, 8

    key = jax.random.PRNGKey(0)
    key, kx, kp = jax.random.split(key, 3)
    x = jax.random.normal(kx, (batch, seq_len, input_size), jnp.float32)
    params = init_params(kp, input_size, hidden_size, num_layers, num_classes)

    fwd = jax.jit(lstm_classifier_forward)
    out = jax.block_until_ready(fwd(x, params))

    ref = reference_forward(x, params)
    assert out.shape == (batch, num_classes)
    assert jnp.allclose(out, ref, rtol=1e-4, atol=1e-5), "mismatch vs reference"

    print("KERNEL_OK")
</pallas_src>

<mosaic_0001>
module attributes {stable_mosaic.version = 11 : i64} {
  func.func @kernel(%arg0: memref<64x128xf32, #tpu.memory_space<vmem>>, %arg1: memref<128x512xf32, #tpu.memory_space<vmem>>, %arg2: memref<128x512xf32, #tpu.memory_space<vmem>>, %arg3: memref<1x512xf32, #tpu.memory_space<vmem>>, %arg4: memref<128x512xf32, #tpu.memory_space<vmem>>, %arg5: memref<128x512xf32, #tpu.memory_space<vmem>>, %arg6: memref<1x512xf32, #tpu.memory_space<vmem>>, %arg7: memref<128x128xf32, #tpu.memory_space<vmem>>, %arg8: memref<1x128xf32, #tpu.memory_space<vmem>>, %arg9: memref<8x128xf32, #tpu.memory_space<vmem>>, %arg10: memref<64x512xf32, #tpu.memory_space<vmem>>, %arg11: memref<64x128xf32, #tpu.memory_space<vmem>>) attributes {dimension_semantics = [], scalar_prefetch = 0 : i64, scratch_operands = 2 : i64, tpu.core_type = #tpu.core_type<tc>} {
    %c0 = arith.constant 0 : index
    %c0_0 = arith.constant 0 : index
    %0 = vector.load %arg0[%c0, %c0_0] : memref<64x128xf32, #tpu.memory_space<vmem>>, vector<64x128xf32>
    %c0_1 = arith.constant 0 : index
    %c0_2 = arith.constant 0 : index
    %1 = vector.load %arg1[%c0_1, %c0_2] : memref<128x512xf32, #tpu.memory_space<vmem>>, vector<128x512xf32>
    %cst = arith.constant dense<0.000000e+00> : vector<64x512xf32>
    %2 = tpu.matmul %0, %1, %cst {dimension_numbers = #tpu.dot_dimension_numbers<[1], [0], [0], [1], [0, 0, 1, 1], [], []>} : vector<64x128xf32>, vector<128x512xf32>, vector<64x512xf32> -> vector<64x512xf32>
    %c0_3 = arith.constant 0 : index
    %c0_4 = arith.constant 0 : index
    %3 = vector.load %arg3[%c0_3, %c0_4] : memref<1x512xf32, #tpu.memory_space<vmem>>, vector<1x512xf32>
    %4 = vector.broadcast %3 : vector<1x512xf32> to vector<64x512xf32>
    %5 = arith.addf %2, %4 : vector<64x512xf32>
    %c0_5 = arith.constant 0 : index
    %c0_6 = arith.constant 0 : index
    %6 = vector.load %arg10[%c0_5, %c0_6] : memref<64x512xf32, #tpu.memory_space<vmem>>, vector<64x512xf32>
    tpu.vector_store %arg10[%c0_5, %c0_6], %5 {strides = array<i32>} : memref<64x512xf32, #tpu.memory_space<vmem>>, vector<64x512xf32>,
    %c0_7 = arith.constant 0 : index
    %c0_8 = arith.constant 0 : index
    %7 = vector.load %arg2[%c0_7, %c0_8] : memref<128x512xf32, #tpu.memory_space<vmem>>, vector<128x512xf32>
    %cst_9 = arith.constant 0.000000e+00 : f32
    %8 = vector.broadcast %cst_9 : f32 to vector<8x128xf32>
    %cst_10 = arith.constant 0.000000e+00 : f32
    %9 = vector.broadcast %cst_10 : f32 to vector<8x128xf32>
    %c0_11 = arith.constant 0 : index
    %c0_12 = arith.constant 0 : index
    %10 = vector.load %arg10[%c0_11, %c0_12] : memref<64x512xf32, #tpu.memory_space<vmem>>, vector<8x512xf32>
    %cst_13 = arith.constant dense<0.000000e+00> : vector<8x512xf32>
    %11 = tpu.matmul %8, %7, %cst_13 {dimension_numbers = #tpu.dot_dimension_numbers<[1], [0], [0], [1], [0, 0, 1, 1], [], []>} : vector<8x128xf32>, vector<128x512xf32>, vector<8x512xf32> -> vector<8x512xf32>
    %12 = arith.addf %10, %11 : vector<8x512xf32>
    %13 = vector.extract_strided_slice %12 {offsets = [0, 0], sizes = [8, 128], strides = [1, 1]} : vector<8x512xf32> to vector<8x128xf32>
    %14 = arith.negf %13 : vector<8x128xf32>
    %15 = math.exp %14 : vector<8x128xf32>
    %cst_14 = arith.constant 1.000000e+00 : f32
    %16 = vector.broadcast %cst_14 : f32 to vector<8x128xf32>
    %17 = arith.addf %16, %15 : vector<8x128xf32>
    %18 = arith.divf %16, %17 : vector<8x128xf32>
    %19 = vector.extract_strided_slice %12 {offsets = [0, 128], sizes = [8, 128], strides = [1, 1]} : vector<8x512xf32> to vector<8x128xf32>
    %20 = arith.negf %19 : vector<8x128xf32>
    %21 = math.exp %20 : vector<8x128xf32>
    %cst_15 = arith.constant 1.000000e+00 : f32
    %22 = vector.broadcast %cst_15 : f32 to vector<8x128xf32>
    %23 = arith.addf %22, %21 : vector<8x128xf32>
    %24 = arith.divf %22, %23 : vector<8x128xf32>
    %25 = vector.extract_strided_slice %12 {offsets = [0, 256], sizes = [8, 128], strides = [1, 1]} : vector<8x512xf32> to vector<8x128xf32>
    %26 = math.tanh %25 : vector<8x128xf32>
    %27 = vector.extract_strided_slice %12 {offsets = [0, 384], sizes = [8, 128], strides = [1, 1]} : vector<8x512xf32> to vector<8x128xf32>
    %28 = arith.negf %27 : vector<8x128xf32>
    %29 = math.exp %28 : vector<8x128xf32>
    %cst_16 = arith.constant 1.000000e+00 : f32
    %30 = vector.broadcast %cst_16 : f32 to vector<8x128xf32>
    %31 = arith.addf %30, %29 : vector<8x128xf32>
    %32 = arith.divf %30, %31 : vector<8x128xf32>
    %33 = arith.mulf %24, %9 : vector<8x128xf32>
    %34 = arith.mulf %18, %26 : vector<8x128xf32>
    %35 = arith.addf %33, %34 : vector<8x128xf32>
    %36 = math.tanh %35 : vector<8x128xf32>
    %37 = arith.mulf %32, %36 : vector<8x128xf32>
    %c0_17 = arith.constant 0 : index
    %c0_18 = arith.constant 0 : index
    %38 = vector.load %arg11[%c0_17, %c0_18] : memref<64x128xf32, #tpu.memory_space<vmem>>, vector<8x128xf32>
    tpu.vector_store %arg11[%c0_17, %c0_18], %37 {strides = array<i32>} : memref<64x128xf32, #tpu.memory_space<vmem>>, vector<8x128xf32>,
    %c8 = arith.constant 8 : index
    %c0_19 = arith.constant 0 : index
    %39 = vector.load %arg10[%c8, %c0_19] : memref<64x512xf32, #tpu.memory_space<vmem>>, vector<8x512xf32>
    %cst_20 = arith.constant dense<0.000000e+00> : vector<8x512xf32>
    %40 = tpu.matmul %37, %7, %cst_20 {dimension_numbers = #tpu.dot_dimension_numbers<[1], [0], [0], [1], [0, 0, 1, 1], [], []>} : vector<8x128xf32>, vector<128x512xf32>, vector<8x512xf32> -> vector<8x512xf32>
    %41 = arith.addf %39, %40 : vector<8x512xf32>
    %42 = vector.extract_strided_slice %41 {offsets = [0, 0], sizes = [8, 128], strides = [1, 1]} : vector<8x512xf32> to vector<8x128xf32>
    %43 = arith.negf %42 : vector<8x128xf32>
    %44 = math.exp %43 : vector<8x128xf32>
    %cst_21 = arith.constant 1.000000e+00 : f32
    %45 = vector.broadcast %cst_21 : f32 to vector<8x128xf32>
    %46 = arith.addf %45, %44 : vector<8x128xf32>
    %47 = arith.divf %45, %46 : vector<8x128xf32>
    %48 = vector.extract_strided_slice %41 {offsets = [0, 128], sizes = [8, 128], strides = [1, 1]} : vector<8x512xf32> to vector<8x128xf32>
    %49 = arith.negf %48 : vector<8x128xf32>
    %50 = math.exp %49 : vector<8x128xf32>
    %cst_22 = arith.constant 1.000000e+00 : f32
    %51 = vector.broadcast %cst_22 : f32 to vector<8x128xf32>
    %52 = arith.addf %51, %50 : vector<8x128xf32>
    %53 = arith.divf %51, %52 : vector<8x128xf32>
    %54 = vector.extract_strided_slice %41 {offsets = [0, 256], sizes = [8, 128], strides = [1, 1]} : vector<8x512xf32> to vector<8x128xf32>
    %55 = math.tanh %54 : vector<8x128xf32>
    %56 = vector.extract_strided_slice %41 {offsets = [0, 384], sizes = [8, 128], strides = [1, 1]} : vector<8x512xf32> to vector<8x128xf32>
    %57 = arith.negf %56 : vector<8x128xf32>
    %58 = math.exp %57 : vector<8x128xf32>
    %cst_23 = arith.constant 1.000000e+00 : f32
    %59 = vector.broadcast %cst_23 : f32 to vector<8x128xf32>
    %60 = arith.addf %59, %58 : vector<8x128xf32>
    %61 = arith.divf %59, %60 : vector<8x128xf32>
    %62 = arith.mulf %53, %35 : vector<8x128xf32>
    %63 = arith.mulf %47, %55 : vector<8x128xf32>
    %64 = arith.addf %62, %63 : vector<8x128xf32>
    %65 = math.tanh %64 : vector<8x128xf32>
    %66 = arith.mulf %61, %65 : vector<8x128xf32>
    %c8_24 = arith.constant 8 : index
    %c0_25 = arith.constant 0 : index
    %67 = vector.load %arg11[%c8_24, %c0_25] : memref<64x128xf32, #tpu.memory_space<vmem>>, vector<8x128xf32>
    tpu.vector_store %arg11[%c8_24, %c0_25], %66 {strides = array<i32>} : memref<64x128xf32, #tpu.memory_space<vmem>>, vector<8x128xf32>,
    %c16 = arith.constant 16 : index
    %c0_26 = arith.constant 0 : index
    %68 = vector.load %arg10[%c16, %c0_26] : memref<64x512xf32, #tpu.memory_space<vmem>>, vector<8x512xf32>
    %cst_27 = arith.constant dense<0.000000e+00> : vector<8x512xf32>
    %69 = tpu.matmul %66, %7, %cst_27 {dimension_numbers = #tpu.dot_dimension_numbers<[1], [0], [0], [1], [0, 0, 1, 1], [], []>} : vector<8x128xf32>, vector<128x512xf32>, vector<8x512xf32> -> vector<8x512xf32>
    %70 = arith.addf %68, %69 : vector<8x512xf32>
    %71 = vector.extract_strided_slice %70 {offsets = [0, 0], sizes = [8, 128], strides = [1, 1]} : vector<8x512xf32> to vector<8x128xf32>
    %72 = arith.negf %71 : vector<8x128xf32>
    %73 = math.exp %72 : vector<8x128xf32>
    %cst_28 = arith.constant 1.000000e+00 : f32
    %74 = vector.broadcast %cst_28 : f32 to vector<8x128xf32>
    %75 = arith.addf %74, %73 : vector<8x128xf32>
    %76 = arith.divf %74, %75 : vector<8x128xf32>
    %77 = vector.extract_strided_slice %70 {offsets = [0, 128], sizes = [8, 128], strides = [1, 1]} : vector<8x512xf32> to vector<8x128xf32>
    %78 = arith.negf %77 : vector<8x128xf32>
    %79 = math.exp %78 : vector<8x128xf32>
    %cst_29 = arith.constant 1.000000e+00 : f32
    %80 = vector.broadcast %cst_29 : f32 to vector<8x128xf32>
    %81 = arith.addf %80, %79 : vector<8x128xf32>
    %82 = arith.divf %80, %81 : vector<8x128xf32>
    %83 = vector.extract_strided_slice %70 {offsets = [0, 256], sizes = [8, 128], strides = [1, 1]} : vector<8x512xf32> to vector<8x128xf32>
    %84 = math.tanh %83 : vector<8x128xf32>
    %85 = vector.extract_strided_slice %70 {offsets = [0, 384], sizes = [8, 128], strides = [1, 1]} : vector<8x512xf32> to vector<8x128xf32>
    %86 = arith.negf %85 : vector<8x128xf32>
    %87 = math.exp %86 : vector<8x128xf32>
    %cst_30 = arith.constant 1.000000e+00 : f32
    %88 = vector.broadcast %cst_30 : f32 to vector<8x128xf32>
    %89 = arith.addf %88, %87 : vector<8x128xf32>
    %90 = arith.divf %88, %89 : vector<8x128xf32>
    %91 = arith.mulf %82, %64 : vector<8x128xf32>
    %92 = arith.mulf %76, %84 : vector<8x128xf32>
    %93 = arith.addf %91, %92 : vector<8x128xf32>
    %94 = math.tanh %93 : vector<8x128xf32>
    %95 = arith.mulf %90, %94 : vector<8x128xf32>
    %c16_31 = arith.constant 16 : index
    %c0_32 = arith.constant 0 : index
    %96 = vector.load %arg11[%c16_31, %c0_32] : memref<64x128xf32, #tpu.memory_space<vmem>>, vector<8x128xf32>
    tpu.vector_store %arg11[%c16_31, %c0_32], %95 {strides = array<i32>} : memref<64x128xf32, #tpu.memory_space<vmem>>, vector<8x128xf32>,
    %c24 = arith.constant 24 : index
    %c0_33 = arith.constant 0 : index
    %97 = vector.load %arg10[%c24, %c0_33] : memref<64x512xf32, #tpu.memory_space<vmem>>, vector<8x512xf32>
    %cst_34 = arith.constant dense<0.000000e+00> : vector<8x512xf32>
    %98 = tpu.matmul %95, %7, %cst_34 {dimension_numbers = #tpu.dot_dimension_numbers<[1], [0], [0], [1], [0, 0, 1, 1], [], []>} : vector<8x128xf32>, vector<128x512xf32>, vector<8x512xf32> -> vector<8x512xf32>
    %99 = arith.addf %97, %98 : vector<8x512xf32>
    %100 = vector.extract_strided_slice %99 {offsets = [0, 0], sizes = [8, 128], strides = [1, 1]} : vector<8x512xf32> to vector<8x128xf32>
    %101 = arith.negf %100 : vector<8x128xf32>
    %102 = math.exp %101 : vector<8x128xf32>
    %cst_35 = arith.constant 1.000000e+00 : f32
    %103 = vector.broadcast %cst_35 : f32 to vector<8x128xf32>
    %104 = arith.addf %103, %102 : vector<8x128xf32>
    %105 = arith.divf %103, %104 : vector<8x128xf32>
    %106 = vector.extract_strided_slice %99 {offsets = [0, 128], sizes = [8, 128], strides = [1, 1]} : vector<8x512xf32> to vector<8x128xf32>
    %107 = arith.negf %106 : vector<8x128xf32>
    %108 = math.exp %107 : vector<8x128xf32>
    %cst_36 = arith.constant 1.000000e+00 : f32
    %109 = vector.broadcast %cst_36 : f32 to vector<8x128xf32>
    %110 = arith.addf %109, %108 : vector<8x128xf32>
    %111 = arith.divf %109, %110 : vector<8x128xf32>
    %112 = vector.extract_strided_slice %99 {offsets = [0, 256], sizes = [8, 128], strides = [1, 1]} : vector<8x512xf32> to vector<8x128xf32>
    %113 = math.tanh %112 : vector<8x128xf32>
    %114 = vector.extract_strided_slice %99 {offsets = [0, 384], sizes = [8, 128], strides = [1, 1]} : vector<8x512xf32> to vector<8x128xf32>
    %115 = arith.negf %114 : vector<8x128xf32>
    %116 = math.exp %115 : vector<8x128xf32>
    %cst_37 = arith.constant 1.000000e+00 : f32
    %117 = vector.broadcast %cst_37 : f32 to vector<8x128xf32>
    %118 = arith.addf %117, %116 : vector<8x128xf32>
    %119 = arith.divf %117, %118 : vector<8x128xf32>
    %120 = arith.mulf %111, %93 : vector<8x128xf32>
    %121 = arith.mulf %105, %113 : vector<8x128xf32>
    %122 = arith.addf %120, %121 : vector<8x128xf32>
    %123 = math.tanh %122 : vector<8x128xf32>
    %124 = arith.mulf %119, %123 : vector<8x128xf32>
    %c24_38 = arith.constant 24 : index
    %c0_39 = arith.constant 0 : index
    %125 = vector.load %arg11[%c24_38, %c0_39] : memref<64x128xf32, #tpu.memory_space<vmem>>, vector<8x128xf32>
    tpu.vector_store %arg11[%c24_38, %c0_39], %124 {strides = array<i32>} : memref<64x128xf32, #tpu.memory_space<vmem>>, vector<8x128xf32>,
    %c32 = arith.constant 32 : index
    %c0_40 = arith.constant 0 : index
    %126 = vector.load %arg10[%c32, %c0_40] : memref<64x512xf32, #tpu.memory_space<vmem>>, vector<8x512xf32>
    %cst_41 = arith.constant dense<0.000000e+00> : vector<8x512xf32>
    %127 = tpu.matmul %124, %7, %cst_41 {dimension_numbers = #tpu.dot_dimension_numbers<[1], [0], [0], [1], [0, 0, 1, 1], [], []>} : vector<8x128xf32>, vector<128x512xf32>, vector<8x512xf32> -> vector<8x512xf32>
    %128 = arith.addf %126, %127 : vector<8x512xf32>
    %129 = vector.extract_strided_slice %128 {offsets = [0, 0], sizes = [8, 128], strides = [1, 1]} : vector<8x512xf32> to vector<8x128xf32>
    %130 = arith.negf %129 : vector<8x128xf32>
    %131 = math.exp %130 : vector<8x128xf32>
    %cst_42 = arith.constant 1.000000e+00 : f32
    %132 = vector.broadcast %cst_42 : f32 to vector<8x128xf32>
    %133 = arith.addf %132, %131 : vector<8x128xf32>
    %134 = arith.divf %132, %133 : vector<8x128xf32>
    %135 = vector.extract_strided_slice %128 {offsets = [0, 128], sizes = [8, 128], strides = [1, 1]} : vector<8x512xf32> to vector<8x128xf32>
    %136 = arith.negf %135 : vector<8x128xf32>
    %137 = math.exp %136 : vector<8x128xf32>
    %cst_43 = arith.constant 1.000000e+00 : f32
    %138 = vector.broadcast %cst_43 : f32 to vector<8x128xf32>
    %139 = arith.addf %138, %137 : vector<8x128xf32>
    %140 = arith.divf %138, %139 : vector<8x128xf32>
    %141 = vector.extract_strided_slice %128 {offsets = [0, 256], sizes = [8, 128], strides = [1, 1]} : vector<8x512xf32> to vector<8x128xf32>
    %142 = math.tanh %141 : vector<8x128xf32>
    %143 = vector.extract_strided_slice %128 {offsets = [0, 384], sizes = [8, 128], strides = [1, 1]} : vector<8x512xf32> to vector<8x128xf32>
    %144 = arith.negf %143 : vector<8x128xf32>
    %145 = math.exp %144 : vector<8x128xf32>
    %cst_44 = arith.constant 1.000000e+00 : f32
    %146 = vector.broadcast %cst_44 : f32 to vector<8x128xf32>
    %147 = arith.addf %146, %145 : vector<8x128xf32>
    %148 = arith.divf %146, %147 : vector<8x128xf32>
    %149 = arith.mulf %140, %122 : vector<8x128xf32>
    %150 = arith.mulf %134, %142 : vector<8x128xf32>
    %151 = arith.addf %149, %150 : vector<8x128xf32>
    %152 = math.tanh %151 : vector<8x128xf32>
    %153 = arith.mulf %148, %152 : vector<8x128xf32>
    %c32_45 = arith.constant 32 : index
    %c0_46 = arith.constant 0 : index
    %154 = vector.load %arg11[%c32_45, %c0_46] : memref<64x128xf32, #tpu.memory_space<vmem>>, vector<8x128xf32>
    tpu.vector_store %arg11[%c32_45, %c0_46], %153 {strides = array<i32>} : memref<64x128xf32, #tpu.memory_space<vmem>>, vector<8x128xf32>,
    %c40 = arith.constant 40 : index
    %c0_47 = arith.constant 0 : index
    %155 = vector.load %arg10[%c40, %c0_47] : memref<64x512xf32, #tpu.memory_space<vmem>>, vector<8x512xf32>
    %cst_48 = arith.constant dense<0.000000e+00> : vector<8x512xf32>
    %156 = tpu.matmul %153, %7, %cst_48 {dimension_numbers = #tpu.dot_dimension_numbers<[1], [0], [0], [1], [0, 0, 1, 1], [], []>} : vector<8x128xf32>, vector<128x512xf32>, vector<8x512xf32> -> vector<8x512xf32>
    %157 = arith.addf %155, %156 : vector<8x512xf32>
    %158 = vector.extract_strided_slice %157 {offsets = [0, 0], sizes = [8, 128], strides = [1, 1]} : vector<8x512xf32> to vector<8x128xf32>
    %159 = arith.negf %158 : vector<8x128xf32>
    %160 = math.exp %159 : vector<8x128xf32>
    %cst_49 = arith.constant 1.000000e+00 : f32
    %161 = vector.broadcast %cst_49 : f32 to vector<8x128xf32>
    %162 = arith.addf %161, %160 : vector<8x128xf32>
    %163 = arith.divf %161, %162 : vector<8x128xf32>
    %164 = vector.extract_strided_slice %157 {offsets = [0, 128], sizes = [8, 128], strides = [1, 1]} : vector<8x512xf32> to vector<8x128xf32>
    %165 = arith.negf %164 : vector<8x128xf32>
    %166 = math.exp %165 : vector<8x128xf32>
    %cst_50 = arith.constant 1.000000e+00 : f32
    %167 = vector.broadcast %cst_50 : f32 to vector<8x128xf32>
    %168 = arith.addf %167, %166 : vector<8x128xf32>
    %169 = arith.divf %167, %168 : vector<8x128xf32>
    %170 = vector.extract_strided_slice %157 {offsets = [0, 256], sizes = [8, 128], strides = [1, 1]} : vector<8x512xf32> to vector<8x128xf32>
    %171 = math.tanh %170 : vector<8x128xf32>
    %172 = vector.extract_strided_slice %157 {offsets = [0, 384], sizes = [8, 128], strides = [1, 1]} : vector<8x512xf32> to vector<8x128xf32>
    %173 = arith.negf %172 : vector<8x128xf32>
    %174 = math.exp %173 : vector<8x128xf32>
    %cst_51 = arith.constant 1.000000e+00 : f32
    %175 = vector.broadcast %cst_51 : f32 to vector<8x128xf32>
    %176 = arith.addf %175, %174 : vector<8x128xf32>
    %177 = arith.divf %175, %176 : vector<8x128xf32>
    %178 = arith.mulf %169, %151 : vector<8x128xf32>
    %179 = arith.mulf %163, %171 : vector<8x128xf32>
    %180 = arith.addf %178, %179 : vector<8x128xf32>
    %181 = math.tanh %180 : vector<8x128xf32>
    %182 = arith.mulf %177, %181 : vector<8x128xf32>
    %c40_52 = arith.constant 40 : index
    %c0_53 = arith.constant 0 : index
    %183 = vector.load %arg11[%c40_52, %c0_53] : memref<64x128xf32, #tpu.memory_space<vmem>>, vector<8x128xf32>
    tpu.vector_store %arg11[%c40_52, %c0_53], %182 {strides = array<i32>} : memref<64x128xf32, #tpu.memory_space<vmem>>, vector<8x128xf32>,
    %c48 = arith.constant 48 : index
    %c0_54 = arith.constant 0 : index
    %184 = vector.load %arg10[%c48, %c0_54] : memref<64x512xf32, #tpu.memory_space<vmem>>, vector<8x512xf32>
    %cst_55 = arith.constant dense<0.000000e+00> : vector<8x512xf32>
    %185 = tpu.matmul %182, %7, %cst_55 {dimension_numbers = #tpu.dot_dimension_numbers<[1], [0], [0], [1], [0, 0, 1, 1], [], []>} : vector<8x128xf32>, vector<128x512xf32>, vector<8x512xf32> -> vector<8x512xf32>
    %186 = arith.addf %184, %185 : vector<8x512xf32>
    %187 = vector.extract_strided_slice %186 {offsets = [0, 0], sizes = [8, 128], strides = [1, 1]} : vector<8x512xf32> to vector<8x128xf32>
    %188 = arith.negf %187 : vector<8x128xf32>
    %189 = math.exp %188 : vector<8x128xf32>
    %cst_56 = arith.constant 1.000000e+00 : f32
    %190 = vector.broadcast %cst_56 : f32 to vector<8x128xf32>
    %191 = arith.addf %190, %189 : vector<8x128xf32>
    %192 = arith.divf %190, %191 : vector<8x128xf32>
    %193 = vector.extract_strided_slice %186 {offsets = [0, 128], sizes = [8, 128], strides = [1, 1]} : vector<8x512xf32> to vector<8x128xf32>
    %194 = arith.negf %193 : vector<8x128xf32>
    %195 = math.exp %194 : vector<8x128xf32>
    %cst_57 = arith.constant 1.000000e+00 : f32
    %196 = vector.broadcast %cst_57 : f32 to vector<8x128xf32>
    %197 = arith.addf %196, %195 : vector<8x128xf32>
    %198 = arith.divf %196, %197 : vector<8x128xf32>
    %199 = vector.extract_strided_slice %186 {offsets = [0, 256], sizes = [8, 128], strides = [1, 1]} : vector<8x512xf32> to vector<8x128xf32>
    %200 = math.tanh %199 : vector<8x128xf32>
    %201 = vector.extract_strided_slice %186 {offsets = [0, 384], sizes = [8, 128], strides = [1, 1]} : vector<8x512xf32> to vector<8x128xf32>
    %202 = arith.negf %201 : vector<8x128xf32>
    %203 = math.exp %202 : vector<8x128xf32>
    %cst_58 = arith.constant 1.000000e+00 : f32
    %204 = vector.broadcast %cst_58 : f32 to vector<8x128xf32>
    %205 = arith.addf %204, %203 : vector<8x128xf32>
    %206 = arith.divf %204, %205 : vector<8x128xf32>
    %207 = arith.mulf %198, %180 : vector<8x128xf32>
    %208 = arith.mulf %192, %200 : vector<8x128xf32>
    %209 = arith.addf %207, %208 : vector<8x128xf32>
    %210 = math.tanh %209 : vector<8x128xf32>
    %211 = arith.mulf %206, %210 : vector<8x128xf32>
    %c48_59 = arith.constant 48 : index
    %c0_60 = arith.constant 0 : index
    %212 = vector.load %arg11[%c48_59, %c0_60] : memref<64x128xf32, #tpu.memory_space<vmem>>, vector<8x128xf32>
    tpu.vector_store %arg11[%c48_59, %c0_60], %211 {strides = array<i32>} : memref<64x128xf32, #tpu.memory_space<vmem>>, vector<8x128xf32>,
    %c56 = arith.constant 56 : index
    %c0_61 = arith.constant 0 : index
    %213 = vector.load %arg10[%c56, %c0_61] : memref<64x512xf32, #tpu.memory_space<vmem>>, vector<8x512xf32>
    %cst_62 = arith.constant dense<0.000000e+00> : vector<8x512xf32>
    %214 = tpu.matmul %211, %7, %cst_62 {dimension_numbers = #tpu.dot_dimension_numbers<[1], [0], [0], [1], [0, 0, 1, 1], [], []>} : vector<8x128xf32>, vector<128x512xf32>, vector<8x512xf32> -> vector<8x512xf32>
    %215 = arith.addf %213, %214 : vector<8x512xf32>
    %216 = vector.extract_strided_slice %215 {offsets = [0, 0], sizes = [8, 128], strides = [1, 1]} : vector<8x512xf32> to vector<8x128xf32>
    %217 = arith.negf %216 : vector<8x128xf32>
    %218 = math.exp %217 : vector<8x128xf32>
    %cst_63 = arith.constant 1.000000e+00 : f32
    %219 = vector.broadcast %cst_63 : f32 to vector<8x128xf32>
    %220 = arith.addf %219, %218 : vector<8x128xf32>
    %221 = arith.divf %219, %220 : vector<8x128xf32>
    %222 = vector.extract_strided_slice %215 {offsets = [0, 128], sizes = [8, 128], strides = [1, 1]} : vector<8x512xf32> to vector<8x128xf32>
    %223 = arith.negf %222 : vector<8x128xf32>
    %224 = math.exp %223 : vector<8x128xf32>
    %cst_64 = arith.constant 1.000000e+00 : f32
    %225 = vector.broadcast %cst_64 : f32 to vector<8x128xf32>
    %226 = arith.addf %225, %224 : vector<8x128xf32>
    %227 = arith.divf %225, %226 : vector<8x128xf32>
    %228 = vector.extract_strided_slice %215 {offsets = [0, 256], sizes = [8, 128], strides = [1, 1]} : vector<8x512xf32> to vector<8x128xf32>
    %229 = math.tanh %228 : vector<8x128xf32>
    %230 = vector.extract_strided_slice %215 {offsets = [0, 384], sizes = [8, 128], strides = [1, 1]} : vector<8x512xf32> to vector<8x128xf32>
    %231 = arith.negf %230 : vector<8x128xf32>
    %232 = math.exp %231 : vector<8x128xf32>
    %cst_65 = arith.constant 1.000000e+00 : f32
    %233 = vector.broadcast %cst_65 : f32 to vector<8x128xf32>
    %234 = arith.addf %233, %232 : vector<8x128xf32>
    %235 = arith.divf %233, %234 : vector<8x128xf32>
    %236 = arith.mulf %227, %209 : vector<8x128xf32>
    %237 = arith.mulf %221, %229 : vector<8x128xf32>
    %238 = arith.addf %236, %237 : vector<8x128xf32>
    %239 = math.tanh %238 : vector<8x128xf32>
    %240 = arith.mulf %235, %239 : vector<8x128xf32>
    %c56_66 = arith.constant 56 : index
    %c0_67 = arith.constant 0 : index
    %241 = vector.load %arg11[%c56_66, %c0_67] : memref<64x128xf32, #tpu.memory_space<vmem>>, vector<8x128xf32>
    tpu.vector_store %arg11[%c56_66, %c0_67], %240 {strides = array<i32>} : memref<64x128xf32, #tpu.memory_space<vmem>>, vector<8x128xf32>,
    %c0_68 = arith.constant 0 : index
    %c0_69 = arith.constant 0 : index
    %242 = vector.load %arg11[%c0_68, %c0_69] : memref<64x128xf32, #tpu.memory_space<vmem>>, vector<64x128xf32>
    %c0_70 = arith.constant 0 : index
    %c0_71 = arith.constant 0 : index
    %243 = vector.load %arg4[%c0_70, %c0_71] : memref<128x512xf32, #tpu.memory_space<vmem>>, vector<128x512xf32>
    %cst_72 = arith.constant dense<0.000000e+00> : vector<64x512xf32>
    %244 = tpu.matmul %242, %243, %cst_72 {dimension_numbers = #tpu.dot_dimension_numbers<[1], [0], [0], [1], [0, 0, 1, 1], [], []>} : vector<64x128xf32>, vector<128x512xf32>, vector<64x512xf32> -> vector<64x512xf32>
    %c0_73 = arith.constant 0 : index
    %c0_74 = arith.constant 0 : index
    %245 = vector.load %arg6[%c0_73, %c0_74] : memref<1x512xf32, #tpu.memory_space<vmem>>, vector<1x512xf32>
    %246 = vector.broadcast %245 : vector<1x512xf32> to vector<64x512xf32>
    %247 = arith.addf %244, %246 : vector<64x512xf32>
    %c0_75 = arith.constant 0 : index
    %c0_76 = arith.constant 0 : index
    %248 = vector.load %arg10[%c0_75, %c0_76] : memref<64x512xf32, #tpu.memory_space<vmem>>, vector<64x512xf32>
    tpu.vector_store %arg10[%c0_75, %c0_76], %247 {strides = array<i32>} : memref<64x512xf32, #tpu.memory_space<vmem>>, vector<64x512xf32>,
    %c0_77 = arith.constant 0 : index
    %c0_78 = arith.constant 0 : index
    %249 = vector.load %arg5[%c0_77, %c0_78] : memref<128x512xf32, #tpu.memory_space<vmem>>, vector<128x512xf32>
    %cst_79 = arith.constant 0.000000e+00 : f32
    %250 = vector.broadcast %cst_79 : f32 to vector<8x128xf32>
    %cst_80 = arith.constant 0.000000e+00 : f32
    %251 = vector.broadcast %cst_80 : f32 to vector<8x128xf32>
    %c0_81 = arith.constant 0 : index
    %c0_82 = arith.constant 0 : index
    %252 = vector.load %arg10[%c0_81, %c0_82] : memref<64x512xf32, #tpu.memory_space<vmem>>, vector<8x512xf32>
    %cst_83 = arith.constant dense<0.000000e+00> : vector<8x512xf32>
    %253 = tpu.matmul %250, %249, %cst_83 {dimension_numbers = #tpu.dot_dimension_numbers<[1], [0], [0], [1], [0, 0, 1, 1], [], []>} : vector<8x128xf32>, vector<128x512xf32>, vector<8x512xf32> -> vector<8x512xf32>
    %254 = arith.addf %252, %253 : vector<8x512xf32>
    %255 = vector.extract_strided_slice %254 {offsets = [0, 0], sizes = [8, 128], strides = [1, 1]} : vector<8x512xf32> to vector<8x128xf32>
    %256 = arith.negf %255 : vector<8x128xf32>
    %257 = math.exp %256 : vector<8x128xf32>
    %cst_84 = arith.constant 1.000000e+00 : f32
    %258 = vector.broadcast %cst_84 : f32 to vector<8x128xf32>
    %259 = arith.addf %258, %257 : vector<8x128xf32>
    %260 = arith.divf %258, %259 : vector<8x128xf32>
    %261 = vector.extract_strided_slice %254 {offsets = [0, 128], sizes = [8, 128], strides = [1, 1]} : vector<8x512xf32> to vector<8x128xf32>
    %262 = arith.negf %261 : vector<8x128xf32>
    %263 = math.exp %262 : vector<8x128xf32>
    %cst_85 = arith.constant 1.000000e+00 : f32
    %264 = vector.broadcast %cst_85 : f32 to vector<8x128xf32>
    %265 = arith.addf %264, %263 : vector<8x128xf32>
    %266 = arith.divf %264, %265 : vector<8x128xf32>
    %267 = vector.extract_strided_slice %254 {offsets = [0, 256], sizes = [8, 128], strides = [1, 1]} : vector<8x512xf32> to vector<8x128xf32>
    %268 = math.tanh %267 : vector<8x128xf32>
    %269 = vector.extract_strided_slice %254 {offsets = [0, 384], sizes = [8, 128], strides = [1, 1]} : vector<8x512xf32> to vector<8x128xf32>
    %270 = arith.negf %269 : vector<8x128xf32>
    %271 = math.exp %270 : vector<8x128xf32>
    %cst_86 = arith.constant 1.000000e+00 : f32
    %272 = vector.broadcast %cst_86 : f32 to vector<8x128xf32>
    %273 = arith.addf %272, %271 : vector<8x128xf32>
    %274 = arith.divf %272, %273 : vector<8x128xf32>
    %275 = arith.mulf %266, %251 : vector<8x128xf32>
    %276 = arith.mulf %260, %268 : vector<8x128xf32>
    %277 = arith.addf %275, %276 : vector<8x128xf32>
    %278 = math.tanh %277 : vector<8x128xf32>
    %279 = arith.mulf %274, %278 : vector<8x128xf32>
    %c8_87 = arith.constant 8 : index
    %c0_88 = arith.constant 0 : index
    %280 = vector.load %arg10[%c8_87, %c0_88] : memref<64x512xf32, #tpu.memory_space<vmem>>, vector<8x512xf32>
    %cst_89 = arith.constant dense<0.000000e+00> : vector<8x512xf32>
    %281 = tpu.matmul %279, %249, %cst_89 {dimension_numbers = #tpu.dot_dimension_numbers<[1], [0], [0], [1], [0, 0, 1, 1], [], []>} : vector<8x128xf32>, vector<128x512xf32>, vector<8x512xf32> -> vector<8x512xf32>
    %282 = arith.addf %280, %281 : vector<8x512xf32>
    %283 = vector.extract_strided_slice %282 {offsets = [0, 0], sizes = [8, 128], strides = [1, 1]} : vector<8x512xf32> to vector<8x128xf32>
    %284 = arith.negf %283 : vector<8x128xf32>
    %285 = math.exp %284 : vector<8x128xf32>
    %cst_90 = arith.constant 1.000000e+00 : f32
    %286 = vector.broadcast %cst_90 : f32 to vector<8x128xf32>
    %287 = arith.addf %286, %285 : vector<8x128xf32>
    %288 = arith.divf %286, %287 : vector<8x128xf32>
    %289 = vector.extract_strided_slice %282 {offsets = [0, 128], sizes = [8, 128], strides = [1, 1]} : vector<8x512xf32> to vector<8x128xf32>
    %290 = arith.negf %289 : vector<8x128xf32>
    %291 = math.exp %290 : vector<8x128xf32>
    %cst_91 = arith.constant 1.000000e+00 : f32
    %292 = vector.broadcast %cst_91 : f32 to vector<8x128xf32>
    %293 = arith.addf %292, %291 : vector<8x128xf32>
    %294 = arith.divf %292, %293 : vector<8x128xf32>
    %295 = vector.extract_strided_slice %282 {offsets = [0, 256], sizes = [8, 128], strides = [1, 1]} : vector<8x512xf32> to vector<8x128xf32>
    %296 = math.tanh %295 : vector<8x128xf32>
    %297 = vector.extract_strided_slice %282 {offsets = [0, 384], sizes = [8, 128], strides = [1, 1]} : vector<8x512xf32> to vector<8x128xf32>
    %298 = arith.negf %297 : vector<8x128xf32>
    %299 = math.exp %298 : vector<8x128xf32>
    %cst_92 = arith.constant 1.000000e+00 : f32
    %300 = vector.broadcast %cst_92 : f32 to vector<8x128xf32>
    %301 = arith.addf %300, %299 : vector<8x128xf32>
    %302 = arith.divf %300, %301 : vector<8x128xf32>
    %303 = arith.mulf %294, %277 : vector<8x128xf32>
    %304 = arith.mulf %288, %296 : vector<8x128xf32>
    %305 = arith.addf %303, %304 : vector<8x128xf32>
    %306 = math.tanh %305 : vector<8x128xf32>
    %307 = arith.mulf %302, %306 : vector<8x128xf32>
    %c16_93 = arith.constant 16 : index
    %c0_94 = arith.constant 0 : index
    %308 = vector.load %arg10[%c16_93, %c0_94] : memref<64x512xf32, #tpu.memory_space<vmem>>, vector<8x512xf32>
    %cst_95 = arith.constant dense<0.000000e+00> : vector<8x512xf32>
    %309 = tpu.matmul %307, %249, %cst_95 {dimension_numbers = #tpu.dot_dimension_numbers<[1], [0], [0], [1], [0, 0, 1, 1], [], []>} : vector<8x128xf32>, vector<128x512xf32>, vector<8x512xf32> -> vector<8x512xf32>
    %310 = arith.addf %308, %309 : vector<8x512xf32>
    %311 = vector.extract_strided_slice %310 {offsets = [0, 0], sizes = [8, 128], strides = [1, 1]} : vector<8x512xf32> to vector<8x128xf32>
    %312 = arith.negf %311 : vector<8x128xf32>
    %313 = math.exp %312 : vector<8x128xf32>
    %cst_96 = arith.constant 1.000000e+00 : f32
    %314 = vector.broadcast %cst_96 : f32 to vector<8x128xf32>
    %315 = arith.addf %314, %313 : vector<8x128xf32>
    %316 = arith.divf %314, %315 : vector<8x128xf32>
    %317 = vector.extract_strided_slice %310 {offsets = [0, 128], sizes = [8, 128], strides = [1, 1]} : vector<8x512xf32> to vector<8x128xf32>
    %318 = arith.negf %317 : vector<8x128xf32>
    %319 = math.exp %318 : vector<8x128xf32>
    %cst_97 = arith.constant 1.000000e+00 : f32
    %320 = vector.broadcast %cst_97 : f32 to vector<8x128xf32>
    %321 = arith.addf %320, %319 : vector<8x128xf32>
    %322 = arith.divf %320, %321 : vector<8x128xf32>
    %323 = vector.extract_strided_slice %310 {offsets = [0, 256], sizes = [8, 128], strides = [1, 1]} : vector<8x512xf32> to vector<8x128xf32>
    %324 = math.tanh %323 : vector<8x128xf32>
    %325 = vector.extract_strided_slice %310 {offsets = [0, 384], sizes = [8, 128], strides = [1, 1]} : vector<8x512xf32> to vector<8x128xf32>
    %326 = arith.negf %325 : vector<8x128xf32>
    %327 = math.exp %326 : vector<8x128xf32>
    %cst_98 = arith.constant 1.000000e+00 : f32
    %328 = vector.broadcast %cst_98 : f32 to vector<8x128xf32>
    %329 = arith.addf %328, %327 : vector<8x128xf32>
    %330 = arith.divf %328, %329 : vector<8x128xf32>
    %331 = arith.mulf %322, %305 : vector<8x128xf32>
    %332 = arith.mulf %316, %324 : vector<8x128xf32>
    %333 = arith.addf %331, %332 : vector<8x128xf32>
    %334 = math.tanh %333 : vector<8x128xf32>
    %335 = arith.mulf %330, %334 : vector<8x128xf32>
    %c24_99 = arith.constant 24 : index
    %c0_100 = arith.constant 0 : index
    %336 = vector.load %arg10[%c24_99, %c0_100] : memref<64x512xf32, #tpu.memory_space<vmem>>, vector<8x512xf32>
    %cst_101 = arith.constant dense<0.000000e+00> : vector<8x512xf32>
    %337 = tpu.matmul %335, %249, %cst_101 {dimension_numbers = #tpu.dot_dimension_numbers<[1], [0], [0], [1], [0, 0, 1, 1], [], []>} : vector<8x128xf32>, vector<128x512xf32>, vector<8x512xf32> -> vector<8x512xf32>
    %338 = arith.addf %336, %337 : vector<8x512xf32>
    %339 = vector.extract_strided_slice %338 {offsets = [0, 0], sizes = [8, 128], strides = [1, 1]} : vector<8x512xf32> to vector<8x128xf32>
    %340 = arith.negf %339 : vector<8x128xf32>
    %341 = math.exp %340 : vector<8x128xf32>
    %cst_102 = arith.constant 1.000000e+00 : f32
    %342 = vector.broadcast %cst_102 : f32 to vector<8x128xf32>
    %343 = arith.addf %342, %341 : vector<8x128xf32>
    %344 = arith.divf %342, %343 : vector<8x128xf32>
    %345 = vector.extract_strided_slice %338 {offsets = [0, 128], sizes = [8, 128], strides = [1, 1]} : vector<8x512xf32> to vector<8x128xf32>
    %346 = arith.negf %345 : vector<8x128xf32>
    %347 = math.exp %346 : vector<8x128xf32>
    %cst_103 = arith.constant 1.000000e+00 : f32
    %348 = vector.broadcast %cst_103 : f32 to vector<8x128xf32>
    %349 = arith.addf %348, %347 : vector<8x128xf32>
    %350 = arith.divf %348, %349 : vector<8x128xf32>
    %351 = vector.extract_strided_slice %338 {offsets = [0, 256], sizes = [8, 128], strides = [1, 1]} : vector<8x512xf32> to vector<8x128xf32>
    %352 = math.tanh %351 : vector<8x128xf32>
    %353 = vector.extract_strided_slice %338 {offsets = [0, 384], sizes = [8, 128], strides = [1, 1]} : vector<8x512xf32> to vector<8x128xf32>
    %354 = arith.negf %353 : vector<8x128xf32>
    %355 = math.exp %354 : vector<8x128xf32>
    %cst_104 = arith.constant 1.000000e+00 : f32
    %356 = vector.broadcast %cst_104 : f32 to vector<8x128xf32>
    %357 = arith.addf %356, %355 : vector<8x128xf32>
    %358 = arith.divf %356, %357 : vector<8x128xf32>
    %359 = arith.mulf %350, %333 : vector<8x128xf32>
    %360 = arith.mulf %344, %352 : vector<8x128xf32>
    %361 = arith.addf %359, %360 : vector<8x128xf32>
    %362 = math.tanh %361 : vector<8x128xf32>
    %363 = arith.mulf %358, %362 : vector<8x128xf32>
    %c32_105 = arith.constant 32 : index
    %c0_106 = arith.constant 0 : index
    %364 = vector.load %arg10[%c32_105, %c0_106] : memref<64x512xf32, #tpu.memory_space<vmem>>, vector<8x512xf32>
    %cst_107 = arith.constant dense<0.000000e+00> : vector<8x512xf32>
    %365 = tpu.matmul %363, %249, %cst_107 {dimension_numbers = #tpu.dot_dimension_numbers<[1], [0], [0], [1], [0, 0, 1, 1], [], []>} : vector<8x128xf32>, vector<128x512xf32>, vector<8x512xf32> -> vector<8x512xf32>
    %366 = arith.addf %364, %365 : vector<8x512xf32>
    %367 = vector.extract_strided_slice %366 {offsets = [0, 0], sizes = [8, 128], strides = [1, 1]} : vector<8x512xf32> to vector<8x128xf32>
    %368 = arith.negf %367 : vector<8x128xf32>
    %369 = math.exp %368 : vector<8x128xf32>
    %cst_108 = arith.constant 1.000000e+00 : f32
    %370 = vector.broadcast %cst_108 : f32 to vector<8x128xf32>
    %371 = arith.addf %370, %369 : vector<8x128xf32>
    %372 = arith.divf %370, %371 : vector<8x128xf32>
    %373 = vector.extract_strided_slice %366 {offsets = [0, 128], sizes = [8, 128], strides = [1, 1]} : vector<8x512xf32> to vector<8x128xf32>
    %374 = arith.negf %373 : vector<8x128xf32>
    %375 = math.exp %374 : vector<8x128xf32>
    %cst_109 = arith.constant 1.000000e+00 : f32
    %376 = vector.broadcast %cst_109 : f32 to vector<8x128xf32>
    %377 = arith.addf %376, %375 : vector<8x128xf32>
    %378 = arith.divf %376, %377 : vector<8x128xf32>
    %379 = vector.extract_strided_slice %366 {offsets = [0, 256], sizes = [8, 128], strides = [1, 1]} : vector<8x512xf32> to vector<8x128xf32>
    %380 = math.tanh %379 : vector<8x128xf32>
    %381 = vector.extract_strided_slice %366 {offsets = [0, 384], sizes = [8, 128], strides = [1, 1]} : vector<8x512xf32> to vector<8x128xf32>
    %382 = arith.negf %381 : vector<8x128xf32>
    %383 = math.exp %382 : vector<8x128xf32>
    %cst_110 = arith.constant 1.000000e+00 : f32
    %384 = vector.broadcast %cst_110 : f32 to vector<8x128xf32>
    %385 = arith.addf %384, %383 : vector<8x128xf32>
    %386 = arith.divf %384, %385 : vector<8x128xf32>
    %387 = arith.mulf %378, %361 : vector<8x128xf32>
    %388 = arith.mulf %372, %380 : vector<8x128xf32>
    %389 = arith.addf %387, %388 : vector<8x128xf32>
    %390 = math.tanh %389 : vector<8x128xf32>
    %391 = arith.mulf %386, %390 : vector<8x128xf32>
    %c40_111 = arith.constant 40 : index
    %c0_112 = arith.constant 0 : index
    %392 = vector.load %arg10[%c40_111, %c0_112] : memref<64x512xf32, #tpu.memory_space<vmem>>, vector<8x512xf32>
    %cst_113 = arith.constant dense<0.000000e+00> : vector<8x512xf32>
    %393 = tpu.matmul %391, %249, %cst_113 {dimension_numbers = #tpu.dot_dimension_numbers<[1], [0], [0], [1], [0, 0, 1, 1], [], []>} : vector<8x128xf32>, vector<128x512xf32>, vector<8x512xf32> -> vector<8x512xf32>
    %394 = arith.addf %392, %393 : vector<8x512xf32>
    %395 = vector.extract_strided_slice %394 {offsets = [0, 0], sizes = [8, 128], strides = [1, 1]} : vector<8x512xf32> to vector<8x128xf32>
    %396 = arith.negf %395 : vector<8x128xf32>
    %397 = math.exp %396 : vector<8x128xf32>
    %cst_114 = arith.constant 1.000000e+00 : f32
    %398 = vector.broadcast %cst_114 : f32 to vector<8x128xf32>
    %399 = arith.addf %398, %397 : vector<8x128xf32>
    %400 = arith.divf %398, %399 : vector<8x128xf32>
    %401 = vector.extract_strided_slice %394 {offsets = [0, 128], sizes = [8, 128], strides = [1, 1]} : vector<8x512xf32> to vector<8x128xf32>
    %402 = arith.negf %401 : vector<8x128xf32>
    %403 = math.exp %402 : vector<8x128xf32>
    %cst_115 = arith.constant 1.000000e+00 : f32
    %404 = vector.broadcast %cst_115 : f32 to vector<8x128xf32>
    %405 = arith.addf %404, %403 : vector<8x128xf32>
    %406 = arith.divf %404, %405 : vector<8x128xf32>
    %407 = vector.extract_strided_slice %394 {offsets = [0, 256], sizes = [8, 128], strides = [1, 1]} : vector<8x512xf32> to vector<8x128xf32>
    %408 = math.tanh %407 : vector<8x128xf32>
    %409 = vector.extract_strided_slice %394 {offsets = [0, 384], sizes = [8, 128], strides = [1, 1]} : vector<8x512xf32> to vector<8x128xf32>
    %410 = arith.negf %409 : vector<8x128xf32>
    %411 = math.exp %410 : vector<8x128xf32>
    %cst_116 = arith.constant 1.000000e+00 : f32
    %412 = vector.broadcast %cst_116 : f32 to vector<8x128xf32>
    %413 = arith.addf %412, %411 : vector<8x128xf32>
    %414 = arith.divf %412, %413 : vector<8x128xf32>
    %415 = arith.mulf %406, %389 : vector<8x128xf32>
    %416 = arith.mulf %400, %408 : vector<8x128xf32>
    %417 = arith.addf %415, %416 : vector<8x128xf32>
    %418 = math.tanh %417 : vector<8x128xf32>
    %419 = arith.mulf %414, %418 : vector<8x128xf32>
    %c48_117 = arith.constant 48 : index
    %c0_118 = arith.constant 0 : index
    %420 = vector.load %arg10[%c48_117, %c0_118] : memref<64x512xf32, #tpu.memory_space<vmem>>, vector<8x512xf32>
    %cst_119 = arith.constant dense<0.000000e+00> : vector<8x512xf32>
    %421 = tpu.matmul %419, %249, %cst_119 {dimension_numbers = #tpu.dot_dimension_numbers<[1], [0], [0], [1], [0, 0, 1, 1], [], []>} : vector<8x128xf32>, vector<128x512xf32>, vector<8x512xf32> -> vector<8x512xf32>
    %422 = arith.addf %420, %421 : vector<8x512xf32>
    %423 = vector.extract_strided_slice %422 {offsets = [0, 0], sizes = [8, 128], strides = [1, 1]} : vector<8x512xf32> to vector<8x128xf32>
    %424 = arith.negf %423 : vector<8x128xf32>
    %425 = math.exp %424 : vector<8x128xf32>
    %cst_120 = arith.constant 1.000000e+00 : f32
    %426 = vector.broadcast %cst_120 : f32 to vector<8x128xf32>
    %427 = arith.addf %426, %425 : vector<8x128xf32>
    %428 = arith.divf %426, %427 : vector<8x128xf32>
    %429 = vector.extract_strided_slice %422 {offsets = [0, 128], sizes = [8, 128], strides = [1, 1]} : vector<8x512xf32> to vector<8x128xf32>
    %430 = arith.negf %429 : vector<8x128xf32>
    %431 = math.exp %430 : vector<8x128xf32>
    %cst_121 = arith.constant 1.000000e+00 : f32
    %432 = vector.broadcast %cst_121 : f32 to vector<8x128xf32>
    %433 = arith.addf %432, %431 : vector<8x128xf32>
    %434 = arith.divf %432, %433 : vector<8x128xf32>
    %435 = vector.extract_strided_slice %422 {offsets = [0, 256], sizes = [8, 128], strides = [1, 1]} : vector<8x512xf32> to vector<8x128xf32>
    %436 = math.tanh %435 : vector<8x128xf32>
    %437 = vector.extract_strided_slice %422 {offsets = [0, 384], sizes = [8, 128], strides = [1, 1]} : vector<8x512xf32> to vector<8x128xf32>
    %438 = arith.negf %437 : vector<8x128xf32>
    %439 = math.exp %438 : vector<8x128xf32>
    %cst_122 = arith.constant 1.000000e+00 : f32
    %440 = vector.broadcast %cst_122 : f32 to vector<8x128xf32>
    %441 = arith.addf %440, %439 : vector<8x128xf32>
    %442 = arith.divf %440, %441 : vector<8x128xf32>
    %443 = arith.mulf %434, %417 : vector<8x128xf32>
    %444 = arith.mulf %428, %436 : vector<8x128xf32>
    %445 = arith.addf %443, %444 : vector<8x128xf32>
    %446 = math.tanh %445 : vector<8x128xf32>
    %447 = arith.mulf %442, %446 : vector<8x128xf32>
    %c56_123 = arith.constant 56 : index
    %c0_124 = arith.constant 0 : index
    %448 = vector.load %arg10[%c56_123, %c0_124] : memref<64x512xf32, #tpu.memory_space<vmem>>, vector<8x512xf32>
    %cst_125 = arith.constant dense<0.000000e+00> : vector<8x512xf32>
    %449 = tpu.matmul %447, %249, %cst_125 {dimension_numbers = #tpu.dot_dimension_numbers<[1], [0], [0], [1], [0, 0, 1, 1], [], []>} : vector<8x128xf32>, vector<128x512xf32>, vector<8x512xf32> -> vector<8x512xf32>
    %450 = arith.addf %448, %449 : vector<8x512xf32>
    %451 = vector.extract_strided_slice %450 {offsets = [0, 0], sizes = [8, 128], strides = [1, 1]} : vector<8x512xf32> to vector<8x128xf32>
    %452 = arith.negf %451 : vector<8x128xf32>
    %453 = math.exp %452 : vector<8x128xf32>
    %cst_126 = arith.constant 1.000000e+00 : f32
    %454 = vector.broadcast %cst_126 : f32 to vector<8x128xf32>
    %455 = arith.addf %454, %453 : vector<8x128xf32>
    %456 = arith.divf %454, %455 : vector<8x128xf32>
    %457 = vector.extract_strided_slice %450 {offsets = [0, 128], sizes = [8, 128], strides = [1, 1]} : vector<8x512xf32> to vector<8x128xf32>
    %458 = arith.negf %457 : vector<8x128xf32>
    %459 = math.exp %458 : vector<8x128xf32>
    %cst_127 = arith.constant 1.000000e+00 : f32
    %460 = vector.broadcast %cst_127 : f32 to vector<8x128xf32>
    %461 = arith.addf %460, %459 : vector<8x128xf32>
    %462 = arith.divf %460, %461 : vector<8x128xf32>
    %463 = vector.extract_strided_slice %450 {offsets = [0, 256], sizes = [8, 128], strides = [1, 1]} : vector<8x512xf32> to vector<8x128xf32>
    %464 = math.tanh %463 : vector<8x128xf32>
    %465 = vector.extract_strided_slice %450 {offsets = [0, 384], sizes = [8, 128], strides = [1, 1]} : vector<8x512xf32> to vector<8x128xf32>
    %466 = arith.negf %465 : vector<8x128xf32>
    %467 = math.exp %466 : vector<8x128xf32>
    %cst_128 = arith.constant 1.000000e+00 : f32
    %468 = vector.broadcast %cst_128 : f32 to vector<8x128xf32>
    %469 = arith.addf %468, %467 : vector<8x128xf32>
    %470 = arith.divf %468, %469 : vector<8x128xf32>
    %471 = arith.mulf %462, %445 : vector<8x128xf32>
    %472 = arith.mulf %456, %464 : vector<8x128xf32>
    %473 = arith.addf %471, %472 : vector<8x128xf32>
    %474 = math.tanh %473 : vector<8x128xf32>
    %475 = arith.mulf %470, %474 : vector<8x128xf32>
    %c0_129 = arith.constant 0 : index
    %c0_130 = arith.constant 0 : index
    %476 = vector.load %arg7[%c0_129, %c0_130] : memref<128x128xf32, #tpu.memory_space<vmem>>, vector<128x128xf32>
    %cst_131 = arith.constant dense<0.000000e+00> : vector<8x128xf32>
    %477 = tpu.matmul %475, %476, %cst_131 {dimension_numbers = #tpu.dot_dimension_numbers<[1], [0], [0], [1], [0, 0, 1, 1], [], []>} : vector<8x128xf32>, vector<128x128xf32>, vector<8x128xf32> -> vector<8x128xf32>
    %c0_132 = arith.constant 0 : index
    %c0_133 = arith.constant 0 : index
    %478 = vector.load %arg8[%c0_132, %c0_133] : memref<1x128xf32, #tpu.memory_space<vmem>>, vector<1x128xf32>
    %479 = vector.broadcast %478 : vector<1x128xf32> to vector<8x128xf32>
    %480 = arith.addf %477, %479 : vector<8x128xf32>
    %c0_134 = arith.constant 0 : index
    %c0_135 = arith.constant 0 : index
    %481 = vector.load %arg9[%c0_134, %c0_135] : memref<8x128xf32, #tpu.memory_space<vmem>>, vector<8x128xf32>
    tpu.vector_store %arg9[%c0_134, %c0_135], %480 {strides = array<i32>} : memref<8x128xf32, #tpu.memory_space<vmem>>, vector<8x128xf32>,
    return
  }
}

</mosaic_0001>

<bundles_post_ra>
// kernel: lstm_classifier_forward.1
= control target key start
LH: loop header
LB: loop body
LE: loop exit
PB: predicated region body
PF: predicated region fallthrough
CT: control target
= control target key end

     0   :  { %s7545_s0 = inlined_call_operand.vmem [shape: f32[64,128], index: 0, kind: input, shape index: {}]   ;;  %s7546_s1 = inlined_call_operand.vmem [shape: f32[128,512], index: 1, kind: input, shape index: {}]   ;;  %s7547_s2 = inlined_call_operand.vmem [shape: f32[128,512], index: 2, kind: input, shape index: {}]   ;;  %s7548_s3 = inlined_call_operand.vmem [shape: f32[1,512], index: 3, kind: input, shape index: {}]   ;;  %s7549_s4 = inlined_call_operand.vmem [shape: f32[128,512], index: 4, kind: input, shape index: {}]   ;;  %s7550_s5 = inlined_call_operand.vmem [shape: f32[128,512], index: 5, kind: input, shape index: {}]   ;;  %s7551_s6 = inlined_call_operand.vmem [shape: f32[1,512], index: 6, kind: input, shape index: {}]   ;;  %s7552_s7 = inlined_call_operand.vmem [shape: f32[128,128], index: 7, kind: input, shape index: {}]   ;;  %s7553_s8 = inlined_call_operand.vmem [shape: f32[1,128], index: 8, kind: input, shape index: {}]   ;;  %s7554_s9 = inlined_call_operand.hbm [shape: f32[8,128], index: 9, kind: output, shape index: {}]  }
   0x1   :  { %v102_v0 = vld [vmem:[%s7546_s1 + $0x1e8] sm:$0xff]  ;;  %v104_v1 = vld [vmem:[%s7546_s1 + $0x1f8] sm:$0xff]  ;;  %v101_v2 = vld [vmem:[%s7546_s1 + $0x1e0] sm:$0xff] }
   0x2   :  { %127 = vmatprep.subr.mxu0 %v102_v0  ;;  %240 = vmatprep.subr.mxu1 %v104_v1  ;;  %v103_v3 = vld [vmem:[%s7546_s1 + $0x1f0] sm:$0xff]  ;;  %v98_v4 = vld [vmem:[%s7546_s1 + $0x1c8] sm:$0xff]  ;;  %v100_v5 = vld [vmem:[%s7546_s1 + $0x1d8] sm:$0xff]  ;;  %v7555_v1 = vmov 0.0  }
   0x3   :  { %128 = vmatpush1.msra.mxu0 %v101_v2  ;;  %241 = vmatpush1.msra.mxu1 %v103_v3  ;;  %v97_v6 = vld [vmem:[%s7546_s1 + $0x1c0] sm:$0xff]  ;;  %v99_v7 = vld [vmem:[%s7546_s1 + $0x1d0] sm:$0xff]  ;;  %v94_v8 = vld [vmem:[%s7546_s1 + $0x1a8] sm:$0xff] }
   0x4   :  { %129 = vmatprep.subr.mxu0 %v98_v4  ;;  %242 = vmatprep.subr.mxu1 %v100_v5  ;;  %v96_v9 = vld [vmem:[%s7546_s1 + $0x1b8] sm:$0xff]  ;;  %v93_v10 = vld [vmem:[%s7546_s1 + $0x1a0] sm:$0xff]  ;;  %v95_v11 = vld [vmem:[%s7546_s1 + $0x1b0] sm:$0xff] }
   0x5   :  { %130 = vmatpush1.msra.mxu0 %v97_v6  ;;  %243 = vmatpush1.msra.mxu1 %v99_v7  ;;  %v90_v12 = vld [vmem:[%s7546_s1 + $0x188] sm:$0xff]  ;;  %v92_v13 = vld [vmem:[%s7546_s1 + $0x198] sm:$0xff]  ;;  %v89_v14 = vld [vmem:[%s7546_s1 + $0x180] sm:$0xff] }
   0x6   :  { %131 = vmatprep.subr.mxu0 %v94_v8  ;;  %244 = vmatprep.subr.mxu1 %v96_v9  ;;  %v91_v15 = vld [vmem:[%s7546_s1 + $0x190] sm:$0xff]  ;;  %v86_v16 = vld [vmem:[%s7546_s1 + $0x168] sm:$0xff]  ;;  %v88_v17 = vld [vmem:[%s7546_s1 + $0x178] sm:$0xff] }
   0x7   :  { %132 = vmatpush1.msra.mxu0 %v93_v10  ;;  %245 = vmatpush1.msra.mxu1 %v95_v11  ;;  %v85_v18 = vld [vmem:[%s7546_s1 + $0x160] sm:$0xff]  ;;  %v87_v19 = vld [vmem:[%s7546_s1 + $0x170] sm:$0xff]  ;;  %v82_v20 = vld [vmem:[%s7546_s1 + $0x148] sm:$0xff] }
   0x8   :  { %133 = vmatprep.subr.mxu0 %v90_v12  ;;  %246 = vmatprep.subr.mxu1 %v92_v13  ;;  %v84_v21 = vld [vmem:[%s7546_s1 + $0x158] sm:$0xff]  ;;  %v81_v22 = vld [vmem:[%s7546_s1 + $0x140] sm:$0xff]  ;;  %v83_v23 = vld [vmem:[%s7546_s1 + $0x150] sm:$0xff] }
   0x9   :  { %134 = vmatpush1.msra.mxu0 %v89_v14  ;;  %247 = vmatpush1.msra.mxu1 %v91_v15  ;;  %v78_v24 = vld [vmem:[%s7546_s1 + $0x128] sm:$0xff]  ;;  %v80_v25 = vld [vmem:[%s7546_s1 + $0x138] sm:$0xff]  ;;  %v77_v26 = vld [vmem:[%s7546_s1 + $0x120] sm:$0xff] }
   0xa   :  { %135 = vmatprep.subr.mxu0 %v86_v16  ;;  %248 = vmatprep.subr.mxu1 %v88_v17  ;;  %v79_v27 = vld [vmem:[%s7546_s1 + $0x130] sm:$0xff]  ;;  %v74_v28 = vld [vmem:[%s7546_s1 + $0x108] sm:$0xff]  ;;  %v76_v29 = vld [vmem:[%s7546_s1 + $0x118] sm:$0xff] }
   0xb   :  { %136 = vmatpush1.msra.mxu0 %v85_v18  ;;  %249 = vmatpush1.msra.mxu1 %v87_v19  ;;  %v73_v30 = vld [vmem:[%s7546_s1 + $0x100] sm:$0xff]  ;;  %v75_v31 = vld [vmem:[%s7546_s1 + $0x110] sm:$0xff]  ;;  %v70_v32 = vld [vmem:[%s7546_s1 + $0xe8] sm:$0xff] }
   0xc   :  { %137 = vmatprep.subr.mxu0 %v82_v20  ;;  %250 = vmatprep.subr.mxu1 %v84_v21  ;;  %v72_v33 = vld [vmem:[%s7546_s1 + $0xf8] sm:$0xff]  ;;  %v69_v34 = vld [vmem:[%s7546_s1 + $0xe0] sm:$0xff]  ;;  %v71_v35 = vld [vmem:[%s7546_s1 + $0xf0] sm:$0xff] }
   0xd   :  { %138 = vmatpush1.msra.mxu0 %v81_v22  ;;  %251 = vmatpush1.msra.mxu1 %v83_v23  ;;  %v66_v36 = vld [vmem:[%s7546_s1 + $0xc8] sm:$0xff]  ;;  %v68_v37 = vld [vmem:[%s7546_s1 + $0xd8] sm:$0xff]  ;;  %v65_v38 = vld [vmem:[%s7546_s1 + $0xc0] sm:$0xff] }
   0xe   :  { %139 = vmatprep.subr.mxu0 %v78_v24  ;;  %252 = vmatprep.subr.mxu1 %v80_v25  ;;  %v67_v39 = vld [vmem:[%s7546_s1 + $0xd0] sm:$0xff]  ;;  %v62_v40 = vld [vmem:[%s7546_s1 + $0xa8] sm:$0xff]  ;;  %v64_v41 = vld [vmem:[%s7546_s1 + $0xb8] sm:$0xff] }
   0xf   :  { %140 = vmatpush1.msra.mxu0 %v77_v26  ;;  %253 = vmatpush1.msra.mxu1 %v79_v27  ;;  %v61_v42 = vld [vmem:[%s7546_s1 + $0xa0] sm:$0xff]  ;;  %v63_v43 = vld [vmem:[%s7546_s1 + $0xb0] sm:$0xff]  ;;  %v58_v44 = vld [vmem:[%s7546_s1 + $0x88] sm:$0xff] }
  0x10   :  { %141 = vmatprep.subr.mxu0 %v74_v28  ;;  %254 = vmatprep.subr.mxu1 %v76_v29  ;;  %v60_v45 = vld [vmem:[%s7546_s1 + $0x98] sm:$0xff]  ;;  %v57_v46 = vld [vmem:[%s7546_s1 + $0x80] sm:$0xff]  ;;  %v59_v47 = vld [vmem:[%s7546_s1 + $0x90] sm:$0xff] }
  0x11   :  { %142 = vmatpush1.msra.mxu0 %v73_v30  ;;  %255 = vmatpush1.msra.mxu1 %v75_v31  ;;  %v54_v48 = vld [vmem:[%s7546_s1 + $0x68] sm:$0xff]  ;;  %v56_v49 = vld [vmem:[%s7546_s1 + $0x78] sm:$0xff]  ;;  %v53_v50 = vld [vmem:[%s7546_s1 + $0x60] sm:$0xff] }
  0x12   :  { %143 = vmatprep.subr.mxu0 %v70_v32  ;;  %256 = vmatprep.subr.mxu1 %v72_v33  ;;  %v55_v51 = vld [vmem:[%s7546_s1 + $0x70] sm:$0xff]  ;;  %v50_v52 = vld [vmem:[%s7546_s1 + $0x48] sm:$0xff]  ;;  %v52_v53 = vld [vmem:[%s7546_s1 + $0x58] sm:$0xff] }
  0x13   :  { %144 = vmatpush1.msra.mxu0 %v69_v34  ;;  %257 = vmatpush1.msra.mxu1 %v71_v35  ;;  %v49_v54 = vld [vmem:[%s7546_s1 + $0x40] sm:$0xff]  ;;  %v51_v55 = vld [vmem:[%s7546_s1 + $0x50] sm:$0xff]  ;;  %v46_v56 = vld [vmem:[%s7546_s1 + $0x28] sm:$0xff] }
  0x14   :  { %145 = vmatprep.subr.mxu0 %v66_v36  ;;  %258 = vmatprep.subr.mxu1 %v68_v37  ;;  %v48_v57 = vld [vmem:[%s7546_s1 + $0x38] sm:$0xff]  ;;  %v45_v58 = vld [vmem:[%s7546_s1 + $0x20] sm:$0xff]  ;;  %v47_v59 = vld [vmem:[%s7546_s1 + $0x30] sm:$0xff] }
  0x15   :  { %146 = vmatpush1.msra.mxu0 %v65_v38  ;;  %259 = vmatpush1.msra.mxu1 %v67_v39  ;;  %v42_v60 = vld [vmem:[%s7546_s1 + $0x8] sm:$0xff]  ;;  %v44_v61 = vld [vmem:[%s7546_s1 + $0x18] sm:$0xff]  ;;  %v41_v62 = vld [vmem:[%s7546_s1] sm:$0xff] }
  0x16   :  { %147 = vmatprep.subr.mxu0 %v62_v40  ;;  %260 = vmatprep.subr.mxu1 %v64_v41  ;;  %v43_v63 = vld [vmem:[%s7546_s1 + $0x10] sm:$0xff]  ;;  %v33_v0 = vld [vmem:[%s7545_s0] sm:$0xff]  ;;  %v4527_v2 = vld [vmem:[%s7547_s2 + $0x1e8] sm:$0xff] }
  0x17   :  { %148 = vmatpush1.msra.mxu0 %v61_v42  ;;  %261 = vmatpush1.msra.mxu1 %v63_v43  ;;  %7761 = vst [vmem:[#allocation7_spill] sm:$0xff] %v4527_v2  ;;  %v4532_v3 = vld [vmem:[%s7547_s2 + $0x1f8] sm:$0xff]  ;;  %v4538_v4 = vld [vmem:[%s7547_s2 + $0x1e0] sm:$0xff]  ;;  %v4543_v5 = vld [vmem:[%s7547_s2 + $0x1f0] sm:$0xff] }
  0x18   :  { %149 = vmatprep.subr.mxu0 %v58_v44  ;;  %262 = vmatprep.subr.mxu1 %v60_v45  ;;  %7762 = vst [vmem:[#allocation8_spill] sm:$0xff] %v4532_v3  ;;  %v4548_v6 = vld [vmem:[%s7547_s2 + $0x1c8] sm:$0xff]  ;;  %v4553_v7 = vld [vmem:[%s7547_s2 + $0x1d8] sm:$0xff]  ;;  %v4562_v8 = vld [vmem:[%s7547_s2 + $0x1c0] sm:$0xff] }
  0x19   :  { %150 = vmatpush1.msra.mxu0 %v57_v46  ;;  %263 = vmatpush1.msra.mxu1 %v59_v47  ;;  %v4567_v9 = vld [vmem:[%s7547_s2 + $0x1d0] sm:$0xff]  ;;  %v34_v10 = vld [vmem:[%s7545_s0 + $0x8] sm:$0xff]  ;;  %v4584_v12 = vld [vmem:[%s7547_s2 + $0x1b8] sm:$0xff] }
  0x1a   :  { %151 = vmatprep.subr.mxu0 %v54_v48  ;;  %264 = vmatprep.subr.mxu1 %v56_v49  ;;  %v4579_v11 = vld [vmem:[%s7547_s2 + $0x1a8] sm:$0xff]  ;;  %v4591_v13 = vld [vmem:[%s7547_s2 + $0x1a0] sm:$0xff]  ;;  %v4596_v14 = vld [vmem:[%s7547_s2 + $0x1b0] sm:$0xff] }
  0x1b   :  { %152 = vmatpush1.msra.mxu0 %v53_v50  ;;  %265 = vmatpush1.msra.mxu1 %v55_v51  ;;  %v4601_v15 = vld [vmem:[%s7547_s2 + $0x188] sm:$0xff]  ;;  %v4606_v16 = vld [vmem:[%s7547_s2 + $0x198] sm:$0xff]  ;;  %v4615_v17 = vld [vmem:[%s7547_s2 + $0x180] sm:$0xff] }
  0x1c   :  { %153 = vmatprep.subr.mxu0 %v50_v52  ;;  %266 = vmatprep.subr.mxu1 %v52_v53  ;;  %v4620_v18 = vld [vmem:[%s7547_s2 + $0x190] sm:$0xff]  ;;  %v4632_v20 = vld [vmem:[%s7547_s2 + $0x168] sm:$0xff]  ;;  %v4637_v21 = vld [vmem:[%s7547_s2 + $0x178] sm:$0xff] }
  0x1d   :  { %154 = vmatpush1.msra.mxu0 %v49_v54  ;;  %267 = vmatpush1.msra.mxu1 %v51_v55  ;;  %v35_v19 = vld [vmem:[%s7545_s0 + $0x10] sm:$0xff]  ;;  %v4644_v22 = vld [vmem:[%s7547_s2 + $0x160] sm:$0xff] }
  0x1e   :  { %155 = vmatprep.subr.mxu0 %v46_v56  ;;  %268 = vmatprep.subr.mxu1 %v48_v57  ;;  %v4649_v23 = vld [vmem:[%s7547_s2 + $0x170] sm:$0xff] }
  0x1f   :  { %156 = vmatpush1.msra.mxu0 %v45_v58  ;;  %269 = vmatpush1.msra.mxu1 %v47_v59 }
  0x20   :  { %157 = vmatprep.subr.mxu0 %v42_v60  ;;  %270 = vmatprep.subr.mxu1 %v44_v61 }
  0x21   :  { %158 = vmatpush1.msra.mxu0 %v41_v62  ;;  %191 = vmatprep.mubr.f32.mxu0 %v7555_v1 }
  0x22   :  { %271 = vmatpush1.msra.mxu1 %v43_v63  ;;  %304 = vmatprep.mubr.f32.mxu1 %v7555_v1 }
  0x23   :  { %192 = vmatmul.mubr.f32.vlgmr.msra.gmra.mxu0 %v33_v0  ;;  %305 = vmatmul.mubr.f32.vlgmr.msra.gmra.mxu1 %v33_v0 }
  0x24   :  { %453 = vmatprep.subr.mxu0 %v4527_v2  ;;  %524 = vmatprep.subr.mxu1 %v4532_v3 }
  0x25   :  { %454 = vmatpush1.msra.mxu0 %v4538_v4  ;;  %525 = vmatpush1.msra.mxu1 %v4543_v5 }
  0x26   :  { %455 = vmatprep.subr.mxu0 %v4548_v6  ;;  %526 = vmatprep.subr.mxu1 %v4553_v7 }
  0x27   :  { %197 = vmatprep.mubr.f32.mxu0 %v7555_v1  ;;  %310 = vmatprep.mubr.f32.mxu1 %v7555_v1 }
  0x28   :  { %456 = vmatpush1.msra.mxu0 %v4562_v8  ;;  %527 = vmatpush1.msra.mxu1 %v4567_v9 }
  0x29   :  { %198 = vmatmul.mubr.f32.gmra.mxu0 %v34_v10  ;;  %311 = vmatmul.mubr.f32.gmra.mxu1 %v34_v10 }
  0x2a   :  { %457 = vmatprep.subr.mxu0 %v4579_v11  ;;  %528 = vmatprep.subr.mxu1 %v4584_v12 }
  0x2b   :  { %458 = vmatpush1.msra.mxu0 %v4591_v13  ;;  %529 = vmatpush1.msra.mxu1 %v4596_v14 }
  0x2c   :  { %459 = vmatprep.subr.mxu0 %v4601_v15  ;;  %530 = vmatprep.subr.mxu1 %v4606_v16 }
  0x2d   :  { %203 = vmatprep.mubr.f32.mxu0 %v7555_v1  ;;  %316 = vmatprep.mubr.f32.mxu1 %v7555_v1 }
  0x2e   :  { %460 = vmatpush1.msra.mxu0 %v4615_v17  ;;  %531 = vmatpush1.msra.mxu1 %v4620_v18 }
  0x2f   :  { %14 = vsyncpa [#allocation5], 0  ;;  %204 = vmatmul.mubr.f32.gmra.mxu0 %v35_v19  ;;  %317 = vmatmul.mubr.f32.gmra.mxu1 %v35_v19  ;;  %v4654_v24 = vld [vmem:[%s7547_s2 + $0x148] sm:$0xff]  ;;  %v4659_v25 = vld [vmem:[%s7547_s2 + $0x158] sm:$0xff]  ;;  %vm4276_vm0 = vmmov 0  }
  0x30   :  { %461 = vmatprep.subr.mxu0 %v4632_v20  ;;  %532 = vmatprep.subr.mxu1 %v4637_v21  ;;  %v4668_v26 = vld [vmem:[%s7547_s2 + $0x140] sm:$0xff]  ;;  %v4673_v27 = vld [vmem:[%s7547_s2 + $0x150] sm:$0xff]  ;;  %v36_v28 = vld [vmem:[%s7545_s0 + $0x18] sm:$0xff] }
  0x31   :  { %462 = vmatpush1.msra.mxu0 %v4644_v22  ;;  %533 = vmatpush1.msra.mxu1 %v4649_v23  ;;  %v4685_v29 = vld [vmem:[%s7547_s2 + $0x128] sm:$0xff]  ;;  %v4690_v30 = vld [vmem:[%s7547_s2 + $0x138] sm:$0xff]  ;;  %v4697_v31 = vld [vmem:[%s7547_s2 + $0x120] sm:$0xff] }
  0x32   :  { %463 = vmatprep.subr.mxu0 %v4654_v24  ;;  %534 = vmatprep.subr.mxu1 %v4659_v25  ;;  %v4702_v32 = vld [vmem:[%s7547_s2 + $0x130] sm:$0xff]  ;;  %v4707_v33 = vld [vmem:[%s7547_s2 + $0x108] sm:$0xff]  ;;  %v4712_v34 = vld [vmem:[%s7547_s2 + $0x118] sm:$0xff] }
  0x33   :  { %209 = vmatprep.mubr.f32.mxu0 %v7555_v1  ;;  %322 = vmatprep.mubr.f32.mxu1 %v7555_v1  ;;  %v4721_v35 = vld [vmem:[%s7547_s2 + $0x100] sm:$0xff]  ;;  %v4726_v36 = vld [vmem:[%s7547_s2 + $0x110] sm:$0xff]  ;;  %v4738_v38 = vld [vmem:[%s7547_s2 + $0xe8] sm:$0xff] }
  0x34   :  { %464 = vmatpush1.msra.mxu0 %v4668_v26  ;;  %535 = vmatpush1.msra.mxu1 %v4673_v27  ;;  %v37_v37 = vld [vmem:[%s7545_s0 + $0x20] sm:$0xff]  ;;  %v4743_v39 = vld [vmem:[%s7547_s2 + $0xf8] sm:$0xff]  ;;  %v4755_v41 = vld [vmem:[%s7547_s2 + $0xf0] sm:$0xff] }
  0x35   :  { %210 = vmatmul.mubr.f32.gmra.mxu0 %v36_v28  ;;  %323 = vmatmul.mubr.f32.gmra.mxu1 %v36_v28  ;;  %v4750_v40 = vld [vmem:[%s7547_s2 + $0xe0] sm:$0xff]  ;;  %v4760_v42 = vld [vmem:[%s7547_s2 + $0xc8] sm:$0xff]  ;;  %v4765_v43 = vld [vmem:[%s7547_s2 + $0xd8] sm:$0xff] }
  0x36   :  { %465 = vmatprep.subr.mxu0 %v4685_v29  ;;  %536 = vmatprep.subr.mxu1 %v4690_v30  ;;  %v4774_v44 = vld [vmem:[%s7547_s2 + $0xc0] sm:$0xff]  ;;  %v4779_v45 = vld [vmem:[%s7547_s2 + $0xd0] sm:$0xff]  ;;  %v38_v46 = vld [vmem:[%s7545_s0 + $0x28] sm:$0xff] }
  0x37   :  { %466 = vmatpush1.msra.mxu0 %v4697_v31  ;;  %537 = vmatpush1.msra.mxu1 %v4702_v32  ;;  %v4791_v47 = vld [vmem:[%s7547_s2 + $0xa8] sm:$0xff]  ;;  %v4796_v48 = vld [vmem:[%s7547_s2 + $0xb8] sm:$0xff]  ;;  %v4803_v49 = vld [vmem:[%s7547_s2 + $0xa0] sm:$0xff] }
  0x38   :  { %467 = vmatprep.subr.mxu0 %v4707_v33  ;;  %538 = vmatprep.subr.mxu1 %v4712_v34  ;;  %v4808_v50 = vld [vmem:[%s7547_s2 + $0xb0] sm:$0xff]  ;;  %v4813_v51 = vld [vmem:[%s7547_s2 + $0x88] sm:$0xff]  ;;  %v4818_v52 = vld [vmem:[%s7547_s2 + $0x98] sm:$0xff] }
  0x39   :  { %215 = vmatprep.mubr.f32.mxu0 %v7555_v1  ;;  %328 = vmatprep.mubr.f32.mxu1 %v7555_v1  ;;  %7763 = vst [vmem:[#allocation9_spill] sm:$0xff] %v4808_v50  ;;  %7764 = vst [vmem:[#allocation10_spill] sm:$0xff] %v4813_v51  ;;  %v4827_v53 = vld [vmem:[%s7547_s2 + $0x80] sm:$0xff]  ;;  %v4832_v54 = vld [vmem:[%s7547_s2 + $0x90] sm:$0xff] }
  0x3a   :  { %468 = vmatpush1.msra.mxu0 %v4721_v35  ;;  %539 = vmatpush1.msra.mxu1 %v4726_v36  ;;  %7765 = vst [vmem:[#allocation11_spill] sm:$0xff] %v4818_v52  ;;  %7766 = vst [vmem:[#allocation12_spill] sm:$0xff] %v4827_v53  ;;  %v39_v55 = vld [vmem:[%s7545_s0 + $0x30] sm:$0xff]  ;;  %v4844_v56 = vld [vmem:[%s7547_s2 + $0x68] sm:$0xff] }
  0x3b   :  { %216 = vmatmul.mubr.f32.gmra.mxu0 %v37_v37  ;;  %329 = vmatmul.mubr.f32.gmra.mxu1 %v37_v37  ;;  %7767 = vst [vmem:[#allocation13_spill] sm:$0xff] %v4832_v54  ;;  %7768 = vst [vmem:[#allocation14_spill] sm:$0xff] %v4844_v56  ;;  %v4849_v57 = vld [vmem:[%s7547_s2 + $0x78] sm:$0xff]  ;;  %v4856_v58 = vld [vmem:[%s7547_s2 + $0x60] sm:$0xff] }
  0x3c   :  { %469 = vmatprep.subr.mxu0 %v4738_v38  ;;  %540 = vmatprep.subr.mxu1 %v4743_v39  ;;  %7769 = vst [vmem:[#allocation15_spill] sm:$0xff] %v4849_v57  ;;  %7770 = vst [vmem:[#allocation16_spill] sm:$0xff] %v4856_v58  ;;  %v4861_v59 = vld [vmem:[%s7547_s2 + $0x70] sm:$0xff]  ;;  %v4866_v60 = vld [vmem:[%s7547_s2 + $0x48] sm:$0xff] }
  0x3d   :  { %470 = vmatpush1.msra.mxu0 %v4750_v40  ;;  %541 = vmatpush1.msra.mxu1 %v4755_v41  ;;  %7771 = vst [vmem:[#allocation17_spill] sm:$0xff] %v4861_v59  ;;  %7772 = vst [vmem:[#allocation18_spill] sm:$0xff] %v4866_v60  ;;  %v4871_v61 = vld [vmem:[%s7547_s2 + $0x58] sm:$0xff]  ;;  %v4880_v62 = vld [vmem:[%s7547_s2 + $0x40] sm:$0xff] }
  0x3e   :  { %471 = vmatprep.subr.mxu0 %v4760_v42  ;;  %542 = vmatprep.subr.mxu1 %v4765_v43  ;;  %7773 = vst [vmem:[#allocation19_spill] sm:$0xff] %v4871_v61  ;;  %7774 = vst [vmem:[#allocation20_spill] sm:$0xff] %v4880_v62  ;;  %v4885_v63 = vld [vmem:[%s7547_s2 + $0x50] sm:$0xff]  ;;  %v40_v0 = vld [vmem:[%s7545_s0 + $0x38] sm:$0xff] }
  0x3f   :  { %221 = vmatprep.mubr.f32.mxu0 %v7555_v1  ;;  %334 = vmatprep.mubr.f32.mxu1 %v7555_v1  ;;  %7775 = vst [vmem:[#allocation21_spill] sm:$0xff] %v4885_v63  ;;  %v4897_v10 = vld [vmem:[%s7547_s2 + $0x28] sm:$0xff]  ;;  %v4902_v19 = vld [vmem:[%s7547_s2 + $0x38] sm:$0xff]  ;;  %v4909_v28 = vld [vmem:[%s7547_s2 + $0x20] sm:$0xff] }
  0x40   :  { %472 = vmatpush1.msra.mxu0 %v4774_v44  ;;  %543 = vmatpush1.msra.mxu1 %v4779_v45  ;;  %7776 = vst [vmem:[#allocation22_spill] sm:$0xff] %v4897_v10  ;;  %7777 = vst [vmem:[#allocation23_spill] sm:$0xff] %v4902_v19  ;;  %v4914_v37 = vld [vmem:[%s7547_s2 + $0x30] sm:$0xff] }
  0x41   :  { %222 = vmatmul.mubr.f32.gmra.mxu0 %v38_v46  ;;  %335 = vmatmul.mubr.f32.gmra.mxu1 %v38_v46  ;;  %7778 = vst [vmem:[#allocation24_spill] sm:$0xff] %v4909_v28  ;;  %7779 = vst [vmem:[#allocation25_spill] sm:$0xff] %v4914_v37  ;;  %v4919_v46 = vld [vmem:[%s7547_s2 + $0x8] sm:$0xff] }
  0x42   :  { %473 = vmatprep.subr.mxu0 %v4791_v47  ;;  %544 = vmatprep.subr.mxu1 %v4796_v48  ;;  %7780 = vst [vmem:[#allocation26_spill] sm:$0xff] %v4919_v46 }
  0x43   :  { %474 = vmatpush1.msra.mxu0 %v4803_v49  ;;  %545 = vmatpush1.msra.mxu1 %v4808_v50 }
  0x44   :  { %475 = vmatprep.subr.mxu0 %v4813_v51  ;;  %546 = vmatprep.subr.mxu1 %v4818_v52 }
  0x45   :  { %227 = vmatprep.mubr.f32.mxu0 %v7555_v1  ;;  %340 = vmatprep.mubr.f32.mxu1 %v7555_v1 }
  0x46   :  { %476 = vmatpush1.msra.mxu0 %v4827_v53  ;;  %547 = vmatpush1.msra.mxu1 %v4832_v54 }
  0x47   :  { %228 = vmatmul.mubr.f32.gmra.mxu0 %v39_v55  ;;  %341 = vmatmul.mubr.f32.gmra.mxu1 %v39_v55  ;;  %v4924_v55 = vld [vmem:[%s7547_s2 + $0x18] sm:$0xff] }
  0x48   :  { %477 = vmatprep.subr.mxu0 %v4844_v56  ;;  %548 = vmatprep.subr.mxu1 %v4849_v57  ;;  %7781 = vst [vmem:[#allocation27_spill] sm:$0xff] %v4924_v55 }
  0x49   :  { %478 = vmatpush1.msra.mxu0 %v4856_v58  ;;  %549 = vmatpush1.msra.mxu1 %v4861_v59 }
  0x4a   :  { %479 = vmatprep.subr.mxu0 %v4866_v60  ;;  %550 = vmatprep.subr.mxu1 %v4871_v61 }
  0x4b   :  { %233 = vmatprep.mubr.f32.mxu0 %v7555_v1  ;;  %346 = vmatprep.mubr.f32.mxu1 %v7555_v1  ;;  %v4931_v1 = vld [vmem:[%s7547_s2] sm:$0xff] }
  0x4c   :  { %480 = vmatpush1.msra.mxu0 %v4880_v62  ;;  %551 = vmatpush1.msra.mxu1 %v4885_v63  ;;  %7782 = vst [vmem:[#allocation28_spill] sm:$0xff] %v4931_v1 }
  0x4d   :  { %234 = vmatmul.mubr.f32.gmra.mxu0 %v40_v0  ;;  %347 = vmatmul.mubr.f32.gmra.mxu1 %v40_v0  ;;  %v4938_v0 = vld [vmem:[%s7547_s2 + $0x10] sm:$0xff] }
  0x4e   :  { %481 = vmatprep.subr.mxu0 %v4897_v10  ;;  %552 = vmatprep.subr.mxu1 %v4902_v19  ;;  %7783 = vst [vmem:[#allocation29_spill] sm:$0xff] %v4938_v0  ;;  %v7784_v19 = vmov 0.0  }
  0x4f   :  { %482 = vmatpush1.msra.mxu0 %v4909_v28  ;;  %553 = vmatpush1.msra.mxu1 %v4914_v37 }
  0x50   :  { %483 = vmatprep.subr.mxu0 %v4919_v46  ;;  %554 = vmatprep.subr.mxu1 %v4924_v55 }
  0x51   :  { %484 = vmatpush1.msra.mxu0 %v4931_v1  ;;  %517 = vmatprep.mubr.f32.mxu0 %v7784_v19 }
  0x52   :  { %555 = vmatpush1.msra.mxu1 %v4938_v0  ;;  %588 = vmatprep.mubr.f32.mxu1 %v7784_v19 }
  0x53   :  { %518 = vmatmul.mubr.f32.vlgmr.msra.gmra.mxu0 %v7784_v19  ;;  %589 = vmatmul.mubr.f32.vlgmr.msra.gmra.mxu1 %v7784_v19 }
  0x54   :  { %628 = vmatprep.subr.mxu0 %v4527_v2  ;;  %699 = vmatprep.subr.mxu1 %v4532_v3 }
  0x55   :  { %629 = vmatpush1.msra.mxu0 %v4538_v4  ;;  %700 = vmatpush1.msra.mxu1 %v4543_v5 }
  0x56   :  { %630 = vmatprep.subr.mxu0 %v4548_v6  ;;  %701 = vmatprep.subr.mxu1 %v4553_v7 }
  0x57   :  { %631 = vmatpush1.msra.mxu0 %v4562_v8  ;;  %702 = vmatpush1.msra.mxu1 %v4567_v9 }
  0x58   :  { %632 = vmatprep.subr.mxu0 %v4579_v11  ;;  %703 = vmatprep.subr.mxu1 %v4584_v12 }
  0x59   :  { %633 = vmatpush1.msra.mxu0 %v4591_v13  ;;  %704 = vmatpush1.msra.mxu1 %v4596_v14 }
  0x5a   :  { %634 = vmatprep.subr.mxu0 %v4601_v15  ;;  %705 = vmatprep.subr.mxu1 %v4606_v16 }
  0x5b   :  { %635 = vmatpush1.msra.mxu0 %v4615_v17  ;;  %706 = vmatpush1.msra.mxu1 %v4620_v18 }
  0x5c   :  { %636 = vmatprep.subr.mxu0 %v4632_v20  ;;  %707 = vmatprep.subr.mxu1 %v4637_v21 }
  0x5d   :  { %637 = vmatpush1.msra.mxu0 %v4644_v22  ;;  %708 = vmatpush1.msra.mxu1 %v4649_v23 }
  0x5e   :  { %638 = vmatprep.subr.mxu0 %v4654_v24  ;;  %709 = vmatprep.subr.mxu1 %v4659_v25 }
  0x5f   :  { %639 = vmatpush1.msra.mxu0 %v4668_v26  ;;  %710 = vmatpush1.msra.mxu1 %v4673_v27 }
  0x60   :  { %640 = vmatprep.subr.mxu0 %v4685_v29  ;;  %711 = vmatprep.subr.mxu1 %v4690_v30 }
  0x61   :  { %641 = vmatpush1.msra.mxu0 %v4697_v31  ;;  %712 = vmatpush1.msra.mxu1 %v4702_v32 }
  0x62   :  { %642 = vmatprep.subr.mxu0 %v4707_v33  ;;  %713 = vmatprep.subr.mxu1 %v4712_v34 }
  0x63   :  { %643 = vmatpush1.msra.mxu0 %v4721_v35  ;;  %714 = vmatpush1.msra.mxu1 %v4726_v36 }
  0x64   :  { %644 = vmatprep.subr.mxu0 %v4738_v38  ;;  %715 = vmatprep.subr.mxu1 %v4743_v39 }
  0x65   :  { %645 = vmatpush1.msra.mxu0 %v4750_v40  ;;  %716 = vmatpush1.msra.mxu1 %v4755_v41 }
  0x66   :  { %646 = vmatprep.subr.mxu0 %v4760_v42  ;;  %717 = vmatprep.subr.mxu1 %v4765_v43 }
  0x67   :  { %647 = vmatpush1.msra.mxu0 %v4774_v44  ;;  %718 = vmatpush1.msra.mxu1 %v4779_v45 }
  0x68   :  { %648 = vmatprep.subr.mxu0 %v4791_v47  ;;  %719 = vmatprep.subr.mxu1 %v4796_v48 }
  0x69   :  { %649 = vmatpush1.msra.mxu0 %v4803_v49  ;;  %720 = vmatpush1.msra.mxu1 %v4808_v50 }
  0x6a   :  { %650 = vmatprep.subr.mxu0 %v4813_v51  ;;  %721 = vmatprep.subr.mxu1 %v4818_v52 }
  0x6b   :  { %651 = vmatpush1.msra.mxu0 %v4827_v53  ;;  %722 = vmatpush1.msra.mxu1 %v4832_v54  ;;  %v7785_v53 = vld [vmem:[#allocation23_spill] sm:$0xff] }
  0x6c   :  { %652 = vmatprep.subr.mxu0 %v4844_v56  ;;  %723 = vmatprep.subr.mxu1 %v4849_v57 }
  0x6d   :  { %653 = vmatpush1.msra.mxu0 %v4856_v58  ;;  %724 = vmatpush1.msra.mxu1 %v4861_v59 }
  0x6e   :  { %654 = vmatprep.subr.mxu0 %v4866_v60  ;;  %725 = vmatprep.subr.mxu1 %v4871_v61 }
  0x6f   :  { %655 = vmatpush1.msra.mxu0 %v4880_v62  ;;  %726 = vmatpush1.msra.mxu1 %v4885_v63 }
  0x70   :  { %656 = vmatprep.subr.mxu0 %v4897_v10  ;;  %727 = vmatprep.subr.mxu1 %v7785_v53  ;;  %v107_v53 = vlaneseq }
  0x71   :  { %657 = vmatpush1.msra.mxu0 %v4909_v28  ;;  %728 = vmatpush1.msra.mxu1 %v4914_v37 }
  0x72   :  { %658 = vmatprep.subr.mxu0 %v4919_v46  ;;  %729 = vmatprep.subr.mxu1 %v4924_v55  ;;  %v5016_v28 = vshrl.u32 %v107_v53, 7 }
  0x73   :  { %659 = vmatpush1.msra.mxu0 %v4931_v1  ;;  %692 = vmatprep.mubr.f32.mxu0 %v7784_v19 }
  0x74   :  { %730 = vmatpush1.msra.mxu1 %v4938_v0  ;;  %763 = vmatprep.mubr.f32.mxu1 %v7784_v19  ;;  %7786 = vst [vmem:[#allocation30_spill] sm:$0xff] %v5016_v28  ;;  %v7594_v55 = vsub.s32 0, %v5016_v28  ;;  %v7597_v1 = vsub.s32 2, %v5016_v28  ;;  %v105_v0 = vld [vmem:[%s7548_s3] sm:$0xf]  ;;  %v7605_v53 = vsub.s32 3, %v5016_v28 }
  0x75   :  { %803 = vmatprep.subr.mxu0 %v4527_v2  ;;  %874 = vmatprep.subr.mxu1 %v4532_v3  ;;  %v7604_v3 = vsub.s32 1, %v5016_v28 }
  0x76   :  { %v110_v10 = vrot.slane %v105_v0, %v7594_v55  ;;  %v5037_v63 = vrot.slane %v105_v0, %v7597_v1  ;;  %v5043_v59 = vrot.slane %v105_v0, %v7605_v53 }
  0x77   :  { %v114_v60 = vrot.slane %v105_v0, %v7604_v3 }
  0xe3   :  { %v5018_v37 = vpop.f32.mrf.mxu0  ;;  %v5020_v46 = vpop.f32.mrf.mxu1 }
  0xe5   :  { %v5027_v19 = vpop.f32.mrf.mxu0  ;;  %v5029_v2 = vpop.f32.mrf.mxu1 }
  0xe9   :  { %v199_v62 = vpop.f32.mrf.mxu0  ;;  %v312_v61 = vpop.f32.mrf.mxu1 }
  0xea   :  { %v5045_v58 = vadd.f32 %v199_v62, %v110_v10  ;;  %v5048_v57 = vadd.f32 %v312_v61, %v5037_v63 }
  0xeb   :  { %v201_v56 = vpop.f32.mrf.mxu0  ;;  %v314_v55 = vpop.f32.mrf.mxu1 }
  0xec   :  { %7787 = vst [vmem:[#allocation31_spill] sm:$0xff] %v5048_v57  ;;  %v5050_v54 = vadd.f32 %v201_v56, %v114_v60  ;;  %v5053_v1 = vadd.f32 %v314_v55, %v5043_v59 }
  0xee   :  { %7788 = vst [vmem:[#allocation32_spill] sm:$0xff] %v5050_v54  ;;  %7789 = vst [vmem:[#allocation33_spill] sm:$0xff] %v5053_v1 }
  0xef   :  { %v205_v52 = vpop.f32.mrf.mxu0  ;;  %v318_v51 = vpop.f32.mrf.mxu1 }
  0xf0   :  { %v5055_v50 = vadd.f32 %v205_v52, %v110_v10  ;;  %v5058_v3 = vadd.f32 %v318_v51, %v5037_v63 }
  0xf1   :  { %v207_v0 = vpop.f32.mrf.mxu0  ;;  %v320_v62 = vpop.f32.mrf.mxu1 }
  0xf2   :  { %7790 = vst [vmem:[#allocation34_spill] sm:$0xff] %v5055_v50  ;;  %7791 = vst [vmem:[#allocation35_spill] sm:$0xff] %v5058_v3  ;;  %v5060_v53 = vadd.f32 %v207_v0, %v114_v60  ;;  %v5063_v61 = vadd.f32 %v320_v62, %v5043_v59 }
  0xf4   :  { %7792 = vst [vmem:[#allocation36_spill] sm:$0xff] %v5060_v53  ;;  %7793 = vst [vmem:[#allocation37_spill] sm:$0xff] %v5063_v61 }
  0xf5   :  { %v211_v28 = vpop.f32.mrf.mxu0  ;;  %v324_v56 = vpop.f32.mrf.mxu1 }
  0xf6   :  { %v5065_v57 = vadd.f32 %v211_v28, %v110_v10  ;;  %v5068_v55 = vadd.f32 %v324_v56, %v5037_v63 }
  0xf7   :  { %v213_v1 = vpop.f32.mrf.mxu0  ;;  %v326_v52 = vpop.f32.mrf.mxu1 }
  0xf8   :  { %7794 = vst [vmem:[#allocation38_spill] sm:$0xff] %v5065_v57  ;;  %7795 = vst [vmem:[#allocation39_spill] sm:$0xff] %v5068_v55  ;;  %v5070_v50 = vadd.f32 %v213_v1, %v114_v60  ;;  %v5073_v51 = vadd.f32 %v326_v52, %v5043_v59 }
  0xfa   :  { %7796 = vst [vmem:[#allocation40_spill] sm:$0xff] %v5070_v50  ;;  %7797 = vst [vmem:[#allocation41_spill] sm:$0xff] %v5073_v51 }
  0xfb   :  { %v217_v3 = vpop.f32.mrf.mxu0  ;;  %v330_v0 = vpop.f32.mrf.mxu1 }
  0xfc   :  { %v5075_v53 = vadd.f32 %v217_v3, %v110_v10  ;;  %v5078_v62 = vadd.f32 %v330_v0, %v5037_v63 }
  0xfd   :  { %v219_v61 = vpop.f32.mrf.mxu0  ;;  %v332_v28 = vpop.f32.mrf.mxu1 }
  0xfe   :  { %7798 = vst [vmem:[#allocation42_spill] sm:$0xff] %v5075_v53  ;;  %7799 = vst [vmem:[#allocation43_spill] sm:$0xff] %v5078_v62  ;;  %v5080_v57 = vadd.f32 %v219_v61, %v114_v60  ;;  %v5083_v56 = vadd.f32 %v332_v28, %v5043_v59 }
 0x100   :  { %7800 = vst [vmem:[#allocation44_spill] sm:$0xff] %v5080_v57  ;;  %7801 = vst [vmem:[#allocation45_spill] sm:$0xff] %v5083_v56 }
 0x101   :  { %v223_v55 = vpop.f32.mrf.mxu0  ;;  %v336_v1 = vpop.f32.mrf.mxu1 }
 0x102   :  { %v5085_v50 = vadd.f32 %v223_v55, %v110_v10  ;;  %v5088_v52 = vadd.f32 %v336_v1, %v5037_v63 }
 0x103   :  { %v225_v51 = vpop.f32.mrf.mxu0  ;;  %v338_v3 = vpop.f32.mrf.mxu1 }
 0x104   :  { %7802 = vst [vmem:[#allocation46_spill] sm:$0xff] %v5085_v50  ;;  %7803 = vst [vmem:[#allocation47_spill] sm:$0xff] %v5088_v52  ;;  %v5090_v53 = vadd.f32 %v225_v51, %v114_v60  ;;  %v5093_v0 = vadd.f32 %v338_v3, %v5043_v59 }
 0x106   :  { %7804 = vst [vmem:[#allocation48_spill] sm:$0xff] %v5090_v53  ;;  %7805 = vst [vmem:[#allocation49_spill] sm:$0xff] %v5093_v0 }
 0x107   :  { %v229_v62 = vpop.f32.mrf.mxu0  ;;  %v342_v61 = vpop.f32.mrf.mxu1 }
 0x108   :  { %v5095_v57 = vadd.f32 %v229_v62, %v110_v10  ;;  %v5098_v28 = vadd.f32 %v342_v61, %v5037_v63 }
 0x109   :  { %v231_v56 = vpop.f32.mrf.mxu0  ;;  %v344_v55 = vpop.f32.mrf.mxu1 }
 0x10a   :  { %7806 = vst [vmem:[#allocation50_spill] sm:$0xff] %v5095_v57  ;;  %7807 = vst [vmem:[#allocation51_spill] sm:$0xff] %v5098_v28  ;;  %v5100_v50 = vadd.f32 %v231_v56, %v114_v60  ;;  %v5103_v1 = vadd.f32 %v344_v55, %v5043_v59  ;;  %v194_v56 = vadd.f32 %v5018_v37, %v110_v10 }
 0x10b   :  { %v196_v55 = vadd.f32 %v5027_v19, %v114_v60 }
 0x10c   :  { %7808 = vst [vmem:[#allocation52_spill] sm:$0xff] %v5100_v50  ;;  %7809 = vst [vmem:[#allocation53_spill] sm:$0xff] %v5103_v1 }
 0x10d   :  { %v235_v52 = vpop.f32.mrf.mxu0  ;;  %v348_v51 = vpop.f32.mrf.mxu1 }
 0x10e   :  { %v5105_v53 = vadd.f32 %v235_v52, %v110_v10  ;;  %v5108_v3 = vadd.f32 %v348_v51, %v5037_v63 }
 0x10f   :  { %v237_v0 = vpop.f32.mrf.mxu0  ;;  %v350_v62 = vpop.f32.mrf.mxu1 }
 0x110   :  { %7810 = vst [vmem:[#allocation54_spill] sm:$0xff] %v5105_v53  ;;  %7811 = vst [vmem:[#allocation55_spill] sm:$0xff] %v5108_v3  ;;  %v5110_v57 = vadd.f32 %v237_v0, %v114_v60  ;;  %v5113_v61 = vadd.f32 %v350_v62, %v5043_v59  ;;  %v309_v0 = vadd.f32 %v5029_v2, %v5043_v59 }
 0x111   :  { %v307_v62 = vadd.f32 %v5020_v46, %v5037_v63 }
 0x112   :  { %7812 = vst [vmem:[#allocation56_spill] sm:$0xff] %v5110_v57  ;;  %7813 = vst [vmem:[#allocation57_spill] sm:$0xff] %v5113_v61 }
 0x113   :  { %v519_v28 = vpop.f32.mrf.mxu0  ;;  %v590_v53 = vpop.f32.mrf.mxu1 }
 0x114   :  { %v595_v1 = vadd.f32 %v519_v28, %v194_v56  ;;  %v597_v61 = vadd.f32 %v590_v53, %v307_v62  ;;  %v7815_v53 = vld [vmem:[#allocation9_spill] sm:$0xff]  ;;  %v7820_v62 = vld [vmem:[#allocation14_spill] sm:$0xff] }
 0x115   :  { %v521_v50 = vpop.f32.mrf.mxu0  ;;  %v592_v3 = vpop.f32.mrf.mxu1 }
 0x116   :  { %v3765_v54 = vmul.f32 -1.442695, %v595_v1  ;;  %v596_v52 = vadd.f32 %v521_v50, %v196_v55  ;;  %v598_v57 = vadd.f32 %v592_v3, %v309_v0  ;;  %v7819_v0 = vld [vmem:[#allocation13_spill] sm:$0xff] }
 0x118   :  { %3869 = vpow2.f32 %v3765_v54  ;;  %v3766_v51 = vmul.f32 -1.442695, %v596_v52  ;;  %v3767_v10 = vmul.f32 -1.442695, %v598_v57  ;;  %v7817_v52 = vld [vmem:[#allocation11_spill] sm:$0xff] }
 0x11a   :  { %3871 = vpow2.f32 %v3766_v51  ;;  %v7818_v51 = vld [vmem:[#allocation12_spill] sm:$0xff] }
 0x11b   :  { %3873 = vpow2.f32 %v3767_v10  ;;  %v7821_v10 = vld [vmem:[#allocation15_spill] sm:$0xff] }
 0x125   :  { %v3870_v37 = vpop.eup %3869 }
 0x126   :  { %v602_v60 = vadd.f32 1.0, %v3870_v37  ;;  %v7822_v37 = vld [vmem:[#allocation16_spill] sm:$0xff] }
 0x127   :  { %v3872_v19 = vpop.eup %3871 }
 0x128   :  { %3875 = vrcp.f32 %v602_v60  ;;  %v608_v50 = vadd.f32 1.0, %v3872_v19  ;;  %v3874_v54 = vpop.eup %3873  ;;  %v7823_v60 = vld [vmem:[#allocation17_spill] sm:$0xff]  ;;  %v7824_v19 = vld [vmem:[#allocation18_spill] sm:$0xff] }
 0x129   :  { %3877 = vtanh.f32 %v597_v61  ;;  %v615_v55 = vadd.f32 1.0, %v3874_v54  ;;  %v7816_v61 = vld [vmem:[#allocation10_spill] sm:$0xff]  ;;  %v7826_v54 = vld [vmem:[#allocation20_spill] sm:$0xff] }
 0x12a   :  { %3879 = vrcp.f32 %v608_v50  ;;  %v7825_v50 = vld [vmem:[#allocation19_spill] sm:$0xff] }
 0x12b   :  { %3881 = vrcp.f32 %v615_v55  ;;  %v7830_v55 = vld [vmem:[#allocation24_spill] sm:$0xff] }
 0x135   :  { %v3876_v28 = vpop.eup %3875 }
 0x136   :  { %v3878_v1 = vpop.eup %3877 }
 0x137   :  { %v3880_v56 = vpop.eup %3879  ;;  %v619_v59 = vmul.f32 %v3878_v1, %v3876_v28  ;;  %v7827_v28 = vld [vmem:[#allocation21_spill] sm:$0xff]  ;;  %v7828_v1 = vld [vmem:[#allocation22_spill] sm:$0xff] }
 0x138   :  { %v618_v2 = vmul.f32 0.0, %v3880_v56  ;;  %v3882_v57 = vpop.eup %3881  ;;  %v7829_v56 = vld [vmem:[#allocation23_spill] sm:$0xff] }
 0x13a   :  { %v5121_v3 = vadd.f32 %v619_v59, %v618_v2  ;;  %v7831_v2 = vld [vmem:[#allocation25_spill] sm:$0xff]  ;;  %v7832_v59 = vld [vmem:[#allocation26_spill] sm:$0xff] }
 0x13c   :  { %3883 = vtanh.f32 %v5121_v3 }
 0x149   :  { %v3884_v63 = vpop.eup %3883 }
 0x14a   :  { %v5124_v46 = vmul.f32 %v3884_v63, %v3882_v57  ;;  %v7833_v57 = vld [vmem:[#allocation27_spill] sm:$0xff]  ;;  %v7834_v63 = vld [vmem:[#allocation28_spill] sm:$0xff] }
 0x14c   :  { %7814 = vst [vmem:[#allocation58_spill] sm:$0xff] %v5124_v46  ;;  %693 = vmatmul.mubr.f32.vlgmr.msra.gmra.mxu0 %v5124_v46  ;;  %764 = vmatmul.mubr.f32.vlgmr.msra.gmra.mxu1 %v5124_v46  ;;  %v7835_v46 = vmov 0.0  }
 0x14d   :  { %804 = vmatpush1.msra.mxu0 %v4538_v4  ;;  %875 = vmatpush1.msra.mxu1 %v4543_v5 }
 0x14e   :  { %805 = vmatprep.subr.mxu0 %v4548_v6  ;;  %876 = vmatprep.subr.mxu1 %v4553_v7 }
 0x14f   :  { %806 = vmatpush1.msra.mxu0 %v4562_v8  ;;  %877 = vmatpush1.msra.mxu1 %v4567_v9 }
 0x150   :  { %807 = vmatprep.subr.mxu0 %v4579_v11  ;;  %878 = vmatprep.subr.mxu1 %v4584_v12 }
 0x151   :  { %808 = vmatpush1.msra.mxu0 %v4591_v13  ;;  %879 = vmatpush1.msra.mxu1 %v4596_v14 }
 0x152   :  { %809 = vmatprep.subr.mxu0 %v4601_v15  ;;  %880 = vmatprep.subr.mxu1 %v4606_v16 }
 0x153   :  { %810 = vmatpush1.msra.mxu0 %v4615_v17  ;;  %881 = vmatpush1.msra.mxu1 %v4620_v18 }
 0x154   :  { %811 = vmatprep.subr.mxu0 %v4632_v20  ;;  %882 = vmatprep.subr.mxu1 %v4637_v21 }
 0x155   :  { %812 = vmatpush1.msra.mxu0 %v4644_v22  ;;  %883 = vmatpush1.msra.mxu1 %v4649_v23 }
 0x156   :  { %813 = vmatprep.subr.mxu0 %v4654_v24  ;;  %884 = vmatprep.subr.mxu1 %v4659_v25 }
 0x157   :  { %814 = vmatpush1.msra.mxu0 %v4668_v26  ;;  %885 = vmatpush1.msra.mxu1 %v4673_v27 }
 0x158   :  { %815 = vmatprep.subr.mxu0 %v4685_v29  ;;  %886 = vmatprep.subr.mxu1 %v4690_v30 }
 0x159   :  { %816 = vmatpush1.msra.mxu0 %v4697_v31  ;;  %887 = vmatpush1.msra.mxu1 %v4702_v32 }
 0x15a   :  { %817 = vmatprep.subr.mxu0 %v4707_v33  ;;  %888 = vmatprep.subr.mxu1 %v4712_v34 }
 0x15b   :  { %818 = vmatpush1.msra.mxu0 %v4721_v35  ;;  %889 = vmatpush1.msra.mxu1 %v4726_v36 }
 0x15c   :  { %819 = vmatprep.subr.mxu0 %v4738_v38  ;;  %890 = vmatprep.subr.mxu1 %v4743_v39 }
 0x15d   :  { %820 = vmatpush1.msra.mxu0 %v4750_v40  ;;  %891 = vmatpush1.msra.mxu1 %v4755_v41 }
 0x15e   :  { %821 = vmatprep.subr.mxu0 %v4760_v42  ;;  %892 = vmatprep.subr.mxu1 %v4765_v43 }
 0x15f   :  { %822 = vmatpush1.msra.mxu0 %v4774_v44  ;;  %893 = vmatpush1.msra.mxu1 %v4779_v45 }
 0x160   :  { %823 = vmatprep.subr.mxu0 %v4791_v47  ;;  %894 = vmatprep.subr.mxu1 %v4796_v48 }
 0x161   :  { %824 = vmatpush1.msra.mxu0 %v4803_v49  ;;  %895 = vmatpush1.msra.mxu1 %v7815_v53 }
 0x162   :  { %825 = vmatprep.subr.mxu0 %v7816_v61  ;;  %896 = vmatprep.subr.mxu1 %v7817_v52 }
 0x163   :  { %826 = vmatpush1.msra.mxu0 %v7818_v51  ;;  %897 = vmatpush1.msra.mxu1 %v7819_v0 }
 0x164   :  { %827 = vmatprep.subr.mxu0 %v7820_v62  ;;  %898 = vmatprep.subr.mxu1 %v7821_v10  ;;  %v7841_v10 = vld [vmem:[#allocation31_spill] sm:$0xff] }
 0x165   :  { %828 = vmatpush1.msra.mxu0 %v7822_v37  ;;  %899 = vmatpush1.msra.mxu1 %v7823_v60  ;;  %v7840_v37 = vld [vmem:[#allocation33_spill] sm:$0xff] }
 0x166   :  { %829 = vmatprep.subr.mxu0 %v7824_v19  ;;  %900 = vmatprep.subr.mxu1 %v7825_v50  ;;  %v7836_v50 = vld [vmem:[#allocation29_spill] sm:$0xff] }
 0x167   :  { %830 = vmatpush1.msra.mxu0 %v7826_v54  ;;  %901 = vmatpush1.msra.mxu1 %v7827_v28  ;;  %v7837_v28 = vld [vmem:[#allocation7_spill] sm:$0xff] }
 0x168   :  { %831 = vmatprep.subr.mxu0 %v7828_v1  ;;  %902 = vmatprep.subr.mxu1 %v7829_v56  ;;  %v7838_v1 = vld [vmem:[#allocation8_spill] sm:$0xff] }
 0x169   :  { %832 = vmatpush1.msra.mxu0 %v7830_v55  ;;  %903 = vmatpush1.msra.mxu1 %v7831_v2 }
 0x16a   :  { %833 = vmatprep.subr.mxu0 %v7832_v59  ;;  %904 = vmatprep.subr.mxu1 %v7833_v57  ;;  %v7839_v59 = vld [vmem:[#allocation32_spill] sm:$0xff] }
 0x16b   :  { %834 = vmatpush1.msra.mxu0 %v7834_v63  ;;  %867 = vmatprep.mubr.f32.mxu0 %v7835_v46 }
 0x16c   :  { %905 = vmatpush1.msra.mxu1 %v7836_v50  ;;  %938 = vmatprep.mubr.f32.mxu1 %v7835_v46 }
 0x16d   :  { %978 = vmatprep.subr.mxu0 %v7837_v28  ;;  %1049 = vmatprep.subr.mxu1 %v7838_v1 }
 0x20c   :  { %v694_v56 = vpop.f32.mrf.mxu0  ;;  %v765_v57 = vpop.f32.mrf.mxu1 }
 0x20d   :  { %v770_v55 = vadd.f32 %v694_v56, %v5045_v58  ;;  %v772_v46 = vadd.f32 %v765_v57, %v7841_v10 }
 0x20e   :  { %v696_v2 = vpop.f32.mrf.mxu0  ;;  %v767_v60 = vpop.f32.mrf.mxu1 }
 0x20f   :  { %v3768_v54 = vmul.f32 -1.442695, %v770_v55  ;;  %v771_v19 = vadd.f32 %v696_v2, %v7839_v59  ;;  %v773_v50 = vadd.f32 %v767_v60, %v7840_v37 }
 0x211   :  { %3885 = vpow2.f32 %v3768_v54  ;;  %v3769_v63 = vmul.f32 -1.442695, %v771_v19  ;;  %v3770_v62 = vmul.f32 -1.442695, %v773_v50 }
 0x213   :  { %3887 = vpow2.f32 %v3769_v63 }
 0x214   :  { %3889 = vtanh.f32 %v772_v46 }
 0x215   :  { %3891 = vpow2.f32 %v3770_v62 }
 0x21e   :  { %v3886_v28 = vpop.eup %3885 }
 0x21f   :  { %v777_v0 = vadd.f32 1.0, %v3886_v28 }
 0x220   :  { %v3888_v1 = vpop.eup %3887 }
 0x221   :  { %3893 = vrcp.f32 %v777_v0  ;;  %v783_v58 = vadd.f32 1.0, %v3888_v1  ;;  %v3890_v56 = vpop.eup %3889  ;;  %v7864_v0 = vld [vmem:[#allocation36_spill] sm:$0xff]  ;;  %v7865_v1 = vld [vmem:[#allocation37_spill] sm:$0xff] }
 0x222   :  { %v3892_v55 = vpop.eup %3891 }
 0x223   :  { %3895 = vrcp.f32 %v783_v58  ;;  %v790_v59 = vadd.f32 1.0, %v3892_v55 }
 0x225   :  { %3897 = vrcp.f32 %v790_v59 }
 0x22e   :  { %v3894_v54 = vpop.eup %3893 }
 0x22f   :  { %v794_v2 = vmul.f32 %v3894_v54, %v3890_v56  ;;  %v7866_v56 = vld [vmem:[#allocation35_spill] sm:$0xff] }
 0x230   :  { %v3896_v19 = vpop.eup %3895 }
 0x231   :  { %v793_v63 = vmul.f32 %v3896_v19, %v5121_v3 }
 0x232   :  { %v3898_v10 = vpop.eup %3897 }
 0x233   :  { %v5199_v37 = vadd.f32 %v794_v2, %v793_v63 }
 0x235   :  { %3899 = vtanh.f32 %v5199_v37 }
 0x242   :  { %v3900_v46 = vpop.eup %3899 }
 0x243   :  { %v5202_v60 = vmul.f32 %v3900_v46, %v3898_v10 }
 0x245   :  { %7842 = vst [vmem:[#allocation9_spill] sm:$0xff] %v5202_v60  ;;  %868 = vmatmul.mubr.f32.vlgmr.msra.gmra.mxu0 %v5202_v60  ;;  %939 = vmatmul.mubr.f32.vlgmr.msra.gmra.mxu1 %v5202_v60  ;;  %v5423_v60 = vld [vmem:[%s7547_s2 + $0x150] sm:$0xff] }
 0x246   :  { %979 = vmatpush1.msra.mxu0 %v4538_v4  ;;  %1050 = vmatpush1.msra.mxu1 %v4543_v5  ;;  %v7843_v4 = vld [vmem:[#allocation13_spill] sm:$0xff]  ;;  %v7844_v5 = vld [vmem:[#allocation14_spill] sm:$0xff] }
 0x247   :  { %980 = vmatprep.subr.mxu0 %v4548_v6  ;;  %1051 = vmatprep.subr.mxu1 %v4553_v7  ;;  %v7845_v6 = vld [vmem:[#allocation15_spill] sm:$0xff]  ;;  %v7846_v7 = vld [vmem:[#allocation16_spill] sm:$0xff] }
 0x248   :  { %981 = vmatpush1.msra.mxu0 %v4562_v8  ;;  %1052 = vmatpush1.msra.mxu1 %v4567_v9  ;;  %v7847_v8 = vld [vmem:[#allocation17_spill] sm:$0xff]  ;;  %v7848_v9 = vld [vmem:[#allocation18_spill] sm:$0xff] }
 0x249   :  { %982 = vmatprep.subr.mxu0 %v4579_v11  ;;  %1053 = vmatprep.subr.mxu1 %v4584_v12  ;;  %v7849_v11 = vld [vmem:[#allocation19_spill] sm:$0xff]  ;;  %v7850_v12 = vld [vmem:[#allocation20_spill] sm:$0xff] }
 0x24a   :  { %983 = vmatpush1.msra.mxu0 %v4591_v13  ;;  %1054 = vmatpush1.msra.mxu1 %v4596_v14  ;;  %v7851_v13 = vld [vmem:[#allocation21_spill] sm:$0xff]  ;;  %v7852_v14 = vld [vmem:[#allocation22_spill] sm:$0xff] }
 0x24b   :  { %984 = vmatprep.subr.mxu0 %v4601_v15  ;;  %1055 = vmatprep.subr.mxu1 %v4606_v16  ;;  %v7853_v15 = vld [vmem:[#allocation23_spill] sm:$0xff]  ;;  %v7854_v16 = vld [vmem:[#allocation24_spill] sm:$0xff] }
 0x24c   :  { %985 = vmatpush1.msra.mxu0 %v4615_v17  ;;  %1056 = vmatpush1.msra.mxu1 %v4620_v18  ;;  %v7855_v17 = vld [vmem:[#allocation25_spill] sm:$0xff]  ;;  %v7856_v18 = vld [vmem:[#allocation26_spill] sm:$0xff] }
 0x24d   :  { %986 = vmatprep.subr.mxu0 %v4632_v20  ;;  %1057 = vmatprep.subr.mxu1 %v4637_v21  ;;  %v7857_v20 = vld [vmem:[#allocation27_spill] sm:$0xff]  ;;  %v7858_v21 = vld [vmem:[#allocation28_spill] sm:$0xff] }
 0x24e   :  { %987 = vmatpush1.msra.mxu0 %v4644_v22  ;;  %1058 = vmatpush1.msra.mxu1 %v4649_v23  ;;  %v7859_v22 = vmov 0.0   ;;  %v7860_v23 = vld [vmem:[#allocation29_spill] sm:$0xff] }
 0x24f   :  { %988 = vmatprep.subr.mxu0 %v4654_v24  ;;  %1059 = vmatprep.subr.mxu1 %v4659_v25  ;;  %v5273_v24 = vld [vmem:[%s7547_s2 + $0x1e8] sm:$0xff]  ;;  %v5279_v25 = vld [vmem:[%s7547_s2 + $0x1f8] sm:$0xff] }
 0x250   :  { %989 = vmatpush1.msra.mxu0 %v4668_v26  ;;  %1060 = vmatpush1.msra.mxu1 %v4673_v27  ;;  %7861 = vst [vmem:[#allocation10_spill] sm:$0xff] %v5273_v24  ;;  %7862 = vst [vmem:[#allocation11_spill] sm:$0xff] %v5279_v25  ;;  %v7863_v27 = vld [vmem:[#allocation34_spill] sm:$0xff] }
 0x251   :  { %990 = vmatprep.subr.mxu0 %v4685_v29  ;;  %1061 = vmatprep.subr.mxu1 %v4690_v30 }
 0x252   :  { %991 = vmatpush1.msra.mxu0 %v4697_v31  ;;  %1062 = vmatpush1.msra.mxu1 %v4702_v32 }
 0x253   :  { %992 = vmatprep.subr.mxu0 %v4707_v33  ;;  %1063 = vmatprep.subr.mxu1 %v4712_v34 }
 0x254   :  { %993 = vmatpush1.msra.mxu0 %v4721_v35  ;;  %1064 = vmatpush1.msra.mxu1 %v4726_v36 }
 0x255   :  { %994 = vmatprep.subr.mxu0 %v4738_v38  ;;  %1065 = vmatprep.subr.mxu1 %v4743_v39 }
 0x256   :  { %995 = vmatpush1.msra.mxu0 %v4750_v40  ;;  %1066 = vmatpush1.msra.mxu1 %v4755_v41 }
 0x257   :  { %996 = vmatprep.subr.mxu0 %v4760_v42  ;;  %1067 = vmatprep.subr.mxu1 %v4765_v43 }
 0x258   :  { %997 = vmatpush1.msra.mxu0 %v4774_v44  ;;  %1068 = vmatpush1.msra.mxu1 %v4779_v45 }
 0x259   :  { %998 = vmatprep.subr.mxu0 %v4791_v47  ;;  %1069 = vmatprep.subr.mxu1 %v4796_v48 }
 0x25a   :  { %999 = vmatpush1.msra.mxu0 %v4803_v49  ;;  %1070 = vmatpush1.msra.mxu1 %v7815_v53 }
 0x25b   :  { %1000 = vmatprep.subr.mxu0 %v7816_v61  ;;  %1071 = vmatprep.subr.mxu1 %v7817_v52 }
 0x25c   :  { %1001 = vmatpush1.msra.mxu0 %v7818_v51  ;;  %1072 = vmatpush1.msra.mxu1 %v7843_v4 }
 0x25d   :  { %1002 = vmatprep.subr.mxu0 %v7844_v5  ;;  %1073 = vmatprep.subr.mxu1 %v7845_v6 }
 0x25e   :  { %1003 = vmatpush1.msra.mxu0 %v7846_v7  ;;  %1074 = vmatpush1.msra.mxu1 %v7847_v8 }
 0x25f   :  { %1004 = vmatprep.subr.mxu0 %v7848_v9  ;;  %1075 = vmatprep.subr.mxu1 %v7849_v11 }
 0x260   :  { %1005 = vmatpush1.msra.mxu0 %v7850_v12  ;;  %1076 = vmatpush1.msra.mxu1 %v7851_v13 }
 0x261   :  { %1006 = vmatprep.subr.mxu0 %v7852_v14  ;;  %1077 = vmatprep.subr.mxu1 %v7853_v15 }
 0x262   :  { %1007 = vmatpush1.msra.mxu0 %v7854_v16  ;;  %1078 = vmatpush1.msra.mxu1 %v7855_v17 }
 0x263   :  { %1008 = vmatprep.subr.mxu0 %v7856_v18  ;;  %1079 = vmatprep.subr.mxu1 %v7857_v20 }
 0x264   :  { %1009 = vmatpush1.msra.mxu0 %v7858_v21  ;;  %1042 = vmatprep.mubr.f32.mxu0 %v7859_v22 }
 0x265   :  { %1080 = vmatpush1.msra.mxu1 %v7860_v23  ;;  %1113 = vmatprep.mubr.f32.mxu1 %v7859_v22 }
 0x266   :  { %1153 = vmatprep.subr.mxu0 %v5273_v24  ;;  %1224 = vmatprep.subr.mxu1 %v5279_v25 }
 0x305   :  { %v869_v26 = vpop.f32.mrf.mxu0  ;;  %v940_v50 = vpop.f32.mrf.mxu1 }
 0x306   :  { %v945_v29 = vadd.f32 %v869_v26, %v7863_v27  ;;  %v947_v55 = vadd.f32 %v940_v50, %v7866_v56  ;;  %v5321_v56 = vld [vmem:[%s7547_s2 + $0x1c0] sm:$0xff] }
 0x307   :  { %v871_v30 = vpop.f32.mrf.mxu0  ;;  %v942_v28 = vpop.f32.mrf.mxu1 }
 0x308   :  { %v3771_v3 = vmul.f32 -1.442695, %v945_v29  ;;  %v946_v62 = vadd.f32 %v871_v30, %v7864_v0  ;;  %v948_v58 = vadd.f32 %v942_v28, %v7865_v1  ;;  %v5297_v28 = vld [vmem:[%s7547_s2 + $0x1e0] sm:$0xff]  ;;  %v5309_v1 = vld [vmem:[%s7547_s2 + $0x1c8] sm:$0xff] }
 0x30a   :  { %3901 = vpow2.f32 %v3771_v3  ;;  %v3772_v57 = vmul.f32 -1.442695, %v946_v62  ;;  %v3773_v54 = vmul.f32 -1.442695, %v948_v58  ;;  %v5315_v58 = vld [vmem:[%s7547_s2 + $0x1d8] sm:$0xff] }
 0x30c   :  { %3903 = vpow2.f32 %v3772_v57 }
 0x30d   :  { %3905 = vtanh.f32 %v947_v55  ;;  %v5327_v55 = vld [vmem:[%s7547_s2 + $0x1d0] sm:$0xff] }
 0x30e   :  { %3907 = vpow2.f32 %v3773_v54  ;;  %v5333_v54 = vld [vmem:[%s7547_s2 + $0x1a8] sm:$0xff] }
 0x317   :  { %v3902_v2 = vpop.eup %3901 }
 0x318   :  { %v952_v19 = vadd.f32 1.0, %v3902_v2  ;;  %v5339_v2 = vld [vmem:[%s7547_s2 + $0x1b8] sm:$0xff] }
 0x319   :  { %v3904_v59 = vpop.eup %3903 }
 0x31a   :  { %3909 = vrcp.f32 %v952_v19  ;;  %v958_v63 = vadd.f32 1.0, %v3904_v59  ;;  %v3906_v10 = vpop.eup %3905  ;;  %v5345_v19 = vld [vmem:[%s7547_s2 + $0x1a0] sm:$0xff]  ;;  %v5351_v59 = vld [vmem:[%s7547_s2 + $0x1b0] sm:$0xff] }
 0x31b   :  { %v3908_v46 = vpop.eup %3907 }
 0x31c   :  { %3911 = vrcp.f32 %v958_v63  ;;  %v965_v30 = vadd.f32 1.0, %v3908_v46  ;;  %v5357_v63 = vld [vmem:[%s7547_s2 + $0x188] sm:$0xff]  ;;  %v5369_v46 = vld [vmem:[%s7547_s2 + $0x180] sm:$0xff] }
 0x31e   :  { %3913 = vrcp.f32 %v965_v30  ;;  %v5393_v30 = vld [vmem:[%s7547_s2 + $0x160] sm:$0xff] }
 0x327   :  { %v3910_v26 = vpop.eup %3909 }
 0x328   :  { %v969_v27 = vmul.f32 %v3910_v26, %v3906_v10  ;;  %v5363_v10 = vld [vmem:[%s7547_s2 + $0x198] sm:$0xff]  ;;  %v5375_v26 = vld [vmem:[%s7547_s2 + $0x190] sm:$0xff] }
 0x329   :  { %v3912_v29 = vpop.eup %3911 }
 0x32a   :  { %v968_v3 = vmul.f32 %v3912_v29, %v5199_v37  ;;  %v5303_v37 = vld [vmem:[%s7547_s2 + $0x1f0] sm:$0xff]  ;;  %v5387_v29 = vld [vmem:[%s7547_s2 + $0x178] sm:$0xff] }
 0x32b   :  { %v3914_v62 = vpop.eup %3913 }
 0x32c   :  { %v5287_v0 = vadd.f32 %v969_v27, %v968_v3  ;;  %v5381_v27 = vld [vmem:[%s7547_s2 + $0x168] sm:$0xff]  ;;  %v5399_v3 = vld [vmem:[%s7547_s2 + $0x170] sm:$0xff] }
 0x32e   :  { %3915 = vtanh.f32 %v5287_v0 }
 0x33b   :  { %v3916_v50 = vpop.eup %3915 }
 0x33c   :  { %v5290_v57 = vmul.f32 %v3916_v50, %v3914_v62  ;;  %v5405_v62 = vld [vmem:[%s7547_s2 + $0x148] sm:$0xff]  ;;  %v5411_v50 = vld [vmem:[%s7547_s2 + $0x158] sm:$0xff] }
 0x33d   :  { %7868 = vst [vmem:[#allocation7_spill] sm:$0xff] %v5405_v62  ;;  %7869 = vst [vmem:[#allocation8_spill] sm:$0xff] %v5411_v50 }
 0x33e   :  { %7867 = vst [vmem:[#allocation12_spill] sm:$0xff] %v5290_v57  ;;  %1043 = vmatmul.mubr.f32.vlgmr.msra.gmra.mxu0 %v5290_v57  ;;  %1114 = vmatmul.mubr.f32.vlgmr.msra.gmra.mxu1 %v5290_v57  ;;  %v5417_v57 = vld [vmem:[%s7547_s2 + $0x140] sm:$0xff] }
 0x33f   :  { %1154 = vmatpush1.msra.mxu0 %v5297_v28  ;;  %1225 = vmatpush1.msra.mxu1 %v5303_v37 }
 0x340   :  { %1155 = vmatprep.subr.mxu0 %v5309_v1  ;;  %1226 = vmatprep.subr.mxu1 %v5315_v58 }
 0x341   :  { %1156 = vmatpush1.msra.mxu0 %v5321_v56  ;;  %1227 = vmatpush1.msra.mxu1 %v5327_v55 }
 0x342   :  { %1157 = vmatprep.subr.mxu0 %v5333_v54  ;;  %1228 = vmatprep.subr.mxu1 %v5339_v2 }
 0x343   :  { %1158 = vmatpush1.msra.mxu0 %v5345_v19  ;;  %1229 = vmatpush1.msra.mxu1 %v5351_v59 }
 0x344   :  { %1159 = vmatprep.subr.mxu0 %v5357_v63  ;;  %1230 = vmatprep.subr.mxu1 %v5363_v10 }
 0x345   :  { %1160 = vmatpush1.msra.mxu0 %v5369_v46  ;;  %1231 = vmatpush1.msra.mxu1 %v5375_v26 }
 0x346   :  { %1161 = vmatprep.subr.mxu0 %v5381_v27  ;;  %1232 = vmatprep.subr.mxu1 %v5387_v29 }
 0x347   :  { %1162 = vmatpush1.msra.mxu0 %v5393_v30  ;;  %1233 = vmatpush1.msra.mxu1 %v5399_v3 }
 0x348   :  { %1163 = vmatprep.subr.mxu0 %v5405_v62  ;;  %1234 = vmatprep.subr.mxu1 %v5411_v50  ;;  %v5429_v62 = vld [vmem:[%s7547_s2 + $0x128] sm:$0xff]  ;;  %v5435_v50 = vld [vmem:[%s7547_s2 + $0x138] sm:$0xff] }
 0x349   :  { %1164 = vmatpush1.msra.mxu0 %v5417_v57  ;;  %1235 = vmatpush1.msra.mxu1 %v5423_v60 }
 0x34a   :  { %1165 = vmatprep.subr.mxu0 %v5429_v62  ;;  %1236 = vmatprep.subr.mxu1 %v5435_v50 }
 0x34b   :  { %1166 = vmatpush1.msra.mxu0 %v4697_v31  ;;  %1237 = vmatpush1.msra.mxu1 %v4702_v32  ;;  %v7870_v32 = vld [vmem:[#allocation38_spill] sm:$0xff] }
 0x34c   :  { %1167 = vmatprep.subr.mxu0 %v4707_v33  ;;  %1238 = vmatprep.subr.mxu1 %v4712_v34 }
 0x34d   :  { %1168 = vmatpush1.msra.mxu0 %v4721_v35  ;;  %1239 = vmatpush1.msra.mxu1 %v4726_v36  ;;  %v7871_v36 = vld [vmem:[#allocation40_spill] sm:$0xff] }
 0x34e   :  { %1169 = vmatprep.subr.mxu0 %v4738_v38  ;;  %1240 = vmatprep.subr.mxu1 %v4743_v39 }
 0x34f   :  { %1170 = vmatpush1.msra.mxu0 %v4750_v40  ;;  %1241 = vmatpush1.msra.mxu1 %v4755_v41 }
 0x350   :  { %1171 = vmatprep.subr.mxu0 %v4760_v42  ;;  %1242 = vmatprep.subr.mxu1 %v4765_v43  ;;  %v7872_v42 = vld [vmem:[#allocation41_spill] sm:$0xff] }
 0x351   :  { %1172 = vmatpush1.msra.mxu0 %v4774_v44  ;;  %1243 = vmatpush1.msra.mxu1 %v4779_v45  ;;  %v7873_v44 = vld [vmem:[#allocation39_spill] sm:$0xff] }
 0x352   :  { %1173 = vmatprep.subr.mxu0 %v4791_v47  ;;  %1244 = vmatprep.subr.mxu1 %v4796_v48 }
 0x353   :  { %1174 = vmatpush1.msra.mxu0 %v4803_v49  ;;  %1245 = vmatpush1.msra.mxu1 %v7815_v53 }
 0x354   :  { %1175 = vmatprep.subr.mxu0 %v7816_v61  ;;  %1246 = vmatprep.subr.mxu1 %v7817_v52 }
 0x355   :  { %1176 = vmatpush1.msra.mxu0 %v7818_v51  ;;  %1247 = vmatpush1.msra.mxu1 %v7843_v4 }
 0x356   :  { %1177 = vmatprep.subr.mxu0 %v7844_v5  ;;  %1248 = vmatprep.subr.mxu1 %v7845_v6 }
 0x357   :  { %1178 = vmatpush1.msra.mxu0 %v7846_v7  ;;  %1249 = vmatpush1.msra.mxu1 %v7847_v8 }
 0x358   :  { %1179 = vmatprep.subr.mxu0 %v7848_v9  ;;  %1250 = vmatprep.subr.mxu1 %v7849_v11 }
 0x359   :  { %1180 = vmatpush1.msra.mxu0 %v7850_v12  ;;  %1251 = vmatpush1.msra.mxu1 %v7851_v13 }
 0x35a   :  { %1181 = vmatprep.subr.mxu0 %v7852_v14  ;;  %1252 = vmatprep.subr.mxu1 %v7853_v15  ;;  %v7875_v14 = vld [vmem:[#allocation7_spill] sm:$0xff]  ;;  %v7876_v15 = vld [vmem:[#allocation8_spill] sm:$0xff] }
 0x35b   :  { %1182 = vmatpush1.msra.mxu0 %v7854_v16  ;;  %1253 = vmatpush1.msra.mxu1 %v7855_v17  ;;  %v5519_v16 = vld [vmem:[%s7547_s2 + $0x120] sm:$0xff]  ;;  %v5525_v17 = vld [vmem:[%s7547_s2 + $0x130] sm:$0xff] }
 0x35c   :  { %1183 = vmatprep.subr.mxu0 %v7856_v18  ;;  %1254 = vmatprep.subr.mxu1 %v7857_v20  ;;  %v5531_v18 = vld [vmem:[%s7547_s2 + $0x108] sm:$0xff]  ;;  %v5537_v20 = vld [vmem:[%s7547_s2 + $0x118] sm:$0xff] }
 0x35d   :  { %1184 = vmatpush1.msra.mxu0 %v7858_v21  ;;  %1217 = vmatprep.mubr.f32.mxu0 %v7859_v22  ;;  %v5543_v21 = vld [vmem:[%s7547_s2 + $0x100] sm:$0xff] }
 0x35e   :  { %1255 = vmatpush1.msra.mxu1 %v7860_v23  ;;  %1288 = vmatprep.mubr.f32.mxu1 %v7859_v22  ;;  %v5549_v23 = vld [vmem:[%s7547_s2 + $0x110] sm:$0xff] }
 0x35f   :  { %1328 = vmatprep.subr.mxu0 %v5273_v24  ;;  %1399 = vmatprep.subr.mxu1 %v5279_v25 }
 0x3fe   :  { %v1044_v31 = vpop.f32.mrf.mxu0  ;;  %v1115_v39 = vpop.f32.mrf.mxu1 }
 0x3ff   :  { %v1120_v33 = vadd.f32 %v1044_v31, %v7870_v32  ;;  %v1122_v45 = vadd.f32 %v1115_v39, %v7873_v44  ;;  %v5561_v31 = vld [vmem:[%s7547_s2 + $0xf8] sm:$0xff]  ;;  %v5567_v32 = vld [vmem:[%s7547_s2 + $0xe0] sm:$0xff]  ;;  %v5603_v39 = vld [vmem:[%s7547_s2 + $0xa8] sm:$0xff] }
 0x400   :  { %v1046_v34 = vpop.f32.mrf.mxu0  ;;  %v1117_v41 = vpop.f32.mrf.mxu1  ;;  %v5633_v44 = vld [vmem:[%s7547_s2 + $0x98] sm:$0xff] }
 0x401   :  { %v3774_v35 = vmul.f32 -1.442695, %v1120_v33  ;;  %v1121_v38 = vadd.f32 %v1046_v34, %v7871_v36  ;;  %v1123_v43 = vadd.f32 %v1117_v41, %v7872_v42  ;;  %v5573_v33 = vld [vmem:[%s7547_s2 + $0xf0] sm:$0xff]  ;;  %v5579_v34 = vld [vmem:[%s7547_s2 + $0xc8] sm:$0xff]  ;;  %v5591_v36 = vld [vmem:[%s7547_s2 + $0xc0] sm:$0xff] }
 0x402   :  { %v5615_v41 = vld [vmem:[%s7547_s2 + $0xa0] sm:$0xff]  ;;  %v5621_v42 = vld [vmem:[%s7547_s2 + $0xb0] sm:$0xff] }
 0x403   :  { %3917 = vpow2.f32 %v3774_v35  ;;  %v3775_v40 = vmul.f32 -1.442695, %v1121_v38  ;;  %v3776_v47 = vmul.f32 -1.442695, %v1123_v43  ;;  %v5585_v35 = vld [vmem:[%s7547_s2 + $0xd8] sm:$0xff]  ;;  %v5597_v38 = vld [vmem:[%s7547_s2 + $0xd0] sm:$0xff] }
 0x404   :  { %v5627_v43 = vld [vmem:[%s7547_s2 + $0x88] sm:$0xff] }
 0x405   :  { %3919 = vpow2.f32 %v3775_v40  ;;  %v5609_v40 = vld [vmem:[%s7547_s2 + $0xb8] sm:$0xff] }
 0x406   :  { %3921 = vtanh.f32 %v1122_v45  ;;  %v5639_v45 = vld [vmem:[%s7547_s2 + $0x80] sm:$0xff] }
 0x407   :  { %3923 = vpow2.f32 %v3776_v47  ;;  %v5645_v47 = vld [vmem:[%s7547_s2 + $0x90] sm:$0xff] }
 0x408   :  { %7877 = vst [vmem:[#allocation33_spill] sm:$0xff] %v5645_v47 }
 0x410   :  { %v3918_v48 = vpop.eup %3917 }
 0x411   :  { %v1127_v49 = vadd.f32 1.0, %v3918_v48  ;;  %v5651_v48 = vld [vmem:[%s7547_s2 + $0x68] sm:$0xff] }
 0x412   :  { %v3920_v53 = vpop.eup %3919  ;;  %7878 = vst [vmem:[#allocation31_spill] sm:$0xff] %v5651_v48 }
 0x413   :  { %3925 = vrcp.f32 %v1127_v49  ;;  %v1133_v61 = vadd.f32 1.0, %v3920_v53  ;;  %v3922_v52 = vpop.eup %3921  ;;  %v5657_v49 = vld [vmem:[%s7547_s2 + $0x78] sm:$0xff]  ;;  %v5663_v53 = vld [vmem:[%s7547_s2 + $0x60] sm:$0xff] }
 0x414   :  { %v3924_v51 = vpop.eup %3923  ;;  %7879 = vst [vmem:[#allocation13_spill] sm:$0xff] %v5657_v49  ;;  %7880 = vst [vmem:[#allocation14_spill] sm:$0xff] %v5663_v53 }
 0x415   :  { %3927 = vrcp.f32 %v1133_v61  ;;  %v1140_v7 = vadd.f32 1.0, %v3924_v51  ;;  %v5669_v61 = vld [vmem:[%s7547_s2 + $0x70] sm:$0xff]  ;;  %v5681_v51 = vld [vmem:[%s7547_s2 + $0x58] sm:$0xff] }
 0x416   :  { %7881 = vst [vmem:[#allocation15_spill] sm:$0xff] %v5669_v61  ;;  %7883 = vst [vmem:[#allocation17_spill] sm:$0xff] %v5681_v51 }
 0x417   :  { %3929 = vrcp.f32 %v1140_v7  ;;  %v5705_v7 = vld [vmem:[%s7547_s2 + $0x38] sm:$0xff] }
 0x418   :  { %7887 = vst [vmem:[#allocation21_spill] sm:$0xff] %v5705_v7 }
 0x420   :  { %v3926_v4 = vpop.eup %3925 }
 0x421   :  { %v1144_v5 = vmul.f32 %v3926_v4, %v3922_v52  ;;  %v5675_v52 = vld [vmem:[%s7547_s2 + $0x48] sm:$0xff]  ;;  %v5687_v4 = vld [vmem:[%s7547_s2 + $0x40] sm:$0xff] }
 0x422   :  { %v3928_v6 = vpop.eup %3927  ;;  %7882 = vst [vmem:[#allocation16_spill] sm:$0xff] %v5675_v52  ;;  %7884 = vst [vmem:[#allocation18_spill] sm:$0xff] %v5687_v4 }
 0x423   :  { %v1143_v8 = vmul.f32 %v3928_v6, %v5287_v0  ;;  %v5555_v0 = vld [vmem:[%s7547_s2 + $0xe8] sm:$0xff] }
 0x424   :  { %v3930_v11 = vpop.eup %3929  ;;  %v5699_v6 = vld [vmem:[%s7547_s2 + $0x28] sm:$0xff] }
 0x425   :  { %v5485_v9 = vadd.f32 %v1144_v5, %v1143_v8  ;;  %v5693_v5 = vld [vmem:[%s7547_s2 + $0x50] sm:$0xff]  ;;  %7886 = vst [vmem:[#allocation20_spill] sm:$0xff] %v5699_v6  ;;  %v5711_v8 = vld [vmem:[%s7547_s2 + $0x20] sm:$0xff] }
 0x426   :  { %7885 = vst [vmem:[#allocation19_spill] sm:$0xff] %v5693_v5  ;;  %7888 = vst [vmem:[#allocation22_spill] sm:$0xff] %v5711_v8 }
 0x427   :  { %3931 = vtanh.f32 %v5485_v9 }
 0x434   :  { %v3932_v12 = vpop.eup %3931 }
 0x435   :  { %v5488_v13 = vmul.f32 %v3932_v12, %v3930_v11  ;;  %v5717_v11 = vld [vmem:[%s7547_s2 + $0x30] sm:$0xff]  ;;  %v5723_v12 = vld [vmem:[%s7547_s2 + $0x8] sm:$0xff] }
 0x436   :  { %7889 = vst [vmem:[#allocation23_spill] sm:$0xff] %v5717_v11  ;;  %7890 = vst [vmem:[#allocation24_spill] sm:$0xff] %v5723_v12 }
 0x437   :  { %7874 = vst [vmem:[#allocation32_spill] sm:$0xff] %v5488_v13  ;;  %1218 = vmatmul.mubr.f32.vlgmr.msra.gmra.mxu0 %v5488_v13  ;;  %1289 = vmatmul.mubr.f32.vlgmr.msra.gmra.mxu1 %v5488_v13  ;;  %v5729_v13 = vld [vmem:[%s7547_s2 + $0x18] sm:$0xff] }
 0x438   :  { %1329 = vmatpush1.msra.mxu0 %v5297_v28  ;;  %1400 = vmatpush1.msra.mxu1 %v5303_v37  ;;  %7891 = vst [vmem:[#allocation25_spill] sm:$0xff] %v5729_v13 }
 0x439   :  { %1330 = vmatprep.subr.mxu0 %v5309_v1  ;;  %1401 = vmatprep.subr.mxu1 %v5315_v58 }
 0x43a   :  { %1331 = vmatpush1.msra.mxu0 %v5321_v56  ;;  %1402 = vmatpush1.msra.mxu1 %v5327_v55 }
 0x43b   :  { %1332 = vmatprep.subr.mxu0 %v5333_v54  ;;  %1403 = vmatprep.subr.mxu1 %v5339_v2 }
 0x43c   :  { %1333 = vmatpush1.msra.mxu0 %v5345_v19  ;;  %1404 = vmatpush1.msra.mxu1 %v5351_v59 }
 0x43d   :  { %1334 = vmatprep.subr.mxu0 %v5357_v63  ;;  %1405 = vmatprep.subr.mxu1 %v5363_v10 }
 0x43e   :  { %1335 = vmatpush1.msra.mxu0 %v5369_v46  ;;  %1406 = vmatpush1.msra.mxu1 %v5375_v26 }
 0x43f   :  { %1336 = vmatprep.subr.mxu0 %v5381_v27  ;;  %1407 = vmatprep.subr.mxu1 %v5387_v29 }
 0x440   :  { %1337 = vmatpush1.msra.mxu0 %v5393_v30  ;;  %1408 = vmatpush1.msra.mxu1 %v5399_v3 }
 0x441   :  { %1338 = vmatprep.subr.mxu0 %v7875_v14  ;;  %1409 = vmatprep.subr.mxu1 %v7876_v15 }
 0x442   :  { %1339 = vmatpush1.msra.mxu0 %v5417_v57  ;;  %1410 = vmatpush1.msra.mxu1 %v5423_v60 }
 0x443   :  { %1340 = vmatprep.subr.mxu0 %v5429_v62  ;;  %1411 = vmatprep.subr.mxu1 %v5435_v50 }
 0x444   :  { %1341 = vmatpush1.msra.mxu0 %v5519_v16  ;;  %1412 = vmatpush1.msra.mxu1 %v5525_v17 }
 0x445   :  { %1342 = vmatprep.subr.mxu0 %v5531_v18  ;;  %1413 = vmatprep.subr.mxu1 %v5537_v20 }
 0x446   :  { %1343 = vmatpush1.msra.mxu0 %v5543_v21  ;;  %1414 = vmatpush1.msra.mxu1 %v5549_v23 }
 0x447   :  { %1344 = vmatprep.subr.mxu0 %v5555_v0  ;;  %1415 = vmatprep.subr.mxu1 %v5561_v31 }
 0x448   :  { %1345 = vmatpush1.msra.mxu0 %v5567_v32  ;;  %1416 = vmatpush1.msra.mxu1 %v5573_v33 }
 0x449   :  { %1346 = vmatprep.subr.mxu0 %v5579_v34  ;;  %1417 = vmatprep.subr.mxu1 %v5585_v35 }
 0x44a   :  { %1347 = vmatpush1.msra.mxu0 %v5591_v36  ;;  %1418 = vmatpush1.msra.mxu1 %v5597_v38 }
 0x44b   :  { %1348 = vmatprep.subr.mxu0 %v5603_v39  ;;  %1419 = vmatprep.subr.mxu1 %v5609_v40 }
 0x44c   :  { %1349 = vmatpush1.msra.mxu0 %v5615_v41  ;;  %1420 = vmatpush1.msra.mxu1 %v5621_v42 }
 0x44d   :  { %1350 = vmatprep.subr.mxu0 %v5627_v43  ;;  %1421 = vmatprep.subr.mxu1 %v5633_v44 }
 0x44e   :  { %1351 = vmatpush1.msra.mxu0 %v5639_v45  ;;  %1422 = vmatpush1.msra.mxu1 %v5645_v47 }
 0x44f   :  { %1352 = vmatprep.subr.mxu0 %v5651_v48  ;;  %1423 = vmatprep.subr.mxu1 %v5657_v49  ;;  %v7897_v49 = vld [vmem:[#allocation43_spill] sm:$0xff] }
 0x450   :  { %1353 = vmatpush1.msra.mxu0 %v5663_v53  ;;  %1424 = vmatpush1.msra.mxu1 %v5669_v61  ;;  %v7896_v53 = vld [vmem:[#allocation45_spill] sm:$0xff] }
 0x451   :  { %1354 = vmatprep.subr.mxu0 %v5675_v52  ;;  %1425 = vmatprep.subr.mxu1 %v5681_v51 }
 0x452   :  { %1355 = vmatpush1.msra.mxu0 %v5687_v4  ;;  %1426 = vmatpush1.msra.mxu1 %v5693_v5  ;;  %v7895_v5 = vld [vmem:[#allocation44_spill] sm:$0xff] }
 0x453   :  { %1356 = vmatprep.subr.mxu0 %v5699_v6  ;;  %1427 = vmatprep.subr.mxu1 %v5705_v7 }
 0x454   :  { %1357 = vmatpush1.msra.mxu0 %v5711_v8  ;;  %1428 = vmatpush1.msra.mxu1 %v5717_v11  ;;  %v5735_v8 = vld [vmem:[%s7547_s2] sm:$0xff] }
 0x455   :  { %1358 = vmatprep.subr.mxu0 %v5723_v12  ;;  %1429 = vmatprep.subr.mxu1 %v5729_v13  ;;  %7892 = vst [vmem:[#allocation26_spill] sm:$0xff] %v5735_v8  ;;  %v5742_v12 = vld [vmem:[%s7547_s2 + $0x10] sm:$0xff]  ;;  %v7894_v11 = vld [vmem:[#allocation42_spill] sm:$0xff]  ;;  %s4277_s2 = smov [#allocation4]  }
 0x456   :  { %1359 = vmatpush1.msra.mxu0 %v5735_v8  ;;  %1392 = vmatprep.mubr.f32.mxu0 %v7859_v22  ;;  %7893 = vst [vmem:[#allocation27_spill] sm:$0xff] %v5742_v12  ;;  %s3757_s30 = sshll.u32 %s4277_s2, 4  ;;  %s3758_s30 = int_to_ptr.vmem [resolvable:$true] %s3757_s30 }
 0x457   :  { %1430 = vmatpush1.msra.mxu1 %v5742_v12  ;;  %1463 = vmatprep.mubr.f32.mxu1 %v7859_v22  ;;  %s4253_s10 = scalar_lea.vmem %s3758_s30, 128  ;;  %p4258_p1 = scmp.lt.s32.totalorder %s3758_s30, %s3758_s30 }
 0x458   :  { %1503 = vmatprep.subr.mxu0 %v5273_v24  ;;  %1574 = vmatprep.subr.mxu1 %v5279_v25  ;;  %p4254_p0 = scmp.ne.s32.totalorder %s3758_s30, %s4253_s10  ;;  %p4259_p2 = scmp.lt.s32.totalorder %s4253_s10, %s4253_s10 }
 0x45a   :  { %p4260_p3 = por %p4259_p2, %p4258_p1 }
 0x45c   :  { %p4261_p4 = pnand %p4260_p3, %p4254_p0 }
 0x4f7   :  { %v1219_v13 = vpop.f32.mrf.mxu0  ;;  %v1290_v51 = vpop.f32.mrf.mxu1 }
 0x4f8   :  { %v1295_v7 = vadd.f32 %v1219_v13, %v7894_v11  ;;  %v1297_v22 = vadd.f32 %v1290_v51, %v7897_v49  ;;  %v7904_v51 = vld [vmem:[#allocation16_spill] sm:$0xff] }
 0x4f9   :  { %v1221_v6 = vpop.f32.mrf.mxu0  ;;  %v1292_v61 = vpop.f32.mrf.mxu1 }
 0x4fa   :  { %v3777_v8 = vmul.f32 -1.442695, %v1295_v7  ;;  %v1296_v4 = vadd.f32 %v1221_v6, %v7895_v5  ;;  %v1298_v12 = vadd.f32 %v1292_v61, %v7896_v53  ;;  %v7903_v61 = vld [vmem:[#allocation15_spill] sm:$0xff] }
 0x4fc   :  { %3933 = vpow2.f32 %v3777_v8  ;;  %v3778_v52 = vmul.f32 -1.442695, %v1296_v4  ;;  %v3779_v48 = vmul.f32 -1.442695, %v1298_v12  ;;  %v7905_v12 = vld [vmem:[#allocation17_spill] sm:$0xff] }
 0x4fe   :  { %3935 = vpow2.f32 %v3778_v52 }
 0x4ff   :  { %3937 = vtanh.f32 %v1297_v22 }
 0x500   :  { %3939 = vpow2.f32 %v3779_v48  ;;  %v7902_v48 = vld [vmem:[#allocation14_spill] sm:$0xff] }
 0x509   :  { %v3934_v24 = vpop.eup %3933 }
 0x50a   :  { %v1302_v47 = vadd.f32 1.0, %v3934_v24 }
 0x50b   :  { %v3936_v25 = vpop.eup %3935 }
 0x50c   :  { %3941 = vrcp.f32 %v1302_v47  ;;  %v1308_v13 = vadd.f32 1.0, %v3936_v25  ;;  %v3938_v7 = vpop.eup %3937  ;;  %v7899_v25 = vld [vmem:[#allocation33_spill] sm:$0xff] }
 0x50d   :  { %v3940_v5 = vpop.eup %3939  ;;  %v7901_v47 = vld [vmem:[#allocation13_spill] sm:$0xff] }
 0x50e   :  { %3943 = vrcp.f32 %v1308_v13  ;;  %v1315_v52 = vadd.f32 1.0, %v3940_v5  ;;  %v7906_v13 = vld [vmem:[#allocation18_spill] sm:$0xff]  ;;  %v7908_v5 = vld [vmem:[#allocation20_spill] sm:$0xff] }
 0x510   :  { %3945 = vrcp.f32 %v1315_v52  ;;  %v7912_v52 = vld [vmem:[#allocation24_spill] sm:$0xff] }
 0x519   :  { %v3942_v6 = vpop.eup %3941 }
 0x51a   :  { %v1319_v8 = vmul.f32 %v3942_v6, %v3938_v7  ;;  %v7907_v7 = vld [vmem:[#allocation19_spill] sm:$0xff]  ;;  %v7909_v6 = vld [vmem:[#allocation21_spill] sm:$0xff] }
 0x51b   :  { %v3944_v4 = vpop.eup %3943 }
 0x51c   :  { %v1318_v11 = vmul.f32 %v3944_v4, %v5485_v9  ;;  %v7900_v9 = vld [vmem:[#allocation31_spill] sm:$0xff] }
 0x51d   :  { %v3946_v24 = vpop.eup %3945  ;;  %v7911_v4 = vld [vmem:[#allocation23_spill] sm:$0xff] }
 0x51e   :  { %v5753_v53 = vadd.f32 %v1319_v8, %v1318_v11  ;;  %v7910_v8 = vld [vmem:[#allocation22_spill] sm:$0xff]  ;;  %v7913_v11 = vld [vmem:[#allocation25_spill] sm:$0xff] }
 0x520   :  { %3947 = vtanh.f32 %v5753_v53 }
 0x52d   :  { %v3948_v22 = vpop.eup %3947 }
 0x52e   :  { %v5756_v49 = vmul.f32 %v3948_v22, %v3946_v24  ;;  %v7914_v24 = vld [vmem:[#allocation26_spill] sm:$0xff]  ;;  %v7915_v22 = vmov 0.0  }
 0x530   :  { %7898 = vst [vmem:[#allocation28_spill] sm:$0xff] %v5756_v49  ;;  %1393 = vmatmul.mubr.f32.vlgmr.msra.gmra.mxu0 %v5756_v49  ;;  %1464 = vmatmul.mubr.f32.vlgmr.msra.gmra.mxu1 %v5756_v49  ;;  %v7916_v49 = vld [vmem:[#allocation27_spill] sm:$0xff] }
 0x531   :  { %1504 = vmatpush1.msra.mxu0 %v5297_v28  ;;  %1575 = vmatpush1.msra.mxu1 %v5303_v37 }
 0x532   :  { %1505 = vmatprep.subr.mxu0 %v5309_v1  ;;  %1576 = vmatprep.subr.mxu1 %v5315_v58 }
 0x533   :  { %1506 = vmatpush1.msra.mxu0 %v5321_v56  ;;  %1577 = vmatpush1.msra.mxu1 %v5327_v55 }
 0x534   :  { %1507 = vmatprep.subr.mxu0 %v5333_v54  ;;  %1578 = vmatprep.subr.mxu1 %v5339_v2 }
 0x535   :  { %1508 = vmatpush1.msra.mxu0 %v5345_v19  ;;  %1579 = vmatpush1.msra.mxu1 %v5351_v59 }
 0x536   :  { %1509 = vmatprep.subr.mxu0 %v5357_v63  ;;  %1580 = vmatprep.subr.mxu1 %v5363_v10 }
 0x537   :  { %1510 = vmatpush1.msra.mxu0 %v5369_v46  ;;  %1581 = vmatpush1.msra.mxu1 %v5375_v26 }
 0x538   :  { %1511 = vmatprep.subr.mxu0 %v5381_v27  ;;  %1582 = vmatprep.subr.mxu1 %v5387_v29 }
 0x539   :  { %1512 = vmatpush1.msra.mxu0 %v5393_v30  ;;  %1583 = vmatpush1.msra.mxu1 %v5399_v3 }
 0x53a   :  { %1513 = vmatprep.subr.mxu0 %v7875_v14  ;;  %1584 = vmatprep.subr.mxu1 %v7876_v15 }
 0x53b   :  { %1514 = vmatpush1.msra.mxu0 %v5417_v57  ;;  %1585 = vmatpush1.msra.mxu1 %v5423_v60 }
 0x53c   :  { %1515 = vmatprep.subr.mxu0 %v5429_v62  ;;  %1586 = vmatprep.subr.mxu1 %v5435_v50 }
 0x53d   :  { %1516 = vmatpush1.msra.mxu0 %v5519_v16  ;;  %1587 = vmatpush1.msra.mxu1 %v5525_v17 }
 0x53e   :  { %1517 = vmatprep.subr.mxu0 %v5531_v18  ;;  %1588 = vmatprep.subr.mxu1 %v5537_v20 }
 0x53f   :  { %1518 = vmatpush1.msra.mxu0 %v5543_v21  ;;  %1589 = vmatpush1.msra.mxu1 %v5549_v23 }
 0x540   :  { %1519 = vmatprep.subr.mxu0 %v5555_v0  ;;  %1590 = vmatprep.subr.mxu1 %v5561_v31 }
 0x541   :  { %1520 = vmatpush1.msra.mxu0 %v5567_v32  ;;  %1591 = vmatpush1.msra.mxu1 %v5573_v33 }
 0x542   :  { %1521 = vmatprep.subr.mxu0 %v5579_v34  ;;  %1592 = vmatprep.subr.mxu1 %v5585_v35 }
 0x543   :  { %1522 = vmatpush1.msra.mxu0 %v5591_v36  ;;  %1593 = vmatpush1.msra.mxu1 %v5597_v38 }
 0x544   :  { %1523 = vmatprep.subr.mxu0 %v5603_v39  ;;  %1594 = vmatprep.subr.mxu1 %v5609_v40 }
 0x545   :  { %1524 = vmatpush1.msra.mxu0 %v5615_v41  ;;  %1595 = vmatpush1.msra.mxu1 %v5621_v42 }
 0x546   :  { %1525 = vmatprep.subr.mxu0 %v5627_v43  ;;  %1596 = vmatprep.subr.mxu1 %v5633_v44 }
 0x547   :  { %1526 = vmatpush1.msra.mxu0 %v5639_v45  ;;  %1597 = vmatpush1.msra.mxu1 %v7899_v25 }
 0x548   :  { %1527 = vmatprep.subr.mxu0 %v7900_v9  ;;  %1598 = vmatprep.subr.mxu1 %v7901_v47  ;;  %v7922_v47 = vld [vmem:[#allocation47_spill] sm:$0xff] }
 0x549   :  { %1528 = vmatpush1.msra.mxu0 %v7902_v48  ;;  %1599 = vmatpush1.msra.mxu1 %v7903_v61  ;;  %v7921_v48 = vld [vmem:[#allocation49_spill] sm:$0xff] }
 0x54a   :  { %1529 = vmatprep.subr.mxu0 %v7904_v51  ;;  %1600 = vmatprep.subr.mxu1 %v7905_v12 }
 0x54b   :  { %1530 = vmatpush1.msra.mxu0 %v7906_v13  ;;  %1601 = vmatpush1.msra.mxu1 %v7907_v7  ;;  %v7917_v7 = vld [vmem:[#allocation10_spill] sm:$0xff] }
 0x54c   :  { %1531 = vmatprep.subr.mxu0 %v7908_v5  ;;  %1602 = vmatprep.subr.mxu1 %v7909_v6  ;;  %v7918_v5 = vld [vmem:[#allocation11_spill] sm:$0xff] }
 0x54d   :  { %1532 = vmatpush1.msra.mxu0 %v7910_v8  ;;  %1603 = vmatpush1.msra.mxu1 %v7911_v4  ;;  %v7919_v8 = vld [vmem:[#allocation46_spill] sm:$0xff] }
 0x54e   :  { %1533 = vmatprep.subr.mxu0 %v7912_v52  ;;  %1604 = vmatprep.subr.mxu1 %v7913_v11  ;;  %v7920_v52 = vld [vmem:[#allocation48_spill] sm:$0xff] }
 0x54f   :  { %1534 = vmatpush1.msra.mxu0 %v7914_v24  ;;  %1567 = vmatprep.mubr.f32.mxu0 %v7915_v22 }
 0x550   :  { %1605 = vmatpush1.msra.mxu1 %v7916_v49  ;;  %1638 = vmatprep.mubr.f32.mxu1 %v7915_v22 }
 0x551   :  { %1678 = vmatprep.subr.mxu0 %v7917_v7  ;;  %1749 = vmatprep.subr.mxu1 %v7918_v5 }
 0x5f0   :  { %v1394_v6 = vpop.f32.mrf.mxu0  ;;  %v1465_v11 = vpop.f32.mrf.mxu1 }
 0x5f1   :  { %v1470_v13 = vadd.f32 %v1394_v6, %v7919_v8  ;;  %v1472_v22 = vadd.f32 %v1465_v11, %v7922_v47 }
 0x5f2   :  { %v1396_v4 = vpop.f32.mrf.mxu0  ;;  %v1467_v61 = vpop.f32.mrf.mxu1 }
 0x5f3   :  { %v3780_v12 = vmul.f32 -1.442695, %v1470_v13  ;;  %v1471_v51 = vadd.f32 %v1396_v4, %v7920_v52  ;;  %v1473_v49 = vadd.f32 %v1467_v61, %v7921_v48 }
 0x5f5   :  { %3949 = vpow2.f32 %v3780_v12  ;;  %v3781_v24 = vmul.f32 -1.442695, %v1471_v51  ;;  %v3782_v9 = vmul.f32 -1.442695, %v1473_v49 }
 0x5f7   :  { %3951 = vpow2.f32 %v3781_v24 }
 0x5f8   :  { %3953 = vtanh.f32 %v1472_v22 }
 0x5f9   :  { %3955 = vpow2.f32 %v3782_v9 }
 0x602   :  { %v3950_v7 = vpop.eup %3949 }
 0x603   :  { %v1477_v25 = vadd.f32 1.0, %v3950_v7  ;;  %v1917_v7 = vld [vmem:[%s7549_s4 + $0x1e0] sm:$0xff] }
 0x604   :  { %v3952_v5 = vpop.eup %3951 }
 0x605   :  { %3957 = vrcp.f32 %v1477_v25  ;;  %v1483_v6 = vadd.f32 1.0, %v3952_v5  ;;  %v3954_v13 = vpop.eup %3953  ;;  %v1919_v5 = vld [vmem:[%s7549_s4 + $0x1f0] sm:$0xff] }
 0x606   :  { %v3956_v8 = vpop.eup %3955 }
 0x607   :  { %3959 = vrcp.f32 %v1483_v6  ;;  %v1490_v52 = vadd.f32 1.0, %v3956_v8  ;;  %v1914_v6 = vld [vmem:[%s7549_s4 + $0x1c8] sm:$0xff]  ;;  %v1913_v8 = vld [vmem:[%s7549_s4 + $0x1c0] sm:$0xff] }
 0x609   :  { %3961 = vrcp.f32 %v1490_v52  ;;  %v1909_v52 = vld [vmem:[%s7549_s4 + $0x1a0] sm:$0xff] }
 0x612   :  { %v3958_v12 = vpop.eup %3957 }
 0x613   :  { %v1494_v4 = vmul.f32 %v3958_v12, %v3954_v13  ;;  %v1916_v13 = vld [vmem:[%s7549_s4 + $0x1d8] sm:$0xff]  ;;  %v1915_v12 = vld [vmem:[%s7549_s4 + $0x1d0] sm:$0xff] }
 0x614   :  { %v3960_v51 = vpop.eup %3959 }
 0x615   :  { %v1493_v24 = vmul.f32 %v3960_v51, %v5753_v53  ;;  %v1912_v51 = vld [vmem:[%s7549_s4 + $0x1b8] sm:$0xff] }
 0x616   :  { %v3962_v49 = vpop.eup %3961 }
 0x617   :  { %v5831_v48 = vadd.f32 %v1494_v4, %v1493_v24  ;;  %v1910_v4 = vld [vmem:[%s7549_s4 + $0x1a8] sm:$0xff]  ;;  %v1911_v24 = vld [vmem:[%s7549_s4 + $0x1b0] sm:$0xff] }
 0x619   :  { %3963 = vtanh.f32 %v5831_v48 }
 0x626   :  { %v3964_v47 = vpop.eup %3963 }
 0x627   :  { %v5834_v61 = vmul.f32 %v3964_v47, %v3962_v49  ;;  %v1908_v49 = vld [vmem:[%s7549_s4 + $0x198] sm:$0xff]  ;;  %v1905_v47 = vld [vmem:[%s7549_s4 + $0x180] sm:$0xff] }
 0x629   :  { %1568 = vmatmul.mubr.f32.vlgmr.msra.gmra.mxu0 %v5834_v61  ;;  %1639 = vmatmul.mubr.f32.vlgmr.msra.gmra.mxu1 %v5834_v61 }
 0x62a   :  { %1679 = vmatpush1.msra.mxu0 %v5297_v28  ;;  %1750 = vmatpush1.msra.mxu1 %v5303_v37  ;;  %v7925_v28 = vld [vmem:[#allocation13_spill] sm:$0xff]  ;;  %v7926_v37 = vld [vmem:[#allocation14_spill] sm:$0xff] }
 0x62b   :  { %1680 = vmatprep.subr.mxu0 %v5309_v1  ;;  %1751 = vmatprep.subr.mxu1 %v5315_v58  ;;  %v7927_v1 = vld [vmem:[#allocation15_spill] sm:$0xff]  ;;  %v7928_v58 = vld [vmem:[#allocation16_spill] sm:$0xff] }
 0x62c   :  { %1681 = vmatpush1.msra.mxu0 %v5321_v56  ;;  %1752 = vmatpush1.msra.mxu1 %v5327_v55  ;;  %v7929_v56 = vld [vmem:[#allocation17_spill] sm:$0xff]  ;;  %v7930_v55 = vld [vmem:[#allocation18_spill] sm:$0xff] }
 0x62d   :  { %1682 = vmatprep.subr.mxu0 %v5333_v54  ;;  %1753 = vmatprep.subr.mxu1 %v5339_v2  ;;  %v7931_v54 = vld [vmem:[#allocation19_spill] sm:$0xff]  ;;  %v7932_v2 = vld [vmem:[#allocation20_spill] sm:$0xff] }
 0x62e   :  { %1683 = vmatpush1.msra.mxu0 %v5345_v19  ;;  %1754 = vmatpush1.msra.mxu1 %v5351_v59  ;;  %v7933_v19 = vld [vmem:[#allocation21_spill] sm:$0xff]  ;;  %v7934_v59 = vld [vmem:[#allocation22_spill] sm:$0xff] }
 0x62f   :  { %1684 = vmatprep.subr.mxu0 %v5357_v63  ;;  %1755 = vmatprep.subr.mxu1 %v5363_v10  ;;  %v7935_v63 = vld [vmem:[#allocation23_spill] sm:$0xff]  ;;  %v7936_v10 = vld [vmem:[#allocation24_spill] sm:$0xff] }
 0x630   :  { %1685 = vmatpush1.msra.mxu0 %v5369_v46  ;;  %1756 = vmatpush1.msra.mxu1 %v5375_v26  ;;  %v7937_v46 = vld [vmem:[#allocation25_spill] sm:$0xff]  ;;  %v7938_v26 = vld [vmem:[#allocation26_spill] sm:$0xff] }
 0x631   :  { %1686 = vmatprep.subr.mxu0 %v5381_v27  ;;  %1757 = vmatprep.subr.mxu1 %v5387_v29  ;;  %v7939_v27 = vld [vmem:[#allocation27_spill] sm:$0xff]  ;;  %v7940_v29 = vmov 0.0  }
 0x632   :  { %1687 = vmatpush1.msra.mxu0 %v5393_v30  ;;  %1758 = vmatpush1.msra.mxu1 %v5399_v3  ;;  %v1918_v30 = vld [vmem:[%s7549_s4 + $0x1e8] sm:$0xff]  ;;  %v1920_v3 = vld [vmem:[%s7549_s4 + $0x1f8] sm:$0xff] }
 0x633   :  { %1688 = vmatprep.subr.mxu0 %v7875_v14  ;;  %1759 = vmatprep.subr.mxu1 %v7876_v15 }
 0x634   :  { %1689 = vmatpush1.msra.mxu0 %v5417_v57  ;;  %1760 = vmatpush1.msra.mxu1 %v5423_v60  ;;  %v7923_v60 = vld [vmem:[#allocation33_spill] sm:$0xff]  ;;  %v7924_v57 = vld [vmem:[#allocation31_spill] sm:$0xff] }
 0x635   :  { %1690 = vmatprep.subr.mxu0 %v5429_v62  ;;  %1761 = vmatprep.subr.mxu1 %v5435_v50  ;;  %v7941_v50 = vld [vmem:[#allocation50_spill] sm:$0xff] }
 0x636   :  { %1691 = vmatpush1.msra.mxu0 %v5519_v16  ;;  %1762 = vmatpush1.msra.mxu1 %v5525_v17  ;;  %v7942_v17 = vld [vmem:[#allocation52_spill] sm:$0xff] }
 0x637   :  { %1692 = vmatprep.subr.mxu0 %v5531_v18  ;;  %1763 = vmatprep.subr.mxu1 %v5537_v20 }
 0x638   :  { %1693 = vmatpush1.msra.mxu0 %v5543_v21  ;;  %1764 = vmatpush1.msra.mxu1 %v5549_v23 }
 0x639   :  { %1694 = vmatprep.subr.mxu0 %v5555_v0  ;;  %1765 = vmatprep.subr.mxu1 %v5561_v31  ;;  %v7943_v0 = vld [vmem:[#allocation53_spill] sm:$0xff] }
 0x63a   :  { %1695 = vmatpush1.msra.mxu0 %v5567_v32  ;;  %1766 = vmatpush1.msra.mxu1 %v5573_v33  ;;  %v7944_v32 = vld [vmem:[#allocation51_spill] sm:$0xff] }
 0x63b   :  { %1696 = vmatprep.subr.mxu0 %v5579_v34  ;;  %1767 = vmatprep.subr.mxu1 %v5585_v35 }
 0x63c   :  { %1697 = vmatpush1.msra.mxu0 %v5591_v36  ;;  %1768 = vmatpush1.msra.mxu1 %v5597_v38 }
 0x63d   :  { %1698 = vmatprep.subr.mxu0 %v5603_v39  ;;  %1769 = vmatprep.subr.mxu1 %v5609_v40 }
 0x63e   :  { %1699 = vmatpush1.msra.mxu0 %v5615_v41  ;;  %1770 = vmatpush1.msra.mxu1 %v5621_v42 }
 0x63f   :  { %1700 = vmatprep.subr.mxu0 %v5627_v43  ;;  %1771 = vmatprep.subr.mxu1 %v5633_v44 }
 0x640   :  { %1701 = vmatpush1.msra.mxu0 %v5639_v45  ;;  %1772 = vmatpush1.msra.mxu1 %v7923_v60  ;;  %v1907_v60 = vld [vmem:[%s7549_s4 + $0x190] sm:$0xff] }
 0x641   :  { %1702 = vmatprep.subr.mxu0 %v7924_v57  ;;  %1773 = vmatprep.subr.mxu1 %v7925_v28  ;;  %v1902_v57 = vld [vmem:[%s7549_s4 + $0x168] sm:$0xff]  ;;  %v1904_v28 = vld [vmem:[%s7549_s4 + $0x178] sm:$0xff] }
 0x642   :  { %1703 = vmatpush1.msra.mxu0 %v7926_v37  ;;  %1774 = vmatpush1.msra.mxu1 %v7927_v1  ;;  %v1901_v37 = vld [vmem:[%s7549_s4 + $0x160] sm:$0xff]  ;;  %v1903_v1 = vld [vmem:[%s7549_s4 + $0x170] sm:$0xff] }
 0x643   :  { %1704 = vmatprep.subr.mxu0 %v7928_v58  ;;  %1775 = vmatprep.subr.mxu1 %v7929_v56  ;;  %v1898_v58 = vld [vmem:[%s7549_s4 + $0x148] sm:$0xff]  ;;  %v1900_v56 = vld [vmem:[%s7549_s4 + $0x158] sm:$0xff] }
 0x644   :  { %1705 = vmatpush1.msra.mxu0 %v7930_v55  ;;  %1776 = vmatpush1.msra.mxu1 %v7931_v54  ;;  %v1897_v55 = vld [vmem:[%s7549_s4 + $0x140] sm:$0xff]  ;;  %v1899_v54 = vld [vmem:[%s7549_s4 + $0x150] sm:$0xff] }
 0x645   :  { %1706 = vmatprep.subr.mxu0 %v7932_v2  ;;  %1777 = vmatprep.subr.mxu1 %v7933_v19  ;;  %v1894_v2 = vld [vmem:[%s7549_s4 + $0x128] sm:$0xff]  ;;  %v1896_v19 = vld [vmem:[%s7549_s4 + $0x138] sm:$0xff] }
 0x646   :  { %1707 = vmatpush1.msra.mxu0 %v7934_v59  ;;  %1778 = vmatpush1.msra.mxu1 %v7935_v63  ;;  %v1893_v59 = vld [vmem:[%s7549_s4 + $0x120] sm:$0xff]  ;;  %v1895_v63 = vld [vmem:[%s7549_s4 + $0x130] sm:$0xff] }
 0x647   :  { %1708 = vmatprep.subr.mxu0 %v7936_v10  ;;  %1779 = vmatprep.subr.mxu1 %v7937_v46  ;;  %v1890_v10 = vld [vmem:[%s7549_s4 + $0x108] sm:$0xff]  ;;  %v1892_v46 = vld [vmem:[%s7549_s4 + $0x118] sm:$0xff] }
 0x648   :  { %1709 = vmatpush1.msra.mxu0 %v7938_v26  ;;  %1780 = vmatpush1.msra.mxu1 %v7939_v27  ;;  %v1889_v26 = vld [vmem:[%s7549_s4 + $0x100] sm:$0xff]  ;;  %v1891_v27 = vld [vmem:[%s7549_s4 + $0x110] sm:$0xff] }
 0x649   :  { %1742 = vmatprep.mubr.f32.mxu0 %v7940_v29  ;;  %1813 = vmatprep.mubr.f32.mxu1 %v7940_v29 }
 0x64a   :  { %1943 = vmatprep.subr.mxu0 %v1918_v30  ;;  %2056 = vmatprep.subr.mxu1 %v1920_v3  ;;  %v1886_v30 = vld [vmem:[%s7549_s4 + $0xe8] sm:$0xff]  ;;  %v1888_v3 = vld [vmem:[%s7549_s4 + $0xf8] sm:$0xff] }
 0x6e9   :  { %v1569_v62 = vpop.f32.mrf.mxu0  ;;  %v1640_v20 = vpop.f32.mrf.mxu1 }
 0x6ea   :  { %v1645_v14 = vadd.f32 %v1569_v62, %v7941_v50  ;;  %v1647_v33 = vadd.f32 %v1640_v20, %v7944_v32  ;;  %v1885_v62 = vld [vmem:[%s7549_s4 + $0xe0] sm:$0xff]  ;;  %v1887_v50 = vld [vmem:[%s7549_s4 + $0xf0] sm:$0xff]  ;;  %v1880_v20 = vld [vmem:[%s7549_s4 + $0xb8] sm:$0xff] }
 0x6eb   :  { %v1571_v15 = vpop.f32.mrf.mxu0  ;;  %v1642_v23 = vpop.f32.mrf.mxu1  ;;  %v1873_v32 = vld [vmem:[%s7549_s4 + $0x80] sm:$0xff] }
 0x6ec   :  { %v3783_v16 = vmul.f32 -1.442695, %v1645_v14  ;;  %v1646_v18 = vadd.f32 %v1571_v15, %v7942_v17  ;;  %v1648_v31 = vadd.f32 %v1642_v23, %v7943_v0  ;;  %v1882_v14 = vld [vmem:[%s7549_s4 + $0xc8] sm:$0xff]  ;;  %v1884_v15 = vld [vmem:[%s7549_s4 + $0xd8] sm:$0xff]  ;;  %v1883_v17 = vld [vmem:[%s7549_s4 + $0xd0] sm:$0xff] }
 0x6ed   :  { %v1879_v23 = vld [vmem:[%s7549_s4 + $0xb0] sm:$0xff]  ;;  %v1874_v0 = vld [vmem:[%s7549_s4 + $0x88] sm:$0xff] }
 0x6ee   :  { %3965 = vpow2.f32 %v3783_v16  ;;  %v3784_v21 = vmul.f32 -1.442695, %v1646_v18  ;;  %v3785_v34 = vmul.f32 -1.442695, %v1648_v31  ;;  %v1881_v16 = vld [vmem:[%s7549_s4 + $0xc0] sm:$0xff]  ;;  %v1878_v18 = vld [vmem:[%s7549_s4 + $0xa8] sm:$0xff] }
 0x6ef   :  { %v1876_v31 = vld [vmem:[%s7549_s4 + $0x98] sm:$0xff] }
 0x6f0   :  { %3967 = vpow2.f32 %v3784_v21  ;;  %v1877_v21 = vld [vmem:[%s7549_s4 + $0xa0] sm:$0xff] }
 0x6f1   :  { %3969 = vtanh.f32 %v1647_v33  ;;  %v1875_v33 = vld [vmem:[%s7549_s4 + $0x90] sm:$0xff] }
 0x6f2   :  { %3971 = vpow2.f32 %v3785_v34  ;;  %v1870_v34 = vld [vmem:[%s7549_s4 + $0x68] sm:$0xff] }
 0x6fb   :  { %v3966_v35 = vpop.eup %3965 }
 0x6fc   :  { %v1652_v36 = vadd.f32 1.0, %v3966_v35  ;;  %v1872_v35 = vld [vmem:[%s7549_s4 + $0x78] sm:$0xff] }
 0x6fd   :  { %v3968_v38 = vpop.eup %3967 }
 0x6fe   :  { %3973 = vrcp.f32 %v1652_v36  ;;  %v1658_v39 = vadd.f32 1.0, %v3968_v38  ;;  %v3970_v40 = vpop.eup %3969  ;;  %v1869_v36 = vld [vmem:[%s7549_s4 + $0x60] sm:$0xff]  ;;  %v1871_v38 = vld [vmem:[%s7549_s4 + $0x70] sm:$0xff] }
 0x6ff   :  { %v3972_v41 = vpop.eup %3971 }
 0x700   :  { %3975 = vrcp.f32 %v1658_v39  ;;  %v1665_v45 = vadd.f32 1.0, %v3972_v41  ;;  %v1866_v39 = vld [vmem:[%s7549_s4 + $0x48] sm:$0xff]  ;;  %v1865_v41 = vld [vmem:[%s7549_s4 + $0x40] sm:$0xff] }
 0x702   :  { %3977 = vrcp.f32 %v1665_v45  ;;  %v1861_v45 = vld [vmem:[%s7549_s4 + $0x20] sm:$0xff] }
 0x70b   :  { %v3974_v42 = vpop.eup %3973 }
 0x70c   :  { %v1669_v43 = vmul.f32 %v3974_v42, %v3970_v40  ;;  %v1868_v40 = vld [vmem:[%s7549_s4 + $0x58] sm:$0xff]  ;;  %v1867_v42 = vld [vmem:[%s7549_s4 + $0x50] sm:$0xff] }
 0x70d   :  { %v3976_v44 = vpop.eup %3975 }
 0x70e   :  { %v1668_v53 = vmul.f32 %v3976_v44, %v5831_v48  ;;  %v1906_v48 = vld [vmem:[%s7549_s4 + $0x188] sm:$0xff]  ;;  %v1864_v44 = vld [vmem:[%s7549_s4 + $0x38] sm:$0xff] }
 0x70f   :  { %v3978_v9 = vpop.eup %3977 }
 0x710   :  { %v5913_v25 = vadd.f32 %v1669_v43, %v1668_v53  ;;  %v1862_v43 = vld [vmem:[%s7549_s4 + $0x28] sm:$0xff]  ;;  %v1863_v53 = vld [vmem:[%s7549_s4 + $0x30] sm:$0xff] }
 0x712   :  { %3979 = vtanh.f32 %v5913_v25 }
 0x71f   :  { %v3980_v11 = vpop.eup %3979 }
 0x720   :  { %v5916_v22 = vmul.f32 %v3980_v11, %v3978_v9  ;;  %v1858_v9 = vld [vmem:[%s7549_s4 + $0x8] sm:$0xff]  ;;  %v1860_v11 = vld [vmem:[%s7549_s4 + $0x18] sm:$0xff] }
 0x722   :  { %1743 = vmatmul.mubr.f32.vlgmr.msra.gmra.mxu0 %v5916_v22  ;;  %1814 = vmatmul.mubr.f32.vlgmr.msra.gmra.mxu1 %v5916_v22 }
 0x723   :  { %1944 = vmatpush1.msra.mxu0 %v1917_v7  ;;  %2057 = vmatpush1.msra.mxu1 %v1919_v5  ;;  %v1857_v7 = vld [vmem:[%s7549_s4] sm:$0xff]  ;;  %v1859_v5 = vld [vmem:[%s7549_s4 + $0x10] sm:$0xff] }
 0x724   :  { %1945 = vmatprep.subr.mxu0 %v1914_v6  ;;  %2058 = vmatprep.subr.mxu1 %v1916_v13  ;;  %v7945_v6 = vld [vmem:[#allocation58_spill] sm:$0xff]  ;;  %v7946_v13 = vld [vmem:[#allocation9_spill] sm:$0xff] }
 0x725   :  { %1946 = vmatpush1.msra.mxu0 %v1913_v8  ;;  %2059 = vmatpush1.msra.mxu1 %v1915_v12  ;;  %v7947_v8 = vld [vmem:[#allocation12_spill] sm:$0xff] }
 0x726   :  { %1947 = vmatprep.subr.mxu0 %v1910_v4  ;;  %2060 = vmatprep.subr.mxu1 %v1912_v51  ;;  %v7948_v12 = vld [vmem:[#allocation32_spill] sm:$0xff]  ;;  %v6139_v51 = vld [vmem:[%s7550_s5 + $0x1e8] sm:$0xff] }
 0x727   :  { %1948 = vmatpush1.msra.mxu0 %v1909_v52  ;;  %2061 = vmatpush1.msra.mxu1 %v1911_v24  ;;  %v7949_v4 = vld [vmem:[#allocation28_spill] sm:$0xff]  ;;  %7950 = vst [vmem:[#allocation29_spill] sm:$0xff] %v6139_v51  ;;  %v6163_v24 = vld [vmem:[%s7550_s5 + $0x1c8] sm:$0xff] }
 0x728   :  { %1949 = vmatprep.subr.mxu0 %v1906_v48  ;;  %2062 = vmatprep.subr.mxu1 %v1908_v49  ;;  %v6156_v52 = vld [vmem:[%s7550_s5 + $0x1f0] sm:$0xff]  ;;  %v6168_v48 = vld [vmem:[%s7550_s5 + $0x1d8] sm:$0xff]  ;;  %v6175_v49 = vld [vmem:[%s7550_s5 + $0x1c0] sm:$0xff] }
 0x729   :  { %1950 = vmatpush1.msra.mxu0 %v1905_v47  ;;  %2063 = vmatpush1.msra.mxu1 %v1907_v60  ;;  %v6180_v47 = vld [vmem:[%s7550_s5 + $0x1d0] sm:$0xff]  ;;  %v6187_v60 = vld [vmem:[%s7550_s5 + $0x1a8] sm:$0xff] }
 0x72a   :  { %1951 = vmatprep.subr.mxu0 %v1902_v57  ;;  %2064 = vmatprep.subr.mxu1 %v1904_v28  ;;  %v6192_v57 = vld [vmem:[%s7550_s5 + $0x1b8] sm:$0xff]  ;;  %v6199_v28 = vld [vmem:[%s7550_s5 + $0x1a0] sm:$0xff] }
 0x72b   :  { %1952 = vmatpush1.msra.mxu0 %v1901_v37  ;;  %2065 = vmatpush1.msra.mxu1 %v1903_v1  ;;  %v6204_v37 = vld [vmem:[%s7550_s5 + $0x1b0] sm:$0xff]  ;;  %v6211_v1 = vld [vmem:[%s7550_s5 + $0x188] sm:$0xff] }
 0x72c   :  { %1953 = vmatprep.subr.mxu0 %v1898_v58  ;;  %2066 = vmatprep.subr.mxu1 %v1900_v56  ;;  %v6216_v58 = vld [vmem:[%s7550_s5 + $0x198] sm:$0xff]  ;;  %v6223_v56 = vld [vmem:[%s7550_s5 + $0x180] sm:$0xff] }
 0x72d   :  { %1954 = vmatpush1.msra.mxu0 %v1897_v55  ;;  %2067 = vmatpush1.msra.mxu1 %v1899_v54  ;;  %v6228_v55 = vld [vmem:[%s7550_s5 + $0x190] sm:$0xff]  ;;  %v6235_v54 = vld [vmem:[%s7550_s5 + $0x168] sm:$0xff] }
 0x72e   :  { %1955 = vmatprep.subr.mxu0 %v1894_v2  ;;  %2068 = vmatprep.subr.mxu1 %v1896_v19  ;;  %v6240_v2 = vld [vmem:[%s7550_s5 + $0x178] sm:$0xff]  ;;  %v6247_v19 = vld [vmem:[%s7550_s5 + $0x160] sm:$0xff] }
 0x72f   :  { %1956 = vmatpush1.msra.mxu0 %v1893_v59  ;;  %2069 = vmatpush1.msra.mxu1 %v1895_v63  ;;  %v6252_v59 = vld [vmem:[%s7550_s5 + $0x170] sm:$0xff]  ;;  %v6259_v63 = vld [vmem:[%s7550_s5 + $0x148] sm:$0xff] }
 0x730   :  { %1957 = vmatprep.subr.mxu0 %v1890_v10  ;;  %2070 = vmatprep.subr.mxu1 %v1892_v46  ;;  %v6264_v10 = vld [vmem:[%s7550_s5 + $0x158] sm:$0xff]  ;;  %v6271_v46 = vld [vmem:[%s7550_s5 + $0x140] sm:$0xff] }
 0x731   :  { %1958 = vmatpush1.msra.mxu0 %v1889_v26  ;;  %2071 = vmatpush1.msra.mxu1 %v1891_v27  ;;  %v6276_v26 = vld [vmem:[%s7550_s5 + $0x150] sm:$0xff]  ;;  %v6283_v27 = vld [vmem:[%s7550_s5 + $0x128] sm:$0xff] }
 0x732   :  { %1959 = vmatprep.subr.mxu0 %v1886_v30  ;;  %2072 = vmatprep.subr.mxu1 %v1888_v3  ;;  %v6288_v30 = vld [vmem:[%s7550_s5 + $0x138] sm:$0xff]  ;;  %v6295_v3 = vld [vmem:[%s7550_s5 + $0x120] sm:$0xff] }
 0x733   :  { %1960 = vmatpush1.msra.mxu0 %v1885_v62  ;;  %2073 = vmatpush1.msra.mxu1 %v1887_v50  ;;  %v6300_v62 = vld [vmem:[%s7550_s5 + $0x130] sm:$0xff]  ;;  %v6307_v50 = vld [vmem:[%s7550_s5 + $0x108] sm:$0xff] }
 0x734   :  { %1961 = vmatprep.subr.mxu0 %v1882_v14  ;;  %2074 = vmatprep.subr.mxu1 %v1884_v15  ;;  %v6312_v14 = vld [vmem:[%s7550_s5 + $0x118] sm:$0xff]  ;;  %v6319_v15 = vld [vmem:[%s7550_s5 + $0x100] sm:$0xff] }
 0x735   :  { %1962 = vmatpush1.msra.mxu0 %v1881_v16  ;;  %2075 = vmatpush1.msra.mxu1 %v1883_v17  ;;  %v6324_v16 = vld [vmem:[%s7550_s5 + $0x110] sm:$0xff]  ;;  %v6331_v17 = vld [vmem:[%s7550_s5 + $0xe8] sm:$0xff] }
 0x736   :  { %1963 = vmatprep.subr.mxu0 %v1878_v18  ;;  %2076 = vmatprep.subr.mxu1 %v1880_v20  ;;  %v6336_v18 = vld [vmem:[%s7550_s5 + $0xf8] sm:$0xff]  ;;  %v6343_v20 = vld [vmem:[%s7550_s5 + $0xe0] sm:$0xff] }
 0x737   :  { %1964 = vmatpush1.msra.mxu0 %v1877_v21  ;;  %2077 = vmatpush1.msra.mxu1 %v1879_v23  ;;  %v6348_v21 = vld [vmem:[%s7550_s5 + $0xf0] sm:$0xff]  ;;  %v6355_v23 = vld [vmem:[%s7550_s5 + $0xc8] sm:$0xff] }
 0x738   :  { %1965 = vmatprep.subr.mxu0 %v1874_v0  ;;  %2078 = vmatprep.subr.mxu1 %v1876_v31  ;;  %v6360_v0 = vld [vmem:[%s7550_s5 + $0xd8] sm:$0xff]  ;;  %v6367_v31 = vld [vmem:[%s7550_s5 + $0xc0] sm:$0xff] }
 0x739   :  { %1966 = vmatpush1.msra.mxu0 %v1873_v32  ;;  %2079 = vmatpush1.msra.mxu1 %v1875_v33  ;;  %v6372_v32 = vld [vmem:[%s7550_s5 + $0xd0] sm:$0xff]  ;;  %v6379_v33 = vld [vmem:[%s7550_s5 + $0xa8] sm:$0xff] }
 0x73a   :  { %1967 = vmatprep.subr.mxu0 %v1870_v34  ;;  %2080 = vmatprep.subr.mxu1 %v1872_v35  ;;  %v6384_v34 = vld [vmem:[%s7550_s5 + $0xb8] sm:$0xff]  ;;  %v6391_v35 = vld [vmem:[%s7550_s5 + $0xa0] sm:$0xff] }
 0x73b   :  { %1968 = vmatpush1.msra.mxu0 %v1869_v36  ;;  %2081 = vmatpush1.msra.mxu1 %v1871_v38  ;;  %v6396_v36 = vld [vmem:[%s7550_s5 + $0xb0] sm:$0xff]  ;;  %v6403_v38 = vld [vmem:[%s7550_s5 + $0x88] sm:$0xff] }
 0x73c   :  { %1969 = vmatprep.subr.mxu0 %v1866_v39  ;;  %2082 = vmatprep.subr.mxu1 %v1868_v40  ;;  %7952 = vst [vmem:[#allocation36_spill] sm:$0xff] %v6396_v36  ;;  %7953 = vst [vmem:[#allocation37_spill] sm:$0xff] %v6403_v38  ;;  %v6408_v39 = vld [vmem:[%s7550_s5 + $0x98] sm:$0xff]  ;;  %v6415_v40 = vld [vmem:[%s7550_s5 + $0x80] sm:$0xff] }
 0x73d   :  { %1970 = vmatpush1.msra.mxu0 %v1865_v41  ;;  %2083 = vmatpush1.msra.mxu1 %v1867_v42  ;;  %7954 = vst [vmem:[#allocation35_spill] sm:$0xff] %v6408_v39  ;;  %7955 = vst [vmem:[#allocation38_spill] sm:$0xff] %v6415_v40  ;;  %v6420_v41 = vld [vmem:[%s7550_s5 + $0x90] sm:$0xff]  ;;  %v6427_v42 = vld [vmem:[%s7550_s5 + $0x68] sm:$0xff] }
 0x73e   :  { %1971 = vmatprep.subr.mxu0 %v1862_v43  ;;  %2084 = vmatprep.subr.mxu1 %v1864_v44  ;;  %7956 = vst [vmem:[#allocation40_spill] sm:$0xff] %v6420_v41  ;;  %7957 = vst [vmem:[#allocation41_spill] sm:$0xff] %v6427_v42  ;;  %v6432_v43 = vld [vmem:[%s7550_s5 + $0x78] sm:$0xff]  ;;  %v6439_v44 = vld [vmem:[%s7550_s5 + $0x60] sm:$0xff] }
 0x73f   :  { %1972 = vmatpush1.msra.mxu0 %v1861_v45  ;;  %2085 = vmatpush1.msra.mxu1 %v1863_v53  ;;  %7958 = vst [vmem:[#allocation39_spill] sm:$0xff] %v6432_v43  ;;  %7959 = vst [vmem:[#allocation7_spill] sm:$0xff] %v6439_v44  ;;  %v6444_v45 = vld [vmem:[%s7550_s5 + $0x70] sm:$0xff]  ;;  %v6451_v53 = vld [vmem:[%s7550_s5 + $0x48] sm:$0xff] }
 0x740   :  { %1973 = vmatprep.subr.mxu0 %v1858_v9  ;;  %2086 = vmatprep.subr.mxu1 %v1860_v11  ;;  %7960 = vst [vmem:[#allocation8_spill] sm:$0xff] %v6444_v45  ;;  %7961 = vst [vmem:[#allocation42_spill] sm:$0xff] %v6451_v53  ;;  %v6456_v9 = vld [vmem:[%s7550_s5 + $0x58] sm:$0xff]  ;;  %v6463_v11 = vld [vmem:[%s7550_s5 + $0x40] sm:$0xff] }
 0x741   :  { %1974 = vmatpush1.msra.mxu0 %v1857_v7  ;;  %2007 = vmatprep.mubr.f32.mxu0 %v7940_v29  ;;  %7962 = vst [vmem:[#allocation44_spill] sm:$0xff] %v6456_v9  ;;  %7963 = vst [vmem:[#allocation45_spill] sm:$0xff] %v6463_v11  ;;  %v6468_v7 = vld [vmem:[%s7550_s5 + $0x50] sm:$0xff] }
 0x742   :  { %2087 = vmatpush1.msra.mxu1 %v1859_v5  ;;  %2120 = vmatprep.mubr.f32.mxu1 %v7940_v29  ;;  %7964 = vst [vmem:[#allocation43_spill] sm:$0xff] %v6468_v7  ;;  %v6475_v5 = vld [vmem:[%s7550_s5 + $0x28] sm:$0xff] }
 0x743   :  { %2008 = vmatmul.mubr.f32.vlgmr.msra.gmra.mxu0 %v7945_v6  ;;  %2121 = vmatmul.mubr.f32.vlgmr.msra.gmra.mxu1 %v7945_v6  ;;  %7965 = vst [vmem:[#allocation10_spill] sm:$0xff] %v6475_v5  ;;  %v6480_v6 = vld [vmem:[%s7550_s5 + $0x38] sm:$0xff] }
 0x744   :  { %2013 = vmatprep.mubr.f32.mxu0 %v7940_v29  ;;  %2126 = vmatprep.mubr.f32.mxu1 %v7940_v29  ;;  %7966 = vst [vmem:[#allocation11_spill] sm:$0xff] %v6480_v6 }
 0x745   :  { %2269 = vmatprep.subr.mxu0 %v6139_v51 }
 0x747   :  { %2014 = vmatmul.mubr.f32.gmra.mxu0 %v7946_v13  ;;  %2127 = vmatmul.mubr.f32.gmra.mxu1 %v7946_v13  ;;  %v6487_v13 = vld [vmem:[%s7550_s5 + $0x20] sm:$0xff] }
 0x748   :  { %2019 = vmatprep.mubr.f32.mxu0 %v7940_v29  ;;  %2132 = vmatprep.mubr.f32.mxu1 %v7940_v29  ;;  %7967 = vst [vmem:[#allocation46_spill] sm:$0xff] %v6487_v13 }
 0x74b   :  { %2020 = vmatmul.mubr.f32.gmra.mxu0 %v7947_v8  ;;  %2133 = vmatmul.mubr.f32.gmra.mxu1 %v7947_v8  ;;  %v6492_v8 = vld [vmem:[%s7550_s5 + $0x30] sm:$0xff] }
 0x74c   :  { %2025 = vmatprep.mubr.f32.mxu0 %v7940_v29  ;;  %2138 = vmatprep.mubr.f32.mxu1 %v7940_v29  ;;  %7968 = vst [vmem:[#allocation48_spill] sm:$0xff] %v6492_v8 }
 0x74f   :  { %2026 = vmatmul.mubr.f32.gmra.mxu0 %v7948_v12  ;;  %2139 = vmatmul.mubr.f32.gmra.mxu1 %v7948_v12  ;;  %v6499_v12 = vld [vmem:[%s7550_s5 + $0x8] sm:$0xff] }
 0x750   :  { %2031 = vmatprep.mubr.f32.mxu0 %v7940_v29  ;;  %2144 = vmatprep.mubr.f32.mxu1 %v7940_v29  ;;  %7969 = vst [vmem:[#allocation49_spill] sm:$0xff] %v6499_v12 }
 0x753   :  { %2032 = vmatmul.mubr.f32.gmra.mxu0 %v7949_v4  ;;  %2145 = vmatmul.mubr.f32.gmra.mxu1 %v7949_v4  ;;  %v6504_v4 = vld [vmem:[%s7550_s5 + $0x18] sm:$0xff] }
 0x754   :  { %2037 = vmatprep.mubr.f32.mxu0 %v7940_v29  ;;  %2150 = vmatprep.mubr.f32.mxu1 %v7940_v29  ;;  %7970 = vst [vmem:[#allocation47_spill] sm:$0xff] %v6504_v4 }
 0x757   :  { %2038 = vmatmul.mubr.f32.gmra.mxu0 %v5834_v61  ;;  %2151 = vmatmul.mubr.f32.gmra.mxu1 %v5834_v61  ;;  %v6144_v61 = vld [vmem:[%s7550_s5 + $0x1f8] sm:$0xff] }
 0x758   :  { %2043 = vmatprep.mubr.f32.mxu0 %v7940_v29  ;;  %2156 = vmatprep.mubr.f32.mxu1 %v7940_v29  ;;  %7951 = vst [vmem:[#allocation34_spill] sm:$0xff] %v6144_v61 }
 0x759   :  { %2340 = vmatprep.subr.mxu1 %v6144_v61 }
 0x75a   :  { %2341 = vmatpush1.msra.mxu1 %v6156_v52 }
 0x75b   :  { %2044 = vmatmul.mubr.f32.gmra.mxu0 %v5916_v22  ;;  %2157 = vmatmul.mubr.f32.gmra.mxu1 %v5916_v22  ;;  %v6151_v22 = vld [vmem:[%s7550_s5 + $0x1e0] sm:$0xff] }
 0x75c   :  { %2049 = vmatprep.mubr.f32.mxu0 %v7940_v29  ;;  %2162 = vmatprep.mubr.f32.mxu1 %v7940_v29 }
 0x75d   :  { %2270 = vmatpush1.msra.mxu0 %v6151_v22  ;;  %2342 = vmatprep.subr.mxu1 %v6168_v48 }
 0x75e   :  { %2271 = vmatprep.subr.mxu0 %v6163_v24  ;;  %2343 = vmatpush1.msra.mxu1 %v6180_v47 }
 0x75f   :  { %2272 = vmatpush1.msra.mxu0 %v6175_v49  ;;  %2344 = vmatprep.subr.mxu1 %v6192_v57 }
 0x760   :  { %2273 = vmatprep.subr.mxu0 %v6187_v60  ;;  %2345 = vmatpush1.msra.mxu1 %v6204_v37 }
 0x761   :  { %2274 = vmatpush1.msra.mxu0 %v6199_v28  ;;  %2346 = vmatprep.subr.mxu1 %v6216_v58 }
 0x762   :  { %2275 = vmatprep.subr.mxu0 %v6211_v1  ;;  %2347 = vmatpush1.msra.mxu1 %v6228_v55 }
 0x763   :  { %2276 = vmatpush1.msra.mxu0 %v6223_v56  ;;  %2348 = vmatprep.subr.mxu1 %v6240_v2 }
 0x764   :  { %2277 = vmatprep.subr.mxu0 %v6235_v54  ;;  %2349 = vmatpush1.msra.mxu1 %v6252_v59 }
 0x765   :  { %2278 = vmatpush1.msra.mxu0 %v6247_v19  ;;  %2350 = vmatprep.subr.mxu1 %v6264_v10 }
 0x766   :  { %2279 = vmatprep.subr.mxu0 %v6259_v63  ;;  %2351 = vmatpush1.msra.mxu1 %v6276_v26 }
 0x767   :  { %2280 = vmatpush1.msra.mxu0 %v6271_v46  ;;  %2352 = vmatprep.subr.mxu1 %v6288_v30 }
 0x768   :  { %2281 = vmatprep.subr.mxu0 %v6283_v27  ;;  %2353 = vmatpush1.msra.mxu1 %v6300_v62 }
 0x769   :  { %2282 = vmatpush1.msra.mxu0 %v6295_v3  ;;  %2354 = vmatprep.subr.mxu1 %v6312_v14 }
 0x76a   :  { %2283 = vmatprep.subr.mxu0 %v6307_v50  ;;  %2355 = vmatpush1.msra.mxu1 %v6324_v16 }
 0x76b   :  { %2284 = vmatpush1.msra.mxu0 %v6319_v15  ;;  %2356 = vmatprep.subr.mxu1 %v6336_v18 }
 0x76c   :  { %2285 = vmatprep.subr.mxu0 %v6331_v17  ;;  %2357 = vmatpush1.msra.mxu1 %v6348_v21 }
 0x76d   :  { %2286 = vmatpush1.msra.mxu0 %v6343_v20  ;;  %2358 = vmatprep.subr.mxu1 %v6360_v0 }
 0x76e   :  { %2287 = vmatprep.subr.mxu0 %v6355_v23  ;;  %2359 = vmatpush1.msra.mxu1 %v6372_v32 }
 0x76f   :  { %2288 = vmatpush1.msra.mxu0 %v6367_v31  ;;  %2360 = vmatprep.subr.mxu1 %v6384_v34 }
 0x770   :  { %2289 = vmatprep.subr.mxu0 %v6379_v33  ;;  %2361 = vmatpush1.msra.mxu1 %v6396_v36 }
 0x771   :  { %2290 = vmatpush1.msra.mxu0 %v6391_v35  ;;  %2362 = vmatprep.subr.mxu1 %v6408_v39 }
 0x772   :  { %2291 = vmatprep.subr.mxu0 %v6403_v38  ;;  %2363 = vmatpush1.msra.mxu1 %v6420_v41 }
 0x773   :  { %2292 = vmatpush1.msra.mxu0 %v6415_v40  ;;  %2364 = vmatprep.subr.mxu1 %v6432_v43  ;;  %v7975_v43 = vld [vmem:[#allocation57_spill] sm:$0xff] }
 0x774   :  { %2293 = vmatprep.subr.mxu0 %v6427_v42  ;;  %2365 = vmatpush1.msra.mxu1 %v6444_v45  ;;  %v7976_v42 = vld [vmem:[#allocation55_spill] sm:$0xff] }
 0x775   :  { %2294 = vmatpush1.msra.mxu0 %v6439_v44  ;;  %2366 = vmatprep.subr.mxu1 %v6456_v9  ;;  %v7974_v9 = vld [vmem:[#allocation56_spill] sm:$0xff] }
 0x776   :  { %2295 = vmatprep.subr.mxu0 %v6451_v53  ;;  %2367 = vmatpush1.msra.mxu1 %v6468_v7 }
 0x777   :  { %2296 = vmatpush1.msra.mxu0 %v6463_v11  ;;  %2368 = vmatprep.subr.mxu1 %v6480_v6  ;;  %v6509_v6 = vld [vmem:[%s7550_s5] sm:$0xff] }
 0x778   :  { %2297 = vmatprep.subr.mxu0 %v6475_v5  ;;  %2369 = vmatpush1.msra.mxu1 %v6492_v8  ;;  %7971 = vst [vmem:[#allocation33_spill] sm:$0xff] %v6509_v6  ;;  %v6516_v8 = vld [vmem:[%s7550_s5 + $0x10] sm:$0xff]  ;;  %v7973_v5 = vld [vmem:[#allocation54_spill] sm:$0xff] }
 0x779   :  { %2298 = vmatpush1.msra.mxu0 %v6487_v13  ;;  %2370 = vmatprep.subr.mxu1 %v6504_v4  ;;  %7972 = vst [vmem:[#allocation31_spill] sm:$0xff] %v6516_v8 }
 0x77a   :  { %2299 = vmatprep.subr.mxu0 %v6499_v12  ;;  %2371 = vmatpush1.msra.mxu1 %v6516_v8 }
 0x77b   :  { %2300 = vmatpush1.msra.mxu0 %v6509_v6  ;;  %2514 = vmatprep.subr.mxu1 %v6144_v61 }
 0x77c   :  { %2443 = vmatprep.subr.mxu0 %v6139_v51 }
 0x7e2   :  { %v1744_v13 = vpop.f32.mrf.mxu0  ;;  %v1815_v53 = vpop.f32.mrf.mxu1 }
 0x7e3   :  { %v1820_v7 = vadd.f32 %v1744_v13, %v7973_v5  ;;  %v1822_v8 = vadd.f32 %v1815_v53, %v7976_v42  ;;  %v7981_v53 = vld [vmem:[#allocation7_spill] sm:$0xff] }
 0x7e4   :  { %v1746_v11 = vpop.f32.mrf.mxu0  ;;  %v1817_v44 = vpop.f32.mrf.mxu1 }
 0x7e5   :  { %v3786_v12 = vmul.f32 -1.442695, %v1820_v7  ;;  %v1821_v4 = vadd.f32 %v1746_v11, %v7974_v9  ;;  %v1823_v6 = vadd.f32 %v1817_v44, %v7975_v43 }
 0x7e7   :  { %3981 = vpow2.f32 %v3786_v12  ;;  %v3787_v45 = vmul.f32 -1.442695, %v1821_v4  ;;  %v3788_v41 = vmul.f32 -1.442695, %v1823_v6  ;;  %v7982_v6 = vld [vmem:[#allocation8_spill] sm:$0xff] }
 0x7e9   :  { %3983 = vpow2.f32 %v3787_v45 }
 0x7ea   :  { %3985 = vtanh.f32 %v1822_v8  ;;  %v7983_v8 = vld [vmem:[#allocation42_spill] sm:$0xff] }
 0x7eb   :  { %3987 = vpow2.f32 %v3788_v41  ;;  %v7980_v41 = vld [vmem:[#allocation39_spill] sm:$0xff] }
 0x7f4   :  { %v3982_v51 = vpop.eup %3981 }
 0x7f5   :  { %v1827_v40 = vadd.f32 1.0, %v3982_v51 }
 0x7f6   :  { %v3984_v61 = vpop.eup %3983 }
 0x7f7   :  { %3989 = vrcp.f32 %v1827_v40  ;;  %v1833_v5 = vadd.f32 1.0, %v3984_v61  ;;  %v3986_v7 = vpop.eup %3985  ;;  %v7978_v61 = vld [vmem:[#allocation40_spill] sm:$0xff]  ;;  %v7979_v40 = vld [vmem:[#allocation41_spill] sm:$0xff] }
 0x7f8   :  { %v3988_v9 = vpop.eup %3987 }
 0x7f9   :  { %3991 = vrcp.f32 %v1833_v5  ;;  %v1840_v45 = vadd.f32 1.0, %v3988_v9  ;;  %v7984_v5 = vld [vmem:[#allocation44_spill] sm:$0xff]  ;;  %v7986_v9 = vld [vmem:[#allocation43_spill] sm:$0xff] }
 0x7fb   :  { %3993 = vrcp.f32 %v1840_v45  ;;  %v7990_v45 = vld [vmem:[#allocation48_spill] sm:$0xff] }
 0x804   :  { %v3990_v11 = vpop.eup %3989 }
 0x805   :  { %v1844_v13 = vmul.f32 %v3990_v11, %v3986_v7  ;;  %v7985_v7 = vld [vmem:[#allocation45_spill] sm:$0xff]  ;;  %v7987_v11 = vld [vmem:[#allocation10_spill] sm:$0xff] }
 0x806   :  { %v3992_v12 = vpop.eup %3991 }
 0x807   :  { %v1843_v4 = vmul.f32 %v3992_v12, %v5913_v25  ;;  %v7977_v25 = vld [vmem:[#allocation38_spill] sm:$0xff] }
 0x808   :  { %v3994_v42 = vpop.eup %3993  ;;  %v7989_v12 = vld [vmem:[#allocation46_spill] sm:$0xff] }
 0x809   :  { %v1845_v43 = vadd.f32 %v1844_v13, %v1843_v4  ;;  %v7988_v13 = vld [vmem:[#allocation11_spill] sm:$0xff]  ;;  %v7991_v4 = vld [vmem:[#allocation49_spill] sm:$0xff] }
 0x80b   :  { %3995 = vtanh.f32 %v1845_v43  ;;  %v7992_v43 = vld [vmem:[#allocation47_spill] sm:$0xff] }
 0x818   :  { %v3996_v44 = vpop.eup %3995 }
 0x819   :  { %v1847_v51 = vmul.f32 %v3996_v44, %v3994_v42  ;;  %v7993_v42 = vld [vmem:[#allocation33_spill] sm:$0xff]  ;;  %v7994_v44 = vld [vmem:[#allocation31_spill] sm:$0xff] }
 0x81b   :  { %2050 = vmatmul.mubr.f32.gmra.mxu0 %v1847_v51  ;;  %2163 = vmatmul.mubr.f32.gmra.mxu1 %v1847_v51  ;;  %v7995_v51 = vld [vmem:[#allocation29_spill] sm:$0xff] }
 0x81c   :  { %2333 = vmatprep.mubr.f32.mxu0 %v7940_v29  ;;  %2404 = vmatprep.mubr.f32.mxu1 %v7940_v29 }
 0x81f   :  { %2334 = vmatmul.mubr.f32.vlgmr.msra.gmra.mxu0 %v7940_v29  ;;  %2405 = vmatmul.mubr.f32.vlgmr.msra.gmra.mxu1 %v7940_v29 }
 0x820   :  { %2444 = vmatpush1.msra.mxu0 %v6151_v22  ;;  %2515 = vmatpush1.msra.mxu1 %v6156_v52 }
 0x821   :  { %2445 = vmatprep.subr.mxu0 %v6163_v24  ;;  %2516 = vmatprep.subr.mxu1 %v6168_v48 }
 0x822   :  { %2446 = vmatpush1.msra.mxu0 %v6175_v49  ;;  %2517 = vmatpush1.msra.mxu1 %v6180_v47 }
 0x823   :  { %2447 = vmatprep.subr.mxu0 %v6187_v60  ;;  %2518 = vmatprep.subr.mxu1 %v6192_v57 }
 0x824   :  { %2448 = vmatpush1.msra.mxu0 %v6199_v28  ;;  %2519 = vmatpush1.msra.mxu1 %v6204_v37 }
 0x825   :  { %2449 = vmatprep.subr.mxu0 %v6211_v1  ;;  %2520 = vmatprep.subr.mxu1 %v6216_v58 }
 0x826   :  { %2450 = vmatpush1.msra.mxu0 %v6223_v56  ;;  %2521 = vmatpush1.msra.mxu1 %v6228_v55 }
 0x827   :  { %2451 = vmatprep.subr.mxu0 %v6235_v54  ;;  %2522 = vmatprep.subr.mxu1 %v6240_v2 }
 0x828   :  { %2452 = vmatpush1.msra.mxu0 %v6247_v19  ;;  %2523 = vmatpush1.msra.mxu1 %v6252_v59 }
 0x829   :  { %2453 = vmatprep.subr.mxu0 %v6259_v63  ;;  %2524 = vmatprep.subr.mxu1 %v6264_v10 }
 0x82a   :  { %2454 = vmatpush1.msra.mxu0 %v6271_v46  ;;  %2525 = vmatpush1.msra.mxu1 %v6276_v26 }
 0x82b   :  { %2455 = vmatprep.subr.mxu0 %v6283_v27  ;;  %2526 = vmatprep.subr.mxu1 %v6288_v30 }
 0x82c   :  { %2456 = vmatpush1.msra.mxu0 %v6295_v3  ;;  %2527 = vmatpush1.msra.mxu1 %v6300_v62 }
 0x82d   :  { %2457 = vmatprep.subr.mxu0 %v6307_v50  ;;  %2528 = vmatprep.subr.mxu1 %v6312_v14 }
 0x82e   :  { %2458 = vmatpush1.msra.mxu0 %v6319_v15  ;;  %2529 = vmatpush1.msra.mxu1 %v6324_v16 }
 0x82f   :  { %2459 = vmatprep.subr.mxu0 %v6331_v17  ;;  %2530 = vmatprep.subr.mxu1 %v6336_v18 }
 0x830   :  { %2460 = vmatpush1.msra.mxu0 %v6343_v20  ;;  %2531 = vmatpush1.msra.mxu1 %v6348_v21 }
 0x831   :  { %2461 = vmatprep.subr.mxu0 %v6355_v23  ;;  %2532 = vmatprep.subr.mxu1 %v6360_v0 }
 0x832   :  { %2462 = vmatpush1.msra.mxu0 %v6367_v31  ;;  %2533 = vmatpush1.msra.mxu1 %v6372_v32 }
 0x833   :  { %2463 = vmatprep.subr.mxu0 %v6379_v33  ;;  %2534 = vmatprep.subr.mxu1 %v6384_v34 }
 0x834   :  { %2464 = vmatpush1.msra.mxu0 %v6391_v35  ;;  %2535 = vmatpush1.msra.mxu1 %v6396_v36 }
 0x835   :  { %2465 = vmatprep.subr.mxu0 %v6403_v38  ;;  %2536 = vmatprep.subr.mxu1 %v6408_v39 }
 0x836   :  { %2466 = vmatpush1.msra.mxu0 %v7977_v25  ;;  %2537 = vmatpush1.msra.mxu1 %v7978_v61 }
 0x837   :  { %2467 = vmatprep.subr.mxu0 %v7979_v40  ;;  %2538 = vmatprep.subr.mxu1 %v7980_v41 }
 0x838   :  { %2468 = vmatpush1.msra.mxu0 %v7981_v53  ;;  %2539 = vmatpush1.msra.mxu1 %v7982_v6 }
 0x839   :  { %2469 = vmatprep.subr.mxu0 %v7983_v8  ;;  %2540 = vmatprep.subr.mxu1 %v7984_v5 }
 0x83a   :  { %2470 = vmatpush1.msra.mxu0 %v7985_v7  ;;  %2541 = vmatpush1.msra.mxu1 %v7986_v9 }
 0x83b   :  { %2471 = vmatprep.subr.mxu0 %v7987_v11  ;;  %2542 = vmatprep.subr.mxu1 %v7988_v13  ;;  %v7996_v11 = vld [vmem:[#allocation34_spill] sm:$0xff]  ;;  %v2009_v13 = vpop.f32.mrf.mxu0 }
 0x83c   :  { %2472 = vmatpush1.msra.mxu0 %v7989_v12  ;;  %2543 = vmatpush1.msra.mxu1 %v7990_v45  ;;  %v2122_v12 = vpop.f32.mrf.mxu1 }
 0x83d   :  { %2473 = vmatprep.subr.mxu0 %v7991_v4  ;;  %2544 = vmatprep.subr.mxu1 %v7992_v43  ;;  %v2011_v9 = vpop.f32.mrf.mxu0 }
 0x83e   :  { %2474 = vmatpush1.msra.mxu0 %v7993_v42  ;;  %2507 = vmatprep.mubr.f32.mxu0 %v7940_v29  ;;  %v2124_v45 = vpop.f32.mrf.mxu1 }
 0x83f   :  { %2545 = vmatpush1.msra.mxu1 %v7994_v44  ;;  %2578 = vmatprep.mubr.f32.mxu1 %v7940_v29  ;;  %v6597_v7 = vpop.f32.mrf.mxu0 }
 0x840   :  { %2617 = vmatprep.subr.mxu0 %v7995_v51  ;;  %2688 = vmatprep.subr.mxu1 %v7996_v11  ;;  %7997 = vst [vmem:[#allocation13_spill] sm:$0xff] %v6597_v7  ;;  %v6599_v4 = vpop.f32.mrf.mxu1 }
 0x841   :  { %7998 = vst [vmem:[#allocation14_spill] sm:$0xff] %v6599_v4  ;;  %v6601_v43 = vpop.f32.mrf.mxu0 }
 0x842   :  { %7999 = vst [vmem:[#allocation15_spill] sm:$0xff] %v6601_v43  ;;  %v6603_v42 = vpop.f32.mrf.mxu1 }
 0x843   :  { %8000 = vst [vmem:[#allocation16_spill] sm:$0xff] %v6603_v42  ;;  %v6605_v5 = vpop.f32.mrf.mxu0 }
 0x844   :  { %8001 = vst [vmem:[#allocation17_spill] sm:$0xff] %v6605_v5  ;;  %v6607_v44 = vpop.f32.mrf.mxu1 }
 0x845   :  { %8002 = vst [vmem:[#allocation18_spill] sm:$0xff] %v6607_v44  ;;  %v6609_v29 = vpop.f32.mrf.mxu0 }
 0x846   :  { %8003 = vst [vmem:[#allocation19_spill] sm:$0xff] %v6609_v29  ;;  %v6611_v51 = vpop.f32.mrf.mxu1 }
 0x847   :  { %8004 = vst [vmem:[#allocation20_spill] sm:$0xff] %v6611_v51  ;;  %v6613_v11 = vpop.f32.mrf.mxu0 }
 0x848   :  { %8005 = vst [vmem:[#allocation21_spill] sm:$0xff] %v6613_v11  ;;  %v6615_v8 = vpop.f32.mrf.mxu1 }
 0x849   :  { %8006 = vst [vmem:[#allocation22_spill] sm:$0xff] %v6615_v8  ;;  %v6617_v6 = vpop.f32.mrf.mxu0 }
 0x84a   :  { %8007 = vst [vmem:[#allocation23_spill] sm:$0xff] %v6617_v6  ;;  %v6619_v7 = vpop.f32.mrf.mxu1 }
 0x84b   :  { %8008 = vst [vmem:[#allocation24_spill] sm:$0xff] %v6619_v7  ;;  %v6621_v4 = vpop.f32.mrf.mxu0 }
 0x84c   :  { %8009 = vst [vmem:[#allocation25_spill] sm:$0xff] %v6621_v4  ;;  %v6623_v43 = vpop.f32.mrf.mxu1 }
 0x84d   :  { %8010 = vst [vmem:[#allocation26_spill] sm:$0xff] %v6623_v43  ;;  %v6625_v42 = vpop.f32.mrf.mxu0  ;;  %v1921_v43 = vld [vmem:[%s7551_s6] sm:$0xf] }
 0x84e   :  { %8011 = vst [vmem:[#allocation27_spill] sm:$0xff] %v6625_v42  ;;  %v6627_v5 = vpop.f32.mrf.mxu1  ;;  %v8020_v42 = vld [vmem:[#allocation30_spill] sm:$0xff] }
 0x84f   :  { %8012 = vst [vmem:[#allocation50_spill] sm:$0xff] %v6627_v5  ;;  %v6629_v44 = vpop.f32.mrf.mxu0  ;;  %v8021_v5 = vsub.s32 0, %v8020_v42 }
 0x850   :  { %8013 = vst [vmem:[#allocation52_spill] sm:$0xff] %v6629_v44  ;;  %v6631_v29 = vpop.f32.mrf.mxu1 }
 0x851   :  { %8014 = vst [vmem:[#allocation53_spill] sm:$0xff] %v6631_v29  ;;  %v6633_v51 = vpop.f32.mrf.mxu0  ;;  %v6648_v7 = vrot.slane %v1921_v43, %v8021_v5 }
 0x852   :  { %8015 = vst [vmem:[#allocation51_spill] sm:$0xff] %v6633_v51  ;;  %v6635_v11 = vpop.f32.mrf.mxu1 }
 0x853   :  { %8016 = vst [vmem:[#allocation58_spill] sm:$0xff] %v6635_v11  ;;  %v6637_v8 = vpop.f32.mrf.mxu0  ;;  %8022 = vst [vmem:[#allocation28_spill] sm:$0xff] %v6648_v7  ;;  %v8025_v11 = vsub.s32 1, %v8020_v42  ;;  %v2010_v53 = vadd.f32 %v2009_v13, %v6648_v7 }
 0x854   :  { %8017 = vst [vmem:[#allocation9_spill] sm:$0xff] %v6637_v8  ;;  %v6639_v6 = vpop.f32.mrf.mxu1 }
 0x855   :  { %8018 = vst [vmem:[#allocation12_spill] sm:$0xff] %v6639_v6  ;;  %v6644_v4 = vpop.f32.mrf.mxu0  ;;  %v6656_v51 = vrot.slane %v1921_v43, %v8025_v11  ;;  %v8029_v11 = vsub.s32 3, %v8020_v42 }
 0x856   :  { %8019 = vst [vmem:[#allocation32_spill] sm:$0xff] %v6644_v4  ;;  %v6650_v44 = vpop.f32.mrf.mxu1 }
 0x857   :  { %8023 = vst [vmem:[#allocation54_spill] sm:$0xff] %v6650_v44  ;;  %v2012_v4 = vadd.f32 %v2011_v9, %v6656_v51  ;;  %v6668_v38 = vrot.slane %v1921_v43, %v8029_v11 }
 0x859   :  { %8030 = vst [vmem:[#allocation59_spill] sm:$0xff] %v6668_v38  ;;  %v2125_v13 = vadd.f32 %v2124_v45, %v6668_v38 }
 0x8db   :  { %v6652_v29 = vpop.f32.mrf.mxu0  ;;  %v6658_v8 = vpop.f32.mrf.mxu1 }
 0x8dc   :  { %8024 = vst [vmem:[#allocation56_spill] sm:$0xff] %v6652_v29  ;;  %8026 = vst [vmem:[#allocation57_spill] sm:$0xff] %v6658_v8 }
 0x8dd   :  { %v6660_v6 = vpop.f32.mrf.mxu0  ;;  %v6664_v40 = vpop.f32.mrf.mxu1 }
 0x8de   :  { %8027 = vst [vmem:[#allocation55_spill] sm:$0xff] %v6660_v6  ;;  %8028 = vst [vmem:[#allocation30_spill] sm:$0xff] %v6664_v40  ;;  %v8031_v6 = vsub.s32 2, %v8020_v42 }
 0x8df   :  { %v2335_v41 = vpop.f32.mrf.mxu0  ;;  %v2406_v29 = vpop.f32.mrf.mxu1 }
 0x8e0   :  { %v2411_v5 = vadd.f32 %v2335_v41, %v2010_v53  ;;  %v6673_v9 = vrot.slane %v1921_v43, %v8031_v6 }
 0x8e1   :  { %v2337_v61 = vpop.f32.mrf.mxu0  ;;  %v2408_v8 = vpop.f32.mrf.mxu1 }
 0x8e2   :  { %v3789_v44 = vmul.f32 -1.442695, %v2411_v5  ;;  %v2412_v25 = vadd.f32 %v2337_v61, %v2012_v4  ;;  %v2414_v40 = vadd.f32 %v2408_v8, %v2125_v13  ;;  %v2123_v41 = vadd.f32 %v2122_v12, %v6673_v9  ;;  %v8033_v13 = vld [vmem:[#allocation35_spill] sm:$0xff] }
 0x8e4   :  { %3997 = vpow2.f32 %v3789_v44  ;;  %v3790_v39 = vmul.f32 -1.442695, %v2412_v25  ;;  %v3791_v53 = vmul.f32 -1.442695, %v2414_v40  ;;  %v2413_v4 = vadd.f32 %v2406_v29, %v2123_v41  ;;  %v8034_v41 = vld [vmem:[#allocation38_spill] sm:$0xff] }
 0x8e6   :  { %3999 = vpow2.f32 %v3790_v39 }
 0x8e7   :  { %4001 = vpow2.f32 %v3791_v53  ;;  %v8035_v53 = vld [vmem:[#allocation40_spill] sm:$0xff] }
 0x8f1   :  { %v3998_v61 = vpop.eup %3997 }
 0x8f2   :  { %v2418_v44 = vadd.f32 1.0, %v3998_v61  ;;  %v8036_v61 = vld [vmem:[#allocation41_spill] sm:$0xff] }
 0x8f3   :  { %v4000_v25 = vpop.eup %3999 }
 0x8f4   :  { %4003 = vrcp.f32 %v2418_v44  ;;  %v2424_v5 = vadd.f32 1.0, %v4000_v25  ;;  %v4002_v39 = vpop.eup %4001  ;;  %v8038_v44 = vld [vmem:[#allocation7_spill] sm:$0xff]  ;;  %v8039_v25 = vld [vmem:[#allocation8_spill] sm:$0xff] }
 0x8f5   :  { %4005 = vtanh.f32 %v2413_v4  ;;  %v2431_v42 = vadd.f32 1.0, %v4002_v39  ;;  %v8037_v4 = vld [vmem:[#allocation39_spill] sm:$0xff]  ;;  %v8041_v39 = vld [vmem:[#allocation44_spill] sm:$0xff] }
 0x8f6   :  { %4007 = vrcp.f32 %v2424_v5  ;;  %v8040_v5 = vld [vmem:[#allocation42_spill] sm:$0xff] }
 0x8f7   :  { %4009 = vrcp.f32 %v2431_v42  ;;  %v8044_v42 = vld [vmem:[#allocation10_spill] sm:$0xff] }
 0x901   :  { %v4004_v11 = vpop.eup %4003 }
 0x902   :  { %v4006_v45 = vpop.eup %4005 }
 0x903   :  { %v4008_v38 = vpop.eup %4007  ;;  %v2435_v43 = vmul.f32 %v4006_v45, %v4004_v11  ;;  %v8042_v11 = vld [vmem:[#allocation45_spill] sm:$0xff]  ;;  %v8043_v45 = vld [vmem:[#allocation43_spill] sm:$0xff] }
 0x904   :  { %v2434_v6 = vmul.f32 0.0, %v4008_v38  ;;  %v4010_v29 = vpop.eup %4009  ;;  %v8032_v38 = vld [vmem:[#allocation37_spill] sm:$0xff] }
 0x906   :  { %v6676_v8 = vadd.f32 %v2435_v43, %v2434_v6  ;;  %v8045_v6 = vld [vmem:[#allocation11_spill] sm:$0xff]  ;;  %v8046_v43 = vld [vmem:[#allocation46_spill] sm:$0xff] }
 0x908   :  { %4011 = vtanh.f32 %v6676_v8 }
 0x915   :  { %v4012_v40 = vpop.eup %4011 }
 0x916   :  { %v2438_v12 = vmul.f32 %v4012_v40, %v4010_v29  ;;  %v8047_v29 = vld [vmem:[#allocation48_spill] sm:$0xff]  ;;  %v8048_v40 = vld [vmem:[#allocation49_spill] sm:$0xff] }
 0x918   :  { %2508 = vmatmul.mubr.f32.vlgmr.msra.gmra.mxu0 %v2438_v12  ;;  %2579 = vmatmul.mubr.f32.vlgmr.msra.gmra.mxu1 %v2438_v12  ;;  %v8049_v12 = vld [vmem:[#allocation47_spill] sm:$0xff] }
 0x919   :  { %2618 = vmatpush1.msra.mxu0 %v6151_v22  ;;  %2689 = vmatpush1.msra.mxu1 %v6156_v52 }
 0x91a   :  { %2619 = vmatprep.subr.mxu0 %v6163_v24  ;;  %2690 = vmatprep.subr.mxu1 %v6168_v48 }
 0x91b   :  { %2620 = vmatpush1.msra.mxu0 %v6175_v49  ;;  %2691 = vmatpush1.msra.mxu1 %v6180_v47 }
 0x91c   :  { %2621 = vmatprep.subr.mxu0 %v6187_v60  ;;  %2692 = vmatprep.subr.mxu1 %v6192_v57 }
 0x91d   :  { %2622 = vmatpush1.msra.mxu0 %v6199_v28  ;;  %2693 = vmatpush1.msra.mxu1 %v6204_v37 }
 0x91e   :  { %2623 = vmatprep.subr.mxu0 %v6211_v1  ;;  %2694 = vmatprep.subr.mxu1 %v6216_v58 }
 0x91f   :  { %2624 = vmatpush1.msra.mxu0 %v6223_v56  ;;  %2695 = vmatpush1.msra.mxu1 %v6228_v55 }
 0x920   :  { %2625 = vmatprep.subr.mxu0 %v6235_v54  ;;  %2696 = vmatprep.subr.mxu1 %v6240_v2 }
 0x921   :  { %2626 = vmatpush1.msra.mxu0 %v6247_v19  ;;  %2697 = vmatpush1.msra.mxu1 %v6252_v59 }
 0x922   :  { %2627 = vmatprep.subr.mxu0 %v6259_v63  ;;  %2698 = vmatprep.subr.mxu1 %v6264_v10 }
 0x923   :  { %2628 = vmatpush1.msra.mxu0 %v6271_v46  ;;  %2699 = vmatpush1.msra.mxu1 %v6276_v26 }
 0x924   :  { %2629 = vmatprep.subr.mxu0 %v6283_v27  ;;  %2700 = vmatprep.subr.mxu1 %v6288_v30 }
 0x925   :  { %2630 = vmatpush1.msra.mxu0 %v6295_v3  ;;  %2701 = vmatpush1.msra.mxu1 %v6300_v62 }
 0x926   :  { %2631 = vmatprep.subr.mxu0 %v6307_v50  ;;  %2702 = vmatprep.subr.mxu1 %v6312_v14 }
 0x927   :  { %2632 = vmatpush1.msra.mxu0 %v6319_v15  ;;  %2703 = vmatpush1.msra.mxu1 %v6324_v16 }
 0x928   :  { %2633 = vmatprep.subr.mxu0 %v6331_v17  ;;  %2704 = vmatprep.subr.mxu1 %v6336_v18 }
 0x929   :  { %2634 = vmatpush1.msra.mxu0 %v6343_v20  ;;  %2705 = vmatpush1.msra.mxu1 %v6348_v21 }
 0x92a   :  { %2635 = vmatprep.subr.mxu0 %v6355_v23  ;;  %2706 = vmatprep.subr.mxu1 %v6360_v0 }
 0x92b   :  { %2636 = vmatpush1.msra.mxu0 %v6367_v31  ;;  %2707 = vmatpush1.msra.mxu1 %v6372_v32 }
 0x92c   :  { %2637 = vmatprep.subr.mxu0 %v6379_v33  ;;  %2708 = vmatprep.subr.mxu1 %v6384_v34 }
 0x92d   :  { %2638 = vmatpush1.msra.mxu0 %v6391_v35  ;;  %2709 = vmatpush1.msra.mxu1 %v6396_v36 }
 0x92e   :  { %2639 = vmatprep.subr.mxu0 %v8032_v38  ;;  %2710 = vmatprep.subr.mxu1 %v8033_v13  ;;  %v8059_v13 = vld [vmem:[#allocation14_spill] sm:$0xff] }
 0x92f   :  { %2640 = vmatpush1.msra.mxu0 %v8034_v41  ;;  %2711 = vmatpush1.msra.mxu1 %v8035_v53  ;;  %v8057_v53 = vld [vmem:[#allocation59_spill] sm:$0xff] }
 0x930   :  { %2641 = vmatprep.subr.mxu0 %v8036_v61  ;;  %2712 = vmatprep.subr.mxu1 %v8037_v4 }
 0x931   :  { %2642 = vmatpush1.msra.mxu0 %v8038_v44  ;;  %2713 = vmatpush1.msra.mxu1 %v8039_v25  ;;  %v8050_v25 = vld [vmem:[#allocation33_spill] sm:$0xff] }
 0x932   :  { %2643 = vmatprep.subr.mxu0 %v8040_v5  ;;  %2714 = vmatprep.subr.mxu1 %v8041_v39  ;;  %v8051_v5 = vmov 0.0   ;;  %v8052_v39 = vld [vmem:[#allocation31_spill] sm:$0xff] }
 0x933   :  { %2644 = vmatpush1.msra.mxu0 %v8042_v11  ;;  %2715 = vmatpush1.msra.mxu1 %v8043_v45  ;;  %v8053_v45 = vld [vmem:[#allocation29_spill] sm:$0xff] }
 0x934   :  { %2645 = vmatprep.subr.mxu0 %v8044_v42  ;;  %2716 = vmatprep.subr.mxu1 %v8045_v6  ;;  %v8054_v42 = vld [vmem:[#allocation34_spill] sm:$0xff] }
 0x935   :  { %2646 = vmatpush1.msra.mxu0 %v8046_v43  ;;  %2717 = vmatpush1.msra.mxu1 %v8047_v29  ;;  %v8055_v43 = vld [vmem:[#allocation13_spill] sm:$0xff] }
 0x936   :  { %2647 = vmatprep.subr.mxu0 %v8048_v40  ;;  %2718 = vmatprep.subr.mxu1 %v8049_v12  ;;  %v2016_v6 = vadd.f32 %v8055_v43, %v6648_v7  ;;  %v8056_v40 = vld [vmem:[#allocation15_spill] sm:$0xff]  ;;  %v2129_v43 = vadd.f32 %v8059_v13, %v6673_v9 }
 0x937   :  { %2648 = vmatpush1.msra.mxu0 %v8050_v25  ;;  %2681 = vmatprep.mubr.f32.mxu0 %v8051_v5  ;;  %v2018_v11 = vadd.f32 %v8056_v40, %v6656_v51 }
 0x938   :  { %2719 = vmatpush1.msra.mxu1 %v8052_v39  ;;  %2752 = vmatprep.mubr.f32.mxu1 %v8051_v5 }
 0x939   :  { %2791 = vmatprep.subr.mxu0 %v8053_v45  ;;  %2862 = vmatprep.subr.mxu1 %v8054_v42  ;;  %v8058_v45 = vld [vmem:[#allocation16_spill] sm:$0xff] }
 0x93a   :  { %v2131_v41 = vadd.f32 %v8058_v45, %v8057_v53 }
 0x9d8   :  { %v2509_v29 = vpop.f32.mrf.mxu0  ;;  %v2580_v61 = vpop.f32.mrf.mxu1 }
 0x9d9   :  { %v2585_v12 = vadd.f32 %v2509_v29, %v2016_v6  ;;  %v2587_v7 = vadd.f32 %v2580_v61, %v2129_v43  ;;  %v8072_v61 = vld [vmem:[#allocation43_spill] sm:$0xff]  ;;  %v8075_v43 = vld [vmem:[#allocation46_spill] sm:$0xff] }
 0x9da   :  { %v2511_v44 = vpop.f32.mrf.mxu0  ;;  %v2582_v5 = vpop.f32.mrf.mxu1 }
 0x9db   :  { %v3792_v25 = vmul.f32 -1.442695, %v2585_v12  ;;  %v2586_v4 = vadd.f32 %v2511_v44, %v2018_v11  ;;  %v2588_v42 = vadd.f32 %v2582_v5, %v2131_v41  ;;  %v8074_v12 = vld [vmem:[#allocation11_spill] sm:$0xff] }
 0x9dd   :  { %4013 = vpow2.f32 %v3792_v25  ;;  %v3793_v39 = vmul.f32 -1.442695, %v2586_v4  ;;  %v3794_v38 = vmul.f32 -1.442695, %v2588_v42  ;;  %v8073_v42 = vld [vmem:[#allocation10_spill] sm:$0xff] }
 0x9df   :  { %4015 = vpow2.f32 %v3793_v39 }
 0x9e0   :  { %4017 = vtanh.f32 %v2587_v7 }
 0x9e1   :  { %4019 = vpow2.f32 %v3794_v38  ;;  %v8071_v38 = vld [vmem:[#allocation45_spill] sm:$0xff] }
 0x9ea   :  { %v4014_v36 = vpop.eup %4013 }
 0x9eb   :  { %v2592_v40 = vadd.f32 1.0, %v4014_v36 }
 0x9ec   :  { %v4016_v6 = vpop.eup %4015 }
 0x9ed   :  { %4021 = vrcp.f32 %v2592_v40  ;;  %v2598_v44 = vadd.f32 1.0, %v4016_v6  ;;  %v4018_v4 = vpop.eup %4017  ;;  %v8076_v40 = vld [vmem:[#allocation48_spill] sm:$0xff]  ;;  %v8077_v6 = vld [vmem:[#allocation49_spill] sm:$0xff] }
 0x9ee   :  { %v4020_v25 = vpop.eup %4019 }
 0x9ef   :  { %4023 = vrcp.f32 %v2598_v44  ;;  %v2605_v45 = vadd.f32 1.0, %v4020_v25  ;;  %v8078_v44 = vld [vmem:[#allocation47_spill] sm:$0xff]  ;;  %v8080_v25 = vmov 0.0  }
 0x9f1   :  { %4025 = vrcp.f32 %v2605_v45  ;;  %v8084_v45 = vld [vmem:[#allocation28_spill] sm:$0xff] }
 0x9fa   :  { %v4022_v39 = vpop.eup %4021 }
 0x9fb   :  { %v2609_v11 = vmul.f32 %v4022_v39, %v4018_v4  ;;  %v8079_v4 = vld [vmem:[#allocation33_spill] sm:$0xff]  ;;  %v8081_v39 = vld [vmem:[#allocation31_spill] sm:$0xff] }
 0x9fc   :  { %v4024_v29 = vpop.eup %4023 }
 0x9fd   :  { %v2608_v41 = vmul.f32 %v4024_v29, %v6676_v8  ;;  %v8070_v8 = vld [vmem:[#allocation44_spill] sm:$0xff]  ;;  %v8083_v29 = vld [vmem:[#allocation34_spill] sm:$0xff] }
 0x9fe   :  { %v4026_v36 = vpop.eup %4025 }
 0x9ff   :  { %v6754_v5 = vadd.f32 %v2609_v11, %v2608_v41  ;;  %v8082_v11 = vld [vmem:[#allocation29_spill] sm:$0xff] }
 0xa00   :  { %v8085_v41 = vld [vmem:[#allocation17_spill] sm:$0xff] }
 0xa01   :  { %4027 = vtanh.f32 %v6754_v5 }
 0xa0e   :  { %v4028_v7 = vpop.eup %4027 }
 0xa0f   :  { %v2612_v13 = vmul.f32 %v4028_v7, %v4026_v36  ;;  %v2022_v36 = vadd.f32 %v8085_v41, %v8084_v45 }
 0xa11   :  { %2682 = vmatmul.mubr.f32.vlgmr.msra.gmra.mxu0 %v2612_v13  ;;  %2753 = vmatmul.mubr.f32.vlgmr.msra.gmra.mxu1 %v2612_v13  ;;  %v8086_v13 = vld [vmem:[#allocation19_spill] sm:$0xff] }
 0xa12   :  { %2792 = vmatpush1.msra.mxu0 %v6151_v22  ;;  %2863 = vmatpush1.msra.mxu1 %v6156_v52  ;;  %v8060_v22 = vld [vmem:[#allocation36_spill] sm:$0xff]  ;;  %v8061_v52 = vld [vmem:[#allocation37_spill] sm:$0xff] }
 0xa13   :  { %2793 = vmatprep.subr.mxu0 %v6163_v24  ;;  %2864 = vmatprep.subr.mxu1 %v6168_v48  ;;  %v8062_v24 = vld [vmem:[#allocation35_spill] sm:$0xff]  ;;  %v8063_v48 = vld [vmem:[#allocation38_spill] sm:$0xff] }
 0xa14   :  { %2794 = vmatpush1.msra.mxu0 %v6175_v49  ;;  %2865 = vmatpush1.msra.mxu1 %v6180_v47  ;;  %v8064_v49 = vld [vmem:[#allocation40_spill] sm:$0xff]  ;;  %v8065_v47 = vld [vmem:[#allocation41_spill] sm:$0xff] }
 0xa15   :  { %2795 = vmatprep.subr.mxu0 %v6187_v60  ;;  %2866 = vmatprep.subr.mxu1 %v6192_v57  ;;  %v8066_v60 = vld [vmem:[#allocation39_spill] sm:$0xff] }
 0xa16   :  { %2796 = vmatpush1.msra.mxu0 %v6199_v28  ;;  %2867 = vmatpush1.msra.mxu1 %v6204_v37  ;;  %v8067_v57 = vld [vmem:[#allocation7_spill] sm:$0xff]  ;;  %v8068_v28 = vld [vmem:[#allocation8_spill] sm:$0xff]  ;;  %v8069_v37 = vld [vmem:[#allocation42_spill] sm:$0xff] }
 0xa17   :  { %2797 = vmatprep.subr.mxu0 %v6211_v1  ;;  %2868 = vmatprep.subr.mxu1 %v6216_v58 }
 0xa18   :  { %2798 = vmatpush1.msra.mxu0 %v6223_v56  ;;  %2869 = vmatpush1.msra.mxu1 %v6228_v55 }
 0xa19   :  { %2799 = vmatprep.subr.mxu0 %v6235_v54  ;;  %2870 = vmatprep.subr.mxu1 %v6240_v2 }
 0xa1a   :  { %2800 = vmatpush1.msra.mxu0 %v6247_v19  ;;  %2871 = vmatpush1.msra.mxu1 %v6252_v59 }
 0xa1b   :  { %2801 = vmatprep.subr.mxu0 %v6259_v63  ;;  %2872 = vmatprep.subr.mxu1 %v6264_v10 }
 0xa1c   :  { %2802 = vmatpush1.msra.mxu0 %v6271_v46  ;;  %2873 = vmatpush1.msra.mxu1 %v6276_v26 }
 0xa1d   :  { %2803 = vmatprep.subr.mxu0 %v6283_v27  ;;  %2874 = vmatprep.subr.mxu1 %v6288_v30 }
 0xa1e   :  { %2804 = vmatpush1.msra.mxu0 %v6295_v3  ;;  %2875 = vmatpush1.msra.mxu1 %v6300_v62 }
 0xa1f   :  { %2805 = vmatprep.subr.mxu0 %v6307_v50  ;;  %2876 = vmatprep.subr.mxu1 %v6312_v14 }
 0xa20   :  { %2806 = vmatpush1.msra.mxu0 %v6319_v15  ;;  %2877 = vmatpush1.msra.mxu1 %v6324_v16 }
 0xa21   :  { %2807 = vmatprep.subr.mxu0 %v6331_v17  ;;  %2878 = vmatprep.subr.mxu1 %v6336_v18 }
 0xa22   :  { %2808 = vmatpush1.msra.mxu0 %v6343_v20  ;;  %2879 = vmatpush1.msra.mxu1 %v6348_v21 }
 0xa23   :  { %2809 = vmatprep.subr.mxu0 %v6355_v23  ;;  %2880 = vmatprep.subr.mxu1 %v6360_v0 }
 0xa24   :  { %2810 = vmatpush1.msra.mxu0 %v6367_v31  ;;  %2881 = vmatpush1.msra.mxu1 %v6372_v32 }
 0xa25   :  { %2811 = vmatprep.subr.mxu0 %v6379_v33  ;;  %2882 = vmatprep.subr.mxu1 %v6384_v34 }
 0xa26   :  { %2812 = vmatpush1.msra.mxu0 %v6391_v35  ;;  %2883 = vmatpush1.msra.mxu1 %v8060_v22 }
 0xa27   :  { %2813 = vmatprep.subr.mxu0 %v8061_v52  ;;  %2884 = vmatprep.subr.mxu1 %v8062_v24 }
 0xa28   :  { %2814 = vmatpush1.msra.mxu0 %v8063_v48  ;;  %2885 = vmatpush1.msra.mxu1 %v8064_v49 }
 0xa29   :  { %2815 = vmatprep.subr.mxu0 %v8065_v47  ;;  %2886 = vmatprep.subr.mxu1 %v8066_v60 }
 0xa2a   :  { %2816 = vmatpush1.msra.mxu0 %v8067_v57  ;;  %2887 = vmatpush1.msra.mxu1 %v8068_v28 }
 0xa2b   :  { %2817 = vmatprep.subr.mxu0 %v8069_v37  ;;  %2888 = vmatprep.subr.mxu1 %v8070_v8 }
 0xa2c   :  { %2818 = vmatpush1.msra.mxu0 %v8071_v38  ;;  %2889 = vmatpush1.msra.mxu1 %v8072_v61  ;;  %v8088_v61 = vld [vmem:[#allocation18_spill] sm:$0xff] }
 0xa2d   :  { %2819 = vmatprep.subr.mxu0 %v8073_v42  ;;  %2890 = vmatprep.subr.mxu1 %v8074_v12  ;;  %v2135_v41 = vadd.f32 %v8088_v61, %v6673_v9 }
 0xa2e   :  { %2820 = vmatpush1.msra.mxu0 %v8075_v43  ;;  %2891 = vmatpush1.msra.mxu1 %v8076_v40 }
 0xa2f   :  { %2821 = vmatprep.subr.mxu0 %v8077_v6  ;;  %2892 = vmatprep.subr.mxu1 %v8078_v44  ;;  %v2024_v6 = vadd.f32 %v8086_v13, %v6656_v51 }
 0xa30   :  { %2822 = vmatpush1.msra.mxu0 %v8079_v4  ;;  %2855 = vmatprep.mubr.f32.mxu0 %v8080_v25 }
 0xa31   :  { %2893 = vmatpush1.msra.mxu1 %v8081_v39  ;;  %2926 = vmatprep.mubr.f32.mxu1 %v8080_v25 }
 0xa32   :  { %2965 = vmatprep.subr.mxu0 %v8082_v11  ;;  %3036 = vmatprep.subr.mxu1 %v8083_v29  ;;  %v8087_v11 = vld [vmem:[#allocation20_spill] sm:$0xff] }
 0xa33   :  { %v2137_v42 = vadd.f32 %v8087_v11, %v8057_v53  ;;  %v6856_v11 = vld [vmem:[%s7550_s5 + $0x1d8] sm:$0xff] }
 0xad1   :  { %v2683_v7 = vpop.f32.mrf.mxu0  ;;  %v2754_v12 = vpop.f32.mrf.mxu1 }
 0xad2   :  { %v2759_v44 = vadd.f32 %v2683_v7, %v2022_v36  ;;  %v2761_v45 = vadd.f32 %v2754_v12, %v2135_v41  ;;  %v6868_v41 = vld [vmem:[%s7550_s5 + $0x1d0] sm:$0xff] }
 0xad3   :  { %v2685_v40 = vpop.f32.mrf.mxu0  ;;  %v2756_v25 = vpop.f32.mrf.mxu1 }
 0xad4   :  { %v3795_v4 = vmul.f32 -1.442695, %v2759_v44  ;;  %v2760_v43 = vadd.f32 %v2685_v40, %v2024_v6  ;;  %v2762_v29 = vadd.f32 %v2756_v25, %v2137_v42 }
 0xad6   :  { %4029 = vpow2.f32 %v3795_v4  ;;  %v3796_v39 = vmul.f32 -1.442695, %v2760_v43  ;;  %v3797_v38 = vmul.f32 -1.442695, %v2762_v29  ;;  %v6862_v29 = vld [vmem:[%s7550_s5 + $0x1c0] sm:$0xff] }
 0xad8   :  { %4031 = vpow2.f32 %v3796_v39 }
 0xad9   :  { %4033 = vtanh.f32 %v2761_v45  ;;  %v6850_v45 = vld [vmem:[%s7550_s5 + $0x1c8] sm:$0xff] }
 0xada   :  { %4035 = vpow2.f32 %v3797_v38  ;;  %v6838_v38 = vld [vmem:[%s7550_s5 + $0x1e0] sm:$0xff] }
 0xae3   :  { %v4030_v8 = vpop.eup %4029 }
 0xae4   :  { %v2766_v13 = vadd.f32 1.0, %v4030_v8 }
 0xae5   :  { %v4032_v36 = vpop.eup %4031 }
 0xae6   :  { %4037 = vrcp.f32 %v2766_v13  ;;  %v2772_v40 = vadd.f32 1.0, %v4032_v36  ;;  %v4034_v43 = vpop.eup %4033  ;;  %v6874_v13 = vld [vmem:[%s7550_s5 + $0x1a8] sm:$0xff]  ;;  %v6880_v36 = vld [vmem:[%s7550_s5 + $0x1b8] sm:$0xff] }
 0xae7   :  { %v4036_v6 = vpop.eup %4035 }
 0xae8   :  { %4039 = vrcp.f32 %v2772_v40  ;;  %v2779_v7 = vadd.f32 1.0, %v4036_v6  ;;  %v6886_v40 = vld [vmem:[%s7550_s5 + $0x1a0] sm:$0xff] }
 0xaea   :  { %4041 = vrcp.f32 %v2779_v7 }
 0xaf3   :  { %v4038_v44 = vpop.eup %4037 }
 0xaf4   :  { %v2783_v4 = vmul.f32 %v4038_v44, %v4034_v43  ;;  %v6892_v43 = vld [vmem:[%s7550_s5 + $0x1b0] sm:$0xff] }
 0xaf5   :  { %v4040_v39 = vpop.eup %4039 }
 0xaf6   :  { %v2782_v42 = vmul.f32 %v4040_v39, %v6754_v5  ;;  %v6844_v5 = vld [vmem:[%s7550_s5 + $0x1f0] sm:$0xff] }
 0xaf7   :  { %v4042_v8 = vpop.eup %4041 }
 0xaf8   :  { %v6832_v25 = vadd.f32 %v2783_v4, %v2782_v42 }
 0xafa   :  { %4043 = vtanh.f32 %v6832_v25 }
 0xb07   :  { %v4044_v61 = vpop.eup %4043 }
 0xb08   :  { %v2786_v12 = vmul.f32 %v4044_v61, %v4042_v8 }
 0xb0a   :  { %2856 = vmatmul.mubr.f32.vlgmr.msra.gmra.mxu0 %v2786_v12  ;;  %2927 = vmatmul.mubr.f32.vlgmr.msra.gmra.mxu1 %v2786_v12  ;;  %v6992_v12 = vld [vmem:[%s7550_s5 + $0x198] sm:$0xff] }
 0xb0b   :  { %2966 = vmatpush1.msra.mxu0 %v6838_v38  ;;  %3037 = vmatpush1.msra.mxu1 %v6844_v5 }
 0xb0c   :  { %2967 = vmatprep.subr.mxu0 %v6850_v45  ;;  %3038 = vmatprep.subr.mxu1 %v6856_v11 }
 0xb0d   :  { %2968 = vmatpush1.msra.mxu0 %v6862_v29  ;;  %3039 = vmatpush1.msra.mxu1 %v6868_v41 }
 0xb0e   :  { %2969 = vmatprep.subr.mxu0 %v6874_v13  ;;  %3040 = vmatprep.subr.mxu1 %v6880_v36 }
 0xb0f   :  { %2970 = vmatpush1.msra.mxu0 %v6886_v40  ;;  %3041 = vmatpush1.msra.mxu1 %v6892_v43 }
 0xb10   :  { %2971 = vmatprep.subr.mxu0 %v6211_v1  ;;  %3042 = vmatprep.subr.mxu1 %v6216_v58  ;;  %v8089_v1 = vld [vmem:[#allocation44_spill] sm:$0xff]  ;;  %v8090_v58 = vld [vmem:[#allocation45_spill] sm:$0xff] }
 0xb11   :  { %2972 = vmatpush1.msra.mxu0 %v6223_v56  ;;  %3043 = vmatpush1.msra.mxu1 %v6228_v55  ;;  %v8091_v56 = vld [vmem:[#allocation43_spill] sm:$0xff]  ;;  %v8092_v55 = vld [vmem:[#allocation10_spill] sm:$0xff] }
 0xb12   :  { %2973 = vmatprep.subr.mxu0 %v6235_v54  ;;  %3044 = vmatprep.subr.mxu1 %v6240_v2  ;;  %v8093_v54 = vld [vmem:[#allocation11_spill] sm:$0xff]  ;;  %v8094_v2 = vld [vmem:[#allocation46_spill] sm:$0xff] }
 0xb13   :  { %2974 = vmatpush1.msra.mxu0 %v6247_v19  ;;  %3045 = vmatpush1.msra.mxu1 %v6252_v59  ;;  %v8095_v19 = vld [vmem:[#allocation48_spill] sm:$0xff]  ;;  %v8096_v59 = vld [vmem:[#allocation49_spill] sm:$0xff] }
 0xb14   :  { %2975 = vmatprep.subr.mxu0 %v6259_v63  ;;  %3046 = vmatprep.subr.mxu1 %v6264_v10  ;;  %v8097_v63 = vld [vmem:[#allocation47_spill] sm:$0xff]  ;;  %v8098_v10 = vld [vmem:[#allocation33_spill] sm:$0xff] }
 0xb15   :  { %2976 = vmatpush1.msra.mxu0 %v6271_v46  ;;  %3047 = vmatpush1.msra.mxu1 %v6276_v26  ;;  %v8099_v46 = vmov 0.0   ;;  %v8100_v26 = vld [vmem:[#allocation31_spill] sm:$0xff] }
 0xb16   :  { %2977 = vmatprep.subr.mxu0 %v6283_v27  ;;  %3048 = vmatprep.subr.mxu1 %v6288_v30  ;;  %v6952_v27 = vld [vmem:[%s7550_s5 + $0x1e8] sm:$0xff]  ;;  %v6958_v30 = vld [vmem:[%s7550_s5 + $0x1f8] sm:$0xff] }
 0xb17   :  { %2978 = vmatpush1.msra.mxu0 %v6295_v3  ;;  %3049 = vmatpush1.msra.mxu1 %v6300_v62  ;;  %8101 = vst [vmem:[#allocation13_spill] sm:$0xff] %v6952_v27  ;;  %8102 = vst [vmem:[#allocation15_spill] sm:$0xff] %v6958_v30  ;;  %v8103_v3 = vld [vmem:[#allocation28_spill] sm:$0xff]  ;;  %v8104_v62 = vld [vmem:[#allocation21_spill] sm:$0xff] }
 0xb18   :  { %2979 = vmatprep.subr.mxu0 %v6307_v50  ;;  %3050 = vmatprep.subr.mxu1 %v6312_v14  ;;  %v2028_v50 = vadd.f32 %v8104_v62, %v8103_v3  ;;  %v7064_v62 = vld [vmem:[%s7550_s5 + $0x138] sm:$0xff] }
 0xb19   :  { %2980 = vmatpush1.msra.mxu0 %v6319_v15  ;;  %3051 = vmatpush1.msra.mxu1 %v6324_v16  ;;  %v8105_v15 = vld [vmem:[#allocation23_spill] sm:$0xff] }
 0xb1a   :  { %2981 = vmatprep.subr.mxu0 %v6331_v17  ;;  %3052 = vmatprep.subr.mxu1 %v6336_v18  ;;  %v2030_v16 = vadd.f32 %v8105_v15, %v6656_v51  ;;  %v7082_v15 = vld [vmem:[%s7550_s5 + $0x108] sm:$0xff] }
 0xb1b   :  { %2982 = vmatpush1.msra.mxu0 %v6343_v20  ;;  %3053 = vmatpush1.msra.mxu1 %v6348_v21 }
 0xb1c   :  { %2983 = vmatprep.subr.mxu0 %v6355_v23  ;;  %3054 = vmatprep.subr.mxu1 %v6360_v0 }
 0xb1d   :  { %2984 = vmatpush1.msra.mxu0 %v6367_v31  ;;  %3055 = vmatpush1.msra.mxu1 %v6372_v32  ;;  %v8106_v32 = vld [vmem:[#allocation24_spill] sm:$0xff] }
 0xb1e   :  { %2985 = vmatprep.subr.mxu0 %v6379_v33  ;;  %3056 = vmatprep.subr.mxu1 %v6384_v34  ;;  %v2143_v33 = vadd.f32 %v8106_v32, %v8057_v53  ;;  %v7136_v32 = vld [vmem:[%s7550_s5 + $0xd8] sm:$0xff] }
 0xb1f   :  { %2986 = vmatpush1.msra.mxu0 %v6391_v35  ;;  %3057 = vmatpush1.msra.mxu1 %v8060_v22  ;;  %v8107_v35 = vld [vmem:[#allocation22_spill] sm:$0xff] }
 0xb20   :  { %2987 = vmatprep.subr.mxu0 %v8061_v52  ;;  %3058 = vmatprep.subr.mxu1 %v8062_v24  ;;  %v2141_v22 = vadd.f32 %v8107_v35, %v6673_v9  ;;  %v7154_v35 = vld [vmem:[%s7550_s5 + $0xa8] sm:$0xff] }
 0xb21   :  { %2988 = vmatpush1.msra.mxu0 %v8063_v48  ;;  %3059 = vmatpush1.msra.mxu1 %v8064_v49 }
 0xb22   :  { %2989 = vmatprep.subr.mxu0 %v8065_v47  ;;  %3060 = vmatprep.subr.mxu1 %v8066_v60 }
 0xb23   :  { %2990 = vmatpush1.msra.mxu0 %v8067_v57  ;;  %3061 = vmatpush1.msra.mxu1 %v8068_v28 }
 0xb24   :  { %2991 = vmatprep.subr.mxu0 %v8069_v37  ;;  %3062 = vmatprep.subr.mxu1 %v8089_v1  ;;  %v6998_v1 = vld [vmem:[%s7550_s5 + $0x180] sm:$0xff] }
 0xb25   :  { %2992 = vmatpush1.msra.mxu0 %v8090_v58  ;;  %3063 = vmatpush1.msra.mxu1 %v8091_v56  ;;  %v7004_v58 = vld [vmem:[%s7550_s5 + $0x190] sm:$0xff]  ;;  %v7010_v56 = vld [vmem:[%s7550_s5 + $0x168] sm:$0xff] }
 0xb26   :  { %2993 = vmatprep.subr.mxu0 %v8092_v55  ;;  %3064 = vmatprep.subr.mxu1 %v8093_v54  ;;  %v7016_v55 = vld [vmem:[%s7550_s5 + $0x178] sm:$0xff]  ;;  %v7022_v54 = vld [vmem:[%s7550_s5 + $0x160] sm:$0xff] }
 0xb27   :  { %2994 = vmatpush1.msra.mxu0 %v8094_v2  ;;  %3065 = vmatpush1.msra.mxu1 %v8095_v19  ;;  %v7028_v2 = vld [vmem:[%s7550_s5 + $0x170] sm:$0xff]  ;;  %v7034_v19 = vld [vmem:[%s7550_s5 + $0x148] sm:$0xff] }
 0xb28   :  { %2995 = vmatprep.subr.mxu0 %v8096_v59  ;;  %3066 = vmatprep.subr.mxu1 %v8097_v63  ;;  %v7040_v59 = vld [vmem:[%s7550_s5 + $0x158] sm:$0xff]  ;;  %v7046_v63 = vld [vmem:[%s7550_s5 + $0x140] sm:$0xff] }
 0xb29   :  { %2996 = vmatpush1.msra.mxu0 %v8098_v10  ;;  %3029 = vmatprep.mubr.f32.mxu0 %v8099_v46  ;;  %v7052_v10 = vld [vmem:[%s7550_s5 + $0x150] sm:$0xff] }
 0xb2a   :  { %3067 = vmatpush1.msra.mxu1 %v8100_v26  ;;  %3100 = vmatprep.mubr.f32.mxu1 %v8099_v46  ;;  %v7058_v26 = vld [vmem:[%s7550_s5 + $0x128] sm:$0xff] }
 0xb2b   :  { %3139 = vmatprep.subr.mxu0 %v6952_v27  ;;  %3210 = vmatprep.subr.mxu1 %v6958_v30 }
 0xbca   :  { %v2857_v14 = vpop.f32.mrf.mxu0  ;;  %v2928_v23 = vpop.f32.mrf.mxu1 }
 0xbcb   :  { %v2933_v17 = vadd.f32 %v2857_v14, %v2028_v50  ;;  %v2935_v52 = vadd.f32 %v2928_v23, %v2141_v22  ;;  %v7070_v50 = vld [vmem:[%s7550_s5 + $0x120] sm:$0xff]  ;;  %v7076_v14 = vld [vmem:[%s7550_s5 + $0x130] sm:$0xff]  ;;  %v7160_v22 = vld [vmem:[%s7550_s5 + $0xb8] sm:$0xff] }
 0xbcc   :  { %v2859_v18 = vpop.f32.mrf.mxu0  ;;  %v2930_v31 = vpop.f32.mrf.mxu1  ;;  %v7118_v23 = vld [vmem:[%s7550_s5 + $0xe0] sm:$0xff] }
 0xbcd   :  { %v3798_v20 = vmul.f32 -1.442695, %v2933_v17  ;;  %v2934_v21 = vadd.f32 %v2859_v18, %v2030_v16  ;;  %v2936_v34 = vadd.f32 %v2930_v31, %v2143_v33  ;;  %v7088_v16 = vld [vmem:[%s7550_s5 + $0x118] sm:$0xff]  ;;  %v7094_v17 = vld [vmem:[%s7550_s5 + $0x100] sm:$0xff]  ;;  %v7100_v18 = vld [vmem:[%s7550_s5 + $0x110] sm:$0xff] }
 0xbce   :  { %v7130_v31 = vld [vmem:[%s7550_s5 + $0xc8] sm:$0xff]  ;;  %v7142_v33 = vld [vmem:[%s7550_s5 + $0xc0] sm:$0xff] }
 0xbcf   :  { %4045 = vpow2.f32 %v3798_v20  ;;  %v3799_v0 = vmul.f32 -1.442695, %v2934_v21  ;;  %v3800_v24 = vmul.f32 -1.442695, %v2936_v34  ;;  %v7106_v20 = vld [vmem:[%s7550_s5 + $0xe8] sm:$0xff]  ;;  %v7112_v21 = vld [vmem:[%s7550_s5 + $0xf8] sm:$0xff] }
 0xbd0   :  { %v7148_v34 = vld [vmem:[%s7550_s5 + $0xd0] sm:$0xff] }
 0xbd1   :  { %4047 = vpow2.f32 %v3799_v0  ;;  %v7124_v0 = vld [vmem:[%s7550_s5 + $0xf0] sm:$0xff] }
 0xbd2   :  { %4049 = vtanh.f32 %v2935_v52  ;;  %v7166_v52 = vld [vmem:[%s7550_s5 + $0xa0] sm:$0xff] }
 0xbd3   :  { %4051 = vpow2.f32 %v3800_v24  ;;  %v7172_v24 = vld [vmem:[%s7550_s5 + $0xb0] sm:$0xff] }
 0xbd4   :  { %8108 = vst [vmem:[#allocation59_spill] sm:$0xff] %v7172_v24 }
 0xbdc   :  { %v4046_v48 = vpop.eup %4045 }
 0xbdd   :  { %v2940_v49 = vadd.f32 1.0, %v4046_v48  ;;  %v7178_v48 = vld [vmem:[%s7550_s5 + $0x88] sm:$0xff] }
 0xbde   :  { %v4048_v47 = vpop.eup %4047  ;;  %8109 = vst [vmem:[#allocation16_spill] sm:$0xff] %v7178_v48 }
 0xbdf   :  { %4053 = vrcp.f32 %v2940_v49  ;;  %v2946_v60 = vadd.f32 1.0, %v4048_v47  ;;  %v4050_v57 = vpop.eup %4049  ;;  %v7184_v49 = vld [vmem:[%s7550_s5 + $0x98] sm:$0xff]  ;;  %v7190_v47 = vld [vmem:[%s7550_s5 + $0x80] sm:$0xff] }
 0xbe0   :  { %v4052_v28 = vpop.eup %4051  ;;  %8110 = vst [vmem:[#allocation14_spill] sm:$0xff] %v7184_v49  ;;  %8111 = vst [vmem:[#allocation36_spill] sm:$0xff] %v7190_v47 }
 0xbe1   :  { %4055 = vrcp.f32 %v2946_v60  ;;  %v2953_v4 = vadd.f32 1.0, %v4052_v28  ;;  %v7196_v60 = vld [vmem:[%s7550_s5 + $0x90] sm:$0xff]  ;;  %v7208_v28 = vld [vmem:[%s7550_s5 + $0x78] sm:$0xff] }
 0xbe2   :  { %8112 = vst [vmem:[#allocation37_spill] sm:$0xff] %v7196_v60  ;;  %8114 = vst [vmem:[#allocation38_spill] sm:$0xff] %v7208_v28 }
 0xbe3   :  { %4057 = vrcp.f32 %v2953_v4  ;;  %v7232_v4 = vld [vmem:[%s7550_s5 + $0x58] sm:$0xff] }
 0xbe4   :  { %8118 = vst [vmem:[#allocation7_spill] sm:$0xff] %v7232_v4 }
 0xbec   :  { %v4054_v37 = vpop.eup %4053 }
 0xbed   :  { %v2957_v6 = vmul.f32 %v4054_v37, %v4050_v57  ;;  %v7202_v57 = vld [vmem:[%s7550_s5 + $0x68] sm:$0xff]  ;;  %v7214_v37 = vld [vmem:[%s7550_s5 + $0x60] sm:$0xff] }
 0xbee   :  { %v4056_v44 = vpop.eup %4055  ;;  %8113 = vst [vmem:[#allocation35_spill] sm:$0xff] %v7202_v57  ;;  %8115 = vst [vmem:[#allocation40_spill] sm:$0xff] %v7214_v37 }
 0xbef   :  { %v2956_v39 = vmul.f32 %v4056_v44, %v6832_v25  ;;  %v6986_v25 = vld [vmem:[%s7550_s5 + $0x188] sm:$0xff] }
 0xbf0   :  { %v4058_v42 = vpop.eup %4057  ;;  %v7226_v44 = vld [vmem:[%s7550_s5 + $0x48] sm:$0xff] }
 0xbf1   :  { %v6970_v7 = vadd.f32 %v2957_v6, %v2956_v39  ;;  %v7220_v6 = vld [vmem:[%s7550_s5 + $0x70] sm:$0xff]  ;;  %8117 = vst [vmem:[#allocation39_spill] sm:$0xff] %v7226_v44  ;;  %v7238_v39 = vld [vmem:[%s7550_s5 + $0x40] sm:$0xff] }
 0xbf2   :  { %8116 = vst [vmem:[#allocation41_spill] sm:$0xff] %v7220_v6  ;;  %8119 = vst [vmem:[#allocation8_spill] sm:$0xff] %v7238_v39 }
 0xbf3   :  { %4059 = vtanh.f32 %v6970_v7 }
 0xc00   :  { %v4060_v8 = vpop.eup %4059 }
 0xc01   :  { %v2960_v61 = vmul.f32 %v4060_v8, %v4058_v42  ;;  %v7244_v42 = vld [vmem:[%s7550_s5 + $0x50] sm:$0xff]  ;;  %v7250_v8 = vld [vmem:[%s7550_s5 + $0x28] sm:$0xff] }
 0xc02   :  { %8120 = vst [vmem:[#allocation42_spill] sm:$0xff] %v7244_v42  ;;  %8121 = vst [vmem:[#allocation29_spill] sm:$0xff] %v7250_v8 }
 0xc03   :  { %3030 = vmatmul.mubr.f32.vlgmr.msra.gmra.mxu0 %v2960_v61  ;;  %3101 = vmatmul.mubr.f32.vlgmr.msra.gmra.mxu1 %v2960_v61  ;;  %v7256_v61 = vld [vmem:[%s7550_s5 + $0x38] sm:$0xff] }
 0xc04   :  { %3140 = vmatpush1.msra.mxu0 %v6838_v38  ;;  %3211 = vmatpush1.msra.mxu1 %v6844_v5  ;;  %8122 = vst [vmem:[#allocation34_spill] sm:$0xff] %v7256_v61 }
 0xc05   :  { %3141 = vmatprep.subr.mxu0 %v6850_v45  ;;  %3212 = vmatprep.subr.mxu1 %v6856_v11 }
 0xc06   :  { %3142 = vmatpush1.msra.mxu0 %v6862_v29  ;;  %3213 = vmatpush1.msra.mxu1 %v6868_v41 }
 0xc07   :  { %3143 = vmatprep.subr.mxu0 %v6874_v13  ;;  %3214 = vmatprep.subr.mxu1 %v6880_v36 }
 0xc08   :  { %3144 = vmatpush1.msra.mxu0 %v6886_v40  ;;  %3215 = vmatpush1.msra.mxu1 %v6892_v43 }
 0xc09   :  { %3145 = vmatprep.subr.mxu0 %v6986_v25  ;;  %3216 = vmatprep.subr.mxu1 %v6992_v12 }
 0xc0a   :  { %3146 = vmatpush1.msra.mxu0 %v6998_v1  ;;  %3217 = vmatpush1.msra.mxu1 %v7004_v58 }
 0xc0b   :  { %3147 = vmatprep.subr.mxu0 %v7010_v56  ;;  %3218 = vmatprep.subr.mxu1 %v7016_v55 }
 0xc0c   :  { %3148 = vmatpush1.msra.mxu0 %v7022_v54  ;;  %3219 = vmatpush1.msra.mxu1 %v7028_v2 }
 0xc0d   :  { %3149 = vmatprep.subr.mxu0 %v7034_v19  ;;  %3220 = vmatprep.subr.mxu1 %v7040_v59 }
 0xc0e   :  { %3150 = vmatpush1.msra.mxu0 %v7046_v63  ;;  %3221 = vmatpush1.msra.mxu1 %v7052_v10 }
 0xc0f   :  { %3151 = vmatprep.subr.mxu0 %v7058_v26  ;;  %3222 = vmatprep.subr.mxu1 %v7064_v62 }
 0xc10   :  { %3152 = vmatpush1.msra.mxu0 %v7070_v50  ;;  %3223 = vmatpush1.msra.mxu1 %v7076_v14 }
 0xc11   :  { %3153 = vmatprep.subr.mxu0 %v7082_v15  ;;  %3224 = vmatprep.subr.mxu1 %v7088_v16 }
 0xc12   :  { %3154 = vmatpush1.msra.mxu0 %v7094_v17  ;;  %3225 = vmatpush1.msra.mxu1 %v7100_v18 }
 0xc13   :  { %3155 = vmatprep.subr.mxu0 %v7106_v20  ;;  %3226 = vmatprep.subr.mxu1 %v7112_v21 }
 0xc14   :  { %3156 = vmatpush1.msra.mxu0 %v7118_v23  ;;  %3227 = vmatpush1.msra.mxu1 %v7124_v0 }
 0xc15   :  { %3157 = vmatprep.subr.mxu0 %v7130_v31  ;;  %3228 = vmatprep.subr.mxu1 %v7136_v32 }
 0xc16   :  { %3158 = vmatpush1.msra.mxu0 %v7142_v33  ;;  %3229 = vmatpush1.msra.mxu1 %v7148_v34 }
 0xc17   :  { %3159 = vmatprep.subr.mxu0 %v7154_v35  ;;  %3230 = vmatprep.subr.mxu1 %v7160_v22 }
 0xc18   :  { %3160 = vmatpush1.msra.mxu0 %v7166_v52  ;;  %3231 = vmatpush1.msra.mxu1 %v7172_v24 }
 0xc19   :  { %3161 = vmatprep.subr.mxu0 %v7178_v48  ;;  %3232 = vmatprep.subr.mxu1 %v7184_v49  ;;  %v8132_v49 = vld [vmem:[#allocation26_spill] sm:$0xff] }
 0xc1a   :  { %3162 = vmatpush1.msra.mxu0 %v7190_v47  ;;  %3233 = vmatpush1.msra.mxu1 %v7196_v60 }
 0xc1b   :  { %3163 = vmatprep.subr.mxu0 %v7202_v57  ;;  %3234 = vmatprep.subr.mxu1 %v7208_v28 }
 0xc1c   :  { %3164 = vmatpush1.msra.mxu0 %v7214_v37  ;;  %3235 = vmatpush1.msra.mxu1 %v7220_v6 }
 0xc1d   :  { %3165 = vmatprep.subr.mxu0 %v7226_v44  ;;  %3236 = vmatprep.subr.mxu1 %v7232_v4 }
 0xc1e   :  { %3166 = vmatpush1.msra.mxu0 %v7238_v39  ;;  %3237 = vmatpush1.msra.mxu1 %v7244_v42  ;;  %v7262_v39 = vld [vmem:[%s7550_s5 + $0x20] sm:$0xff]  ;;  %v7268_v42 = vld [vmem:[%s7550_s5 + $0x30] sm:$0xff] }
 0xc1f   :  { %3167 = vmatprep.subr.mxu0 %v7250_v8  ;;  %3238 = vmatprep.subr.mxu1 %v7256_v61  ;;  %8123 = vst [vmem:[#allocation17_spill] sm:$0xff] %v7262_v39  ;;  %8124 = vst [vmem:[#allocation19_spill] sm:$0xff] %v7268_v42  ;;  %v7274_v8 = vld [vmem:[%s7550_s5 + $0x8] sm:$0xff]  ;;  %v7280_v61 = vld [vmem:[%s7550_s5 + $0x18] sm:$0xff] }
 0xc20   :  { %3168 = vmatpush1.msra.mxu0 %v7262_v39  ;;  %3239 = vmatpush1.msra.mxu1 %v7268_v42  ;;  %8125 = vst [vmem:[#allocation20_spill] sm:$0xff] %v7274_v8  ;;  %8126 = vst [vmem:[#allocation18_spill] sm:$0xff] %v7280_v61  ;;  %v7286_v39 = vld [vmem:[%s7550_s5] sm:$0xff] }
 0xc21   :  { %3169 = vmatprep.subr.mxu0 %v7274_v8  ;;  %3240 = vmatprep.subr.mxu1 %v7280_v61  ;;  %8127 = vst [vmem:[#allocation44_spill] sm:$0xff] %v7286_v39  ;;  %v7293_v8 = vld [vmem:[%s7550_s5 + $0x10] sm:$0xff]  ;;  %v8129_v61 = vld [vmem:[#allocation25_spill] sm:$0xff] }
 0xc22   :  { %3170 = vmatpush1.msra.mxu0 %v7286_v39  ;;  %3203 = vmatprep.mubr.f32.mxu0 %v8099_v46  ;;  %8128 = vst [vmem:[#allocation45_spill] sm:$0xff] %v7293_v8  ;;  %v2034_v42 = vadd.f32 %v8129_v61, %v8103_v3  ;;  %v8130_v39 = vld [vmem:[#allocation27_spill] sm:$0xff]  ;;  %v2147_v61 = vadd.f32 %v8132_v49, %v6673_v9  ;;  %v8135_v49 = vld [vmem:[#allocation14_spill] sm:$0xff] }
 0xc23   :  { %3241 = vmatpush1.msra.mxu1 %v7293_v8  ;;  %3274 = vmatprep.mubr.f32.mxu1 %v8099_v46  ;;  %v2036_v44 = vadd.f32 %v8130_v39, %v6656_v51 }
 0xc24   :  { %3313 = vmatprep.subr.mxu0 %v6952_v27  ;;  %3384 = vmatprep.subr.mxu1 %v6958_v30  ;;  %v8131_v27 = vld [vmem:[#allocation50_spill] sm:$0xff] }
 0xc25   :  { %v2149_v47 = vadd.f32 %v8131_v27, %v8057_v53 }
 0xcc3   :  { %v3031_v4 = vpop.f32.mrf.mxu0  ;;  %v3102_v60 = vpop.f32.mrf.mxu1 }
 0xcc4   :  { %v3107_v6 = vadd.f32 %v3031_v4, %v2034_v42  ;;  %v3109_v3 = vadd.f32 %v3102_v60, %v2147_v61  ;;  %v8136_v60 = vld [vmem:[#allocation36_spill] sm:$0xff]  ;;  %v8138_v61 = vld [vmem:[#allocation35_spill] sm:$0xff] }
 0xcc5   :  { %v3033_v37 = vpop.f32.mrf.mxu0  ;;  %v3104_v46 = vpop.f32.mrf.mxu1 }
 0xcc6   :  { %v3801_v28 = vmul.f32 -1.442695, %v3107_v6  ;;  %v3108_v57 = vadd.f32 %v3033_v37, %v2036_v44  ;;  %v3110_v30 = vadd.f32 %v3104_v46, %v2149_v47 }
 0xcc8   :  { %4061 = vpow2.f32 %v3801_v28  ;;  %v3802_v8 = vmul.f32 -1.442695, %v3108_v57  ;;  %v3803_v48 = vmul.f32 -1.442695, %v3110_v30 }
 0xcca   :  { %4063 = vpow2.f32 %v3802_v8  ;;  %v8137_v8 = vld [vmem:[#allocation37_spill] sm:$0xff] }
 0xccb   :  { %4065 = vtanh.f32 %v3109_v3 }
 0xccc   :  { %4067 = vpow2.f32 %v3803_v48  ;;  %v8134_v48 = vld [vmem:[#allocation16_spill] sm:$0xff] }
 0xcd5   :  { %v4062_v24 = vpop.eup %4061 }
 0xcd6   :  { %v3114_v39 = vadd.f32 1.0, %v4062_v24 }
 0xcd7   :  { %v4064_v4 = vpop.eup %4063 }
 0xcd8   :  { %4069 = vrcp.f32 %v3114_v39  ;;  %v3120_v28 = vadd.f32 1.0, %v4064_v4  ;;  %v4066_v57 = vpop.eup %4065  ;;  %v8139_v39 = vld [vmem:[#allocation38_spill] sm:$0xff]  ;;  %v8140_v4 = vld [vmem:[#allocation40_spill] sm:$0xff] }
 0xcd9   :  { %v4068_v37 = vpop.eup %4067 }
 0xcda   :  { %4071 = vrcp.f32 %v3120_v28  ;;  %v3127_v27 = vadd.f32 1.0, %v4068_v37  ;;  %v8141_v28 = vld [vmem:[#allocation41_spill] sm:$0xff]  ;;  %v8143_v37 = vld [vmem:[#allocation7_spill] sm:$0xff] }
 0xcdc   :  { %4073 = vrcp.f32 %v3127_v27  ;;  %v8147_v27 = vld [vmem:[#allocation34_spill] sm:$0xff] }
 0xce5   :  { %v4070_v6 = vpop.eup %4069 }
 0xce6   :  { %v3131_v44 = vmul.f32 %v4070_v6, %v4066_v57  ;;  %v8142_v57 = vld [vmem:[#allocation39_spill] sm:$0xff]  ;;  %v8144_v6 = vld [vmem:[#allocation8_spill] sm:$0xff] }
 0xce7   :  { %v4072_v42 = vpop.eup %4071 }
 0xce8   :  { %v3130_v46 = vmul.f32 %v4072_v42, %v6970_v7  ;;  %v8133_v7 = vld [vmem:[#allocation59_spill] sm:$0xff]  ;;  %v8146_v42 = vld [vmem:[#allocation29_spill] sm:$0xff] }
 0xce9   :  { %v4074_v30 = vpop.eup %4073 }
 0xcea   :  { %v7308_v47 = vadd.f32 %v3131_v44, %v3130_v46  ;;  %v8145_v44 = vld [vmem:[#allocation42_spill] sm:$0xff]  ;;  %v8148_v46 = vld [vmem:[#allocation17_spill] sm:$0xff] }
 0xcec   :  { %4075 = vtanh.f32 %v7308_v47 }
 0xcf9   :  { %v4076_v3 = vpop.eup %4075 }
 0xcfa   :  { %v3134_v24 = vmul.f32 %v4076_v3, %v4074_v30  ;;  %v8149_v30 = vld [vmem:[#allocation19_spill] sm:$0xff]  ;;  %v8150_v3 = vld [vmem:[#allocation20_spill] sm:$0xff] }
 0xcfc   :  { %3204 = vmatmul.mubr.f32.vlgmr.msra.gmra.mxu0 %v3134_v24  ;;  %3275 = vmatmul.mubr.f32.vlgmr.msra.gmra.mxu1 %v3134_v24  ;;  %v8151_v24 = vld [vmem:[#allocation18_spill] sm:$0xff] }
 0xcfd   :  { %3314 = vmatpush1.msra.mxu0 %v6838_v38  ;;  %3385 = vmatpush1.msra.mxu1 %v6844_v5 }
 0xcfe   :  { %3315 = vmatprep.subr.mxu0 %v6850_v45  ;;  %3386 = vmatprep.subr.mxu1 %v6856_v11 }
 0xcff   :  { %3316 = vmatpush1.msra.mxu0 %v6862_v29  ;;  %3387 = vmatpush1.msra.mxu1 %v6868_v41 }
 0xd00   :  { %3317 = vmatprep.subr.mxu0 %v6874_v13  ;;  %3388 = vmatprep.subr.mxu1 %v6880_v36 }
 0xd01   :  { %3318 = vmatpush1.msra.mxu0 %v6886_v40  ;;  %3389 = vmatpush1.msra.mxu1 %v6892_v43 }
 0xd02   :  { %3319 = vmatprep.subr.mxu0 %v6986_v25  ;;  %3390 = vmatprep.subr.mxu1 %v6992_v12 }
 0xd03   :  { %3320 = vmatpush1.msra.mxu0 %v6998_v1  ;;  %3391 = vmatpush1.msra.mxu1 %v7004_v58 }
 0xd04   :  { %3321 = vmatprep.subr.mxu0 %v7010_v56  ;;  %3392 = vmatprep.subr.mxu1 %v7016_v55 }
 0xd05   :  { %3322 = vmatpush1.msra.mxu0 %v7022_v54  ;;  %3393 = vmatpush1.msra.mxu1 %v7028_v2 }
 0xd06   :  { %3323 = vmatprep.subr.mxu0 %v7034_v19  ;;  %3394 = vmatprep.subr.mxu1 %v7040_v59 }
 0xd07   :  { %3324 = vmatpush1.msra.mxu0 %v7046_v63  ;;  %3395 = vmatpush1.msra.mxu1 %v7052_v10 }
 0xd08   :  { %3325 = vmatprep.subr.mxu0 %v7058_v26  ;;  %3396 = vmatprep.subr.mxu1 %v7064_v62 }
 0xd09   :  { %3326 = vmatpush1.msra.mxu0 %v7070_v50  ;;  %3397 = vmatpush1.msra.mxu1 %v7076_v14 }
 0xd0a   :  { %3327 = vmatprep.subr.mxu0 %v7082_v15  ;;  %3398 = vmatprep.subr.mxu1 %v7088_v16 }
 0xd0b   :  { %3328 = vmatpush1.msra.mxu0 %v7094_v17  ;;  %3399 = vmatpush1.msra.mxu1 %v7100_v18 }
 0xd0c   :  { %3329 = vmatprep.subr.mxu0 %v7106_v20  ;;  %3400 = vmatprep.subr.mxu1 %v7112_v21 }
 0xd0d   :  { %3330 = vmatpush1.msra.mxu0 %v7118_v23  ;;  %3401 = vmatpush1.msra.mxu1 %v7124_v0 }
 0xd0e   :  { %3331 = vmatprep.subr.mxu0 %v7130_v31  ;;  %3402 = vmatprep.subr.mxu1 %v7136_v32 }
 0xd0f   :  { %3332 = vmatpush1.msra.mxu0 %v7142_v33  ;;  %3403 = vmatpush1.msra.mxu1 %v7148_v34 }
 0xd10   :  { %3333 = vmatprep.subr.mxu0 %v7154_v35  ;;  %3404 = vmatprep.subr.mxu1 %v7160_v22 }
 0xd11   :  { %3334 = vmatpush1.msra.mxu0 %v7166_v52  ;;  %3405 = vmatpush1.msra.mxu1 %v8133_v7 }
 0xd12   :  { %3335 = vmatprep.subr.mxu0 %v8134_v48  ;;  %3406 = vmatprep.subr.mxu1 %v8135_v49  ;;  %v8161_v49 = vld [vmem:[#allocation53_spill] sm:$0xff] }
 0xd13   :  { %3336 = vmatpush1.msra.mxu0 %v8136_v60  ;;  %3407 = vmatpush1.msra.mxu1 %v8137_v8 }
 0xd14   :  { %3337 = vmatprep.subr.mxu0 %v8138_v61  ;;  %3408 = vmatprep.subr.mxu1 %v8139_v39 }
 0xd15   :  { %3338 = vmatpush1.msra.mxu0 %v8140_v4  ;;  %3409 = vmatpush1.msra.mxu1 %v8141_v28  ;;  %v8152_v28 = vld [vmem:[#allocation44_spill] sm:$0xff] }
 0xd16   :  { %3339 = vmatprep.subr.mxu0 %v8142_v57  ;;  %3410 = vmatprep.subr.mxu1 %v8143_v37  ;;  %v8153_v57 = vmov 0.0   ;;  %v8154_v37 = vld [vmem:[#allocation45_spill] sm:$0xff] }
 0xd17   :  { %3340 = vmatpush1.msra.mxu0 %v8144_v6  ;;  %3411 = vmatpush1.msra.mxu1 %v8145_v44  ;;  %v8155_v44 = vld [vmem:[#allocation13_spill] sm:$0xff] }
 0xd18   :  { %3341 = vmatprep.subr.mxu0 %v8146_v42  ;;  %3412 = vmatprep.subr.mxu1 %v8147_v27  ;;  %v8156_v42 = vld [vmem:[#allocation15_spill] sm:$0xff]  ;;  %v8157_v27 = vld [vmem:[#allocation28_spill] sm:$0xff] }
 0xd19   :  { %3342 = vmatpush1.msra.mxu0 %v8148_v46  ;;  %3413 = vmatpush1.msra.mxu1 %v8149_v30  ;;  %v8158_v46 = vld [vmem:[#allocation52_spill] sm:$0xff] }
 0xd1a   :  { %3343 = vmatprep.subr.mxu0 %v8150_v3  ;;  %3414 = vmatprep.subr.mxu1 %v8151_v24  ;;  %v2040_v6 = vadd.f32 %v8158_v46, %v8157_v27  ;;  %v8159_v3 = vld [vmem:[#allocation51_spill] sm:$0xff]  ;;  %v2153_v46 = vadd.f32 %v8161_v49, %v6673_v9 }
 0xd1b   :  { %3344 = vmatpush1.msra.mxu0 %v8152_v28  ;;  %3377 = vmatprep.mubr.f32.mxu0 %v8153_v57  ;;  %v2042_v4 = vadd.f32 %v8159_v3, %v6656_v51 }
 0xd1c   :  { %3415 = vmatpush1.msra.mxu1 %v8154_v37  ;;  %3448 = vmatprep.mubr.f32.mxu1 %v8153_v57 }
 0xd1d   :  { %3487 = vmatprep.subr.mxu0 %v8155_v44  ;;  %3558 = vmatprep.subr.mxu1 %v8156_v42  ;;  %v8160_v44 = vld [vmem:[#allocation58_spill] sm:$0xff] }
 0xd1e   :  { %v2155_v60 = vadd.f32 %v8160_v44, %v8057_v53 }
 0xdbc   :  { %v3205_v30 = vpop.f32.mrf.mxu0  ;;  %v3276_v8 = vpop.f32.mrf.mxu1 }
 0xdbd   :  { %v3281_v24 = vadd.f32 %v3205_v30, %v2040_v6  ;;  %v3283_v27 = vadd.f32 %v3276_v8, %v2153_v46 }
 0xdbe   :  { %v3207_v39 = vpop.f32.mrf.mxu0  ;;  %v3278_v57 = vpop.f32.mrf.mxu1 }
 0xdbf   :  { %v3804_v28 = vmul.f32 -1.442695, %v3281_v24  ;;  %v3282_v61 = vadd.f32 %v3207_v39, %v2042_v4  ;;  %v3284_v42 = vadd.f32 %v3278_v57, %v2155_v60 }
 0xdc1   :  { %4077 = vpow2.f32 %v3804_v28  ;;  %v3805_v37 = vmul.f32 -1.442695, %v3282_v61  ;;  %v3806_v48 = vmul.f32 -1.442695, %v3284_v42 }
 0xdc3   :  { %4079 = vpow2.f32 %v3805_v37 }
 0xdc4   :  { %4081 = vtanh.f32 %v3283_v27 }
 0xdc5   :  { %4083 = vpow2.f32 %v3806_v48 }
 0xdce   :  { %v4078_v7 = vpop.eup %4077 }
 0xdcf   :  { %v3288_v3 = vadd.f32 1.0, %v4078_v7 }
 0xdd0   :  { %v4080_v6 = vpop.eup %4079 }
 0xdd1   :  { %4085 = vrcp.f32 %v3288_v3  ;;  %v3294_v39 = vadd.f32 1.0, %v4080_v6  ;;  %v4082_v61 = vpop.eup %4081 }
 0xdd2   :  { %v4084_v4 = vpop.eup %4083 }
 0xdd3   :  { %4087 = vrcp.f32 %v3294_v39  ;;  %v3301_v24 = vadd.f32 1.0, %v4084_v4 }
 0xdd5   :  { %4089 = vrcp.f32 %v3301_v24 }
 0xdde   :  { %v4086_v28 = vpop.eup %4085 }
 0xddf   :  { %v3305_v37 = vmul.f32 %v4086_v28, %v4082_v61 }
 0xde0   :  { %v4088_v30 = vpop.eup %4087 }
 0xde1   :  { %v3304_v60 = vmul.f32 %v4088_v30, %v7308_v47 }
 0xde2   :  { %v4090_v7 = vpop.eup %4089 }
 0xde3   :  { %v7386_v57 = vadd.f32 %v3305_v37, %v3304_v60 }
 0xde5   :  { %4091 = vtanh.f32 %v7386_v57 }
 0xdf2   :  { %v4092_v49 = vpop.eup %4091 }
 0xdf3   :  { %v3308_v8 = vmul.f32 %v4092_v49, %v4090_v7  ;;  %v3672_v7 = vld [vmem:[%s7552_s7 + $0x78] sm:$0xff]  ;;  %v3670_v49 = vld [vmem:[%s7552_s7 + $0x68] sm:$0xff] }
 0xdf5   :  { %3378 = vmatmul.mubr.f32.vlgmr.msra.gmra.mxu0 %v3308_v8  ;;  %3449 = vmatmul.mubr.f32.vlgmr.msra.gmra.mxu1 %v3308_v8  ;;  %v3669_v8 = vld [vmem:[%s7552_s7 + $0x60] sm:$0xff] }
 0xdf6   :  { %3488 = vmatpush1.msra.mxu0 %v6838_v38  ;;  %3559 = vmatpush1.msra.mxu1 %v6844_v5  ;;  %v8162_v38 = vld [vmem:[#allocation59_spill] sm:$0xff]  ;;  %v8163_v5 = vld [vmem:[#allocation16_spill] sm:$0xff] }
 0xdf7   :  { %3489 = vmatprep.subr.mxu0 %v6850_v45  ;;  %3560 = vmatprep.subr.mxu1 %v6856_v11  ;;  %v8164_v45 = vld [vmem:[#allocation14_spill] sm:$0xff]  ;;  %v8165_v11 = vld [vmem:[#allocation36_spill] sm:$0xff] }
 0xdf8   :  { %3490 = vmatpush1.msra.mxu0 %v6862_v29  ;;  %3561 = vmatpush1.msra.mxu1 %v6868_v41  ;;  %v8166_v29 = vld [vmem:[#allocation37_spill] sm:$0xff]  ;;  %v8167_v41 = vld [vmem:[#allocation35_spill] sm:$0xff] }
 0xdf9   :  { %3491 = vmatprep.subr.mxu0 %v6874_v13  ;;  %3562 = vmatprep.subr.mxu1 %v6880_v36  ;;  %v8168_v13 = vld [vmem:[#allocation38_spill] sm:$0xff]  ;;  %v8169_v36 = vld [vmem:[#allocation40_spill] sm:$0xff] }
 0xdfa   :  { %3492 = vmatpush1.msra.mxu0 %v6886_v40  ;;  %3563 = vmatpush1.msra.mxu1 %v6892_v43  ;;  %v8170_v40 = vld [vmem:[#allocation41_spill] sm:$0xff]  ;;  %v8171_v43 = vld [vmem:[#allocation39_spill] sm:$0xff] }
 0xdfb   :  { %3493 = vmatprep.subr.mxu0 %v6986_v25  ;;  %3564 = vmatprep.subr.mxu1 %v6992_v12  ;;  %v8172_v25 = vld [vmem:[#allocation7_spill] sm:$0xff]  ;;  %v8173_v12 = vld [vmem:[#allocation8_spill] sm:$0xff] }
 0xdfc   :  { %3494 = vmatpush1.msra.mxu0 %v6998_v1  ;;  %3565 = vmatpush1.msra.mxu1 %v7004_v58  ;;  %v8174_v1 = vld [vmem:[#allocation42_spill] sm:$0xff]  ;;  %v8175_v58 = vld [vmem:[#allocation29_spill] sm:$0xff] }
 0xdfd   :  { %3495 = vmatprep.subr.mxu0 %v7010_v56  ;;  %3566 = vmatprep.subr.mxu1 %v7016_v55  ;;  %v8176_v56 = vld [vmem:[#allocation34_spill] sm:$0xff]  ;;  %v8177_v55 = vld [vmem:[#allocation17_spill] sm:$0xff] }
 0xdfe   :  { %3496 = vmatpush1.msra.mxu0 %v7022_v54  ;;  %3567 = vmatpush1.msra.mxu1 %v7028_v2  ;;  %v8178_v54 = vld [vmem:[#allocation19_spill] sm:$0xff]  ;;  %v8179_v2 = vld [vmem:[#allocation20_spill] sm:$0xff] }
 0xdff   :  { %3497 = vmatprep.subr.mxu0 %v7034_v19  ;;  %3568 = vmatprep.subr.mxu1 %v7040_v59  ;;  %v8180_v19 = vld [vmem:[#allocation18_spill] sm:$0xff]  ;;  %v8181_v59 = vld [vmem:[#allocation44_spill] sm:$0xff] }
 0xe00   :  { %3498 = vmatpush1.msra.mxu0 %v7046_v63  ;;  %3569 = vmatpush1.msra.mxu1 %v7052_v10  ;;  %v8182_v63 = vmov 0.0   ;;  %v8183_v10 = vld [vmem:[#allocation45_spill] sm:$0xff] }
 0xe01   :  { %3499 = vmatprep.subr.mxu0 %v7058_v26  ;;  %3570 = vmatprep.subr.mxu1 %v7064_v62  ;;  %v8184_v26 = vld [vmem:[#allocation28_spill] sm:$0xff]  ;;  %v8185_v62 = vld [vmem:[#allocation9_spill] sm:$0xff] }
 0xe02   :  { %3500 = vmatpush1.msra.mxu0 %v7070_v50  ;;  %3571 = vmatpush1.msra.mxu1 %v7076_v14  ;;  %v2046_v50 = vadd.f32 %v8185_v62, %v8184_v26 }
 0xe03   :  { %3501 = vmatprep.subr.mxu0 %v7082_v15  ;;  %3572 = vmatprep.subr.mxu1 %v7088_v16  ;;  %v8186_v15 = vld [vmem:[#allocation32_spill] sm:$0xff] }
 0xe04   :  { %3502 = vmatpush1.msra.mxu0 %v7094_v17  ;;  %3573 = vmatpush1.msra.mxu1 %v7100_v18  ;;  %v2048_v16 = vadd.f32 %v8186_v15, %v6656_v51  ;;  %v8191_v15 = vld [vmem:[#allocation30_spill] sm:$0xff] }
 0xe05   :  { %3503 = vmatprep.subr.mxu0 %v7106_v20  ;;  %3574 = vmatprep.subr.mxu1 %v7112_v21 }
 0xe06   :  { %3504 = vmatpush1.msra.mxu0 %v7118_v23  ;;  %3575 = vmatpush1.msra.mxu1 %v7124_v0 }
 0xe07   :  { %3505 = vmatprep.subr.mxu0 %v7130_v31  ;;  %3576 = vmatprep.subr.mxu1 %v7136_v32  ;;  %v8187_v32 = vld [vmem:[#allocation54_spill] sm:$0xff] }
 0xe08   :  { %3506 = vmatpush1.msra.mxu0 %v7142_v33  ;;  %3577 = vmatpush1.msra.mxu1 %v7148_v34  ;;  %v2161_v33 = vadd.f32 %v8187_v32, %v8057_v53 }
 0xe09   :  { %3507 = vmatprep.subr.mxu0 %v7154_v35  ;;  %3578 = vmatprep.subr.mxu1 %v7160_v22  ;;  %v8188_v35 = vld [vmem:[#allocation12_spill] sm:$0xff] }
 0xe0a   :  { %3508 = vmatpush1.msra.mxu0 %v7166_v52  ;;  %3579 = vmatpush1.msra.mxu1 %v8162_v38  ;;  %v2159_v22 = vadd.f32 %v8188_v35, %v6673_v9  ;;  %v3668_v38 = vld [vmem:[%s7552_s7 + $0x58] sm:$0xff] }
 0xe0b   :  { %3509 = vmatprep.subr.mxu0 %v8163_v5  ;;  %3580 = vmatprep.subr.mxu1 %v8164_v45  ;;  %v3667_v5 = vld [vmem:[%s7552_s7 + $0x50] sm:$0xff]  ;;  %v3666_v45 = vld [vmem:[%s7552_s7 + $0x48] sm:$0xff] }
 0xe0c   :  { %3510 = vmatpush1.msra.mxu0 %v8165_v11  ;;  %3581 = vmatpush1.msra.mxu1 %v8166_v29  ;;  %v3665_v11 = vld [vmem:[%s7552_s7 + $0x40] sm:$0xff]  ;;  %v3664_v29 = vld [vmem:[%s7552_s7 + $0x38] sm:$0xff] }
 0xe0d   :  { %3511 = vmatprep.subr.mxu0 %v8167_v41  ;;  %3582 = vmatprep.subr.mxu1 %v8168_v13  ;;  %v3663_v41 = vld [vmem:[%s7552_s7 + $0x30] sm:$0xff]  ;;  %v3662_v13 = vld [vmem:[%s7552_s7 + $0x28] sm:$0xff] }
 0xe0e   :  { %3512 = vmatpush1.msra.mxu0 %v8169_v36  ;;  %3583 = vmatpush1.msra.mxu1 %v8170_v40  ;;  %v3661_v36 = vld [vmem:[%s7552_s7 + $0x20] sm:$0xff]  ;;  %v3660_v40 = vld [vmem:[%s7552_s7 + $0x18] sm:$0xff] }
 0xe0f   :  { %3513 = vmatprep.subr.mxu0 %v8171_v43  ;;  %3584 = vmatprep.subr.mxu1 %v8172_v25  ;;  %v3659_v43 = vld [vmem:[%s7552_s7 + $0x10] sm:$0xff]  ;;  %v3658_v25 = vld [vmem:[%s7552_s7 + $0x8] sm:$0xff] }
 0xe10   :  { %3514 = vmatpush1.msra.mxu0 %v8173_v12  ;;  %3585 = vmatpush1.msra.mxu1 %v8174_v1  ;;  %v3657_v12 = vld [vmem:[%s7552_s7] sm:$0xff]  ;;  %v8189_v1 = vld [vmem:[#allocation56_spill] sm:$0xff] }
 0xe11   :  { %3515 = vmatprep.subr.mxu0 %v8175_v58  ;;  %3586 = vmatprep.subr.mxu1 %v8176_v56  ;;  %v2052_v58 = vadd.f32 %v8189_v1, %v8184_v26 }
 0xe12   :  { %3516 = vmatpush1.msra.mxu0 %v8177_v55  ;;  %3587 = vmatpush1.msra.mxu1 %v8178_v54  ;;  %v8190_v55 = vld [vmem:[#allocation55_spill] sm:$0xff] }
 0xe13   :  { %3517 = vmatprep.subr.mxu0 %v8179_v2  ;;  %3588 = vmatprep.subr.mxu1 %v8180_v19  ;;  %v2054_v54 = vadd.f32 %v8190_v55, %v6656_v51 }
 0xe14   :  { %3518 = vmatpush1.msra.mxu0 %v8181_v59  ;;  %3551 = vmatprep.mubr.f32.mxu0 %v8182_v63 }
 0xe15   :  { %3589 = vmatpush1.msra.mxu1 %v8183_v10  ;;  %3622 = vmatprep.mubr.f32.mxu1 %v8182_v63 }
 0xe16   :  { %3831 = vmatprep.subr.mxu0 %v8182_v63 }
 0xeb5   :  { %v3379_v14 = vpop.f32.mrf.mxu0  ;;  %v3450_v23 = vpop.f32.mrf.mxu1 }
 0xeb6   :  { %v3455_v17 = vadd.f32 %v3379_v14, %v2046_v50  ;;  %v3457_v52 = vadd.f32 %v3450_v23, %v2159_v22 }
 0xeb7   :  { %v3381_v18 = vpop.f32.mrf.mxu0  ;;  %v3452_v31 = vpop.f32.mrf.mxu1 }
 0xeb8   :  { %v3807_v20 = vmul.f32 -1.442695, %v3455_v17  ;;  %v3456_v21 = vadd.f32 %v3381_v18, %v2048_v16  ;;  %v3458_v34 = vadd.f32 %v3452_v31, %v2161_v33  ;;  %v8192_v17 = vld [vmem:[#allocation57_spill] sm:$0xff] }
 0xeb9   :  { %v2165_v26 = vadd.f32 %v8192_v17, %v6673_v9 }
 0xeba   :  { %4093 = vpow2.f32 %v3807_v20  ;;  %v3808_v0 = vmul.f32 -1.442695, %v3456_v21  ;;  %v3809_v47 = vmul.f32 -1.442695, %v3458_v34 }
 0xebc   :  { %4095 = vpow2.f32 %v3808_v0 }
 0xebd   :  { %4097 = vtanh.f32 %v3457_v52 }
 0xebe   :  { %4099 = vpow2.f32 %v3809_v47 }
 0xec7   :  { %v4094_v48 = vpop.eup %4093 }
 0xec8   :  { %v3462_v27 = vadd.f32 1.0, %v4094_v48 }
 0xec9   :  { %v4096_v44 = vpop.eup %4095 }
 0xeca   :  { %4101 = vrcp.f32 %v3462_v27  ;;  %v3468_v42 = vadd.f32 1.0, %v4096_v44  ;;  %v4098_v46 = vpop.eup %4097  ;;  %v3813_v27 = vld [vmem:[%s7553_s8] ss:$0 sm:$0xff] }
 0xecb   :  { %v4100_v3 = vpop.eup %4099 }
 0xecc   :  { %4103 = vrcp.f32 %v3468_v42  ;;  %v3475_v4 = vadd.f32 1.0, %v4100_v3 }
 0xece   :  { %4105 = vrcp.f32 %v3475_v4 }
 0xed7   :  { %v4102_v6 = vpop.eup %4101 }
 0xed8   :  { %v3479_v39 = vmul.f32 %v4102_v6, %v4098_v46 }
 0xed9   :  { %v4104_v61 = vpop.eup %4103 }
 0xeda   :  { %v3478_v28 = vmul.f32 %v4104_v61, %v7386_v57  ;;  %v3671_v57 = vld [vmem:[%s7552_s7 + $0x70] sm:$0xff] }
 0xedb   :  { %v4106_v30 = vpop.eup %4105 }
 0xedc   :  { %v7463_v37 = vadd.f32 %v3479_v39, %v3478_v28 }
 0xede   :  { %4107 = vtanh.f32 %v7463_v37 }
 0xeeb   :  { %v4108_v24 = vpop.eup %4107 }
 0xeec   :  { %v3482_v60 = vmul.f32 %v4108_v24, %v4106_v30 }
 0xeee   :  { %3552 = vmatmul.mubr.f32.vlgmr.msra.gmra.mxu0 %v3482_v60  ;;  %3623 = vmatmul.mubr.f32.vlgmr.msra.gmra.mxu1 %v3482_v60 }
 0xeef   :  { %3832 = vmatpush3.msra.mxu0 %v3672_v7  ;;  %3863 = vmatprep.mubr.msk.f32.mxu0 %vm4276_vm0, %v8182_v63 }
 0xef0   :  { %3833 = vmatprep.subr.mxu0 %v8182_v63 }
 0xef1   :  { %3834 = vmatpush3.msra.mxu0 %v3671_v57 }
 0xef2   :  { %3835 = vmatprep.subr.mxu0 %v8182_v63 }
 0xef3   :  { %3836 = vmatpush3.msra.mxu0 %v3670_v49 }
 0xef4   :  { %3837 = vmatprep.subr.mxu0 %v8182_v63 }
 0xef5   :  { %3838 = vmatpush3.msra.mxu0 %v3669_v8 }
 0xef6   :  { %3839 = vmatprep.subr.mxu0 %v8182_v63 }
 0xef7   :  { %3840 = vmatpush3.msra.mxu0 %v3668_v38 }
 0xef8   :  { %3841 = vmatprep.subr.mxu0 %v8182_v63 }
 0xef9   :  { %3842 = vmatpush3.msra.mxu0 %v3667_v5 }
 0xefa   :  { %3843 = vmatprep.subr.mxu0 %v8182_v63 }
 0xefb   :  { %3844 = vmatpush3.msra.mxu0 %v3666_v45 }
 0xefc   :  { %3845 = vmatprep.subr.mxu0 %v8182_v63 }
 0xefd   :  { %3846 = vmatpush3.msra.mxu0 %v3665_v11 }
 0xefe   :  { %3847 = vmatprep.subr.mxu0 %v8182_v63 }
 0xeff   :  { %3848 = vmatpush3.msra.mxu0 %v3664_v29 }
 0xf00   :  { %3849 = vmatprep.subr.mxu0 %v8182_v63 }
 0xf01   :  { %3850 = vmatpush3.msra.mxu0 %v3663_v41 }
 0xf02   :  { %3851 = vmatprep.subr.mxu0 %v8182_v63 }
 0xf03   :  { %3852 = vmatpush3.msra.mxu0 %v3662_v13 }
 0xf04   :  { %3853 = vmatprep.subr.mxu0 %v8182_v63 }
 0xf05   :  { %3854 = vmatpush3.msra.mxu0 %v3661_v36 }
 0xf06   :  { %3855 = vmatprep.subr.mxu0 %v8182_v63 }
 0xf07   :  { %3856 = vmatpush3.msra.mxu0 %v3660_v40 }
 0xf08   :  { %3857 = vmatprep.subr.mxu0 %v8182_v63 }
 0xf09   :  { %3858 = vmatpush3.msra.mxu0 %v3659_v43 }
 0xf0a   :  { %3859 = vmatprep.subr.mxu0 %v8182_v63 }
 0xf0b   :  { %3860 = vmatpush3.msra.mxu0 %v3658_v25 }
 0xf0c   :  { %3861 = vmatprep.subr.mxu0 %v8182_v63  ;;  %v2167_v63 = vadd.f32 %v8191_v15, %v8057_v53 }
 0xf0d   :  { %3862 = vmatpush3.msra.mxu0 %v3657_v12 }
 0xfae   :  { %v3553_v56 = vpop.f32.mrf.mxu0  ;;  %v3624_v62 = vpop.f32.mrf.mxu1 }
 0xfaf   :  { %v3629_v2 = vadd.f32 %v3553_v56, %v2052_v58  ;;  %v3631_v18 = vadd.f32 %v3624_v62, %v2165_v26 }
 0xfb0   :  { %v3555_v19 = vpop.f32.mrf.mxu0  ;;  %v3626_v14 = vpop.f32.mrf.mxu1 }
 0xfb1   :  { %v3810_v59 = vmul.f32 -1.442695, %v3629_v2  ;;  %v3630_v10 = vadd.f32 %v3555_v19, %v2054_v54  ;;  %v3632_v16 = vadd.f32 %v3626_v14, %v2167_v63 }
 0xfb3   :  { %4109 = vpow2.f32 %v3810_v59  ;;  %v3811_v50 = vmul.f32 -1.442695, %v3630_v10  ;;  %v3812_v20 = vmul.f32 -1.442695, %v3632_v16 }
 0xfb5   :  { %4111 = vpow2.f32 %v3811_v50 }
 0xfb6   :  { %4113 = vtanh.f32 %v3631_v18 }
 0xfb7   :  { %4115 = vpow2.f32 %v3812_v20 }
 0xfc0   :  { %v4110_v21 = vpop.eup %4109 }
 0xfc1   :  { %v3636_v51 = vadd.f32 1.0, %v4110_v21 }
 0xfc2   :  { %v4112_v23 = vpop.eup %4111 }
 0xfc3   :  { %4117 = vrcp.f32 %v3636_v51  ;;  %v3642_v0 = vadd.f32 1.0, %v4112_v23  ;;  %v4114_v31 = vpop.eup %4113 }
 0xfc4   :  { %v4116_v32 = vpop.eup %4115 }
 0xfc5   :  { %4119 = vrcp.f32 %v3642_v0  ;;  %v3649_v53 = vadd.f32 1.0, %v4116_v32 }
 0xfc7   :  { %4121 = vrcp.f32 %v3649_v53 }
 0xfd0   :  { %v4118_v33 = vpop.eup %4117 }
 0xfd1   :  { %v3653_v34 = vmul.f32 %v4118_v33, %v4114_v31 }
 0xfd2   :  { %v4120_v35 = vpop.eup %4119 }
 0xfd3   :  { %v3652_v22 = vmul.f32 %v4120_v35, %v7463_v37 }
 0xfd4   :  { %v4122_v9 = vpop.eup %4121 }
 0xfd5   :  { %v3654_v52 = vadd.f32 %v3653_v34, %v3652_v22 }
 0xfd7   :  { %4123 = vtanh.f32 %v3654_v52 }
 0xfe4   :  { %v4124_v47 = vpop.eup %4123 }
 0xfe5   :  { %v3656_v48 = vmul.f32 %v4124_v47, %v4122_v9 }
 0xfe7   :  { %3864 = vmatmul.mubr.f32.vlgmr.msra.gmra.mxu0 %v3656_v48 }
0x10a7   :  { %v3746_v44 = vpop.f32.mrf.mxu0 }
0x10a8   :  { %v3747_v42 = vadd.f32 %v3813_v27, %v3746_v44 }
0x10a9   :  { %v3865_v46 = vpop.f32.mrf.mxu0 }
0x10aa   :  { %3750 = vst [vmem:[#allocation4] sm:$0xff] %v3747_v42 }
0x10ab   :  { %4264 = shalt.err (!%p4261_p4)
}
0x10ac   :  { %3760 = dma.vmem_to_hbm [thread:$0]  %s3758_s30, 128, %s7554_s9, [#allocation5]  }
0x10ad   :  { %4273 = dma.done.wait [#allocation5], 128  }
0x10ae   :  { %4274 = vsyncadd [#allocation5], 4294967168 }
0x10af   :  { %3764 = vsyncpa [#allocation5], 1 }

</bundles_post_ra>
